<compile_context>
chip_gen: v6e
topology: v6e:2x2x1
jax: 0.10.0
libtpu: 0.0.40
codegen_flags: <defaults>
</compile_context>

<pallas_src>
import functools

import jax
import jax.numpy as jnp
from jax.experimental import pallas as pl
from jax.experimental.pallas import tpu as pltpu

NEG_INF_FILL = -1000000.0


def rnp_forward_kernel(x_ref, mask_ref, gdiff_ref,
                       wih_gen_ref, bih_gen_ref, wih_cls_ref, bih_cls_ref,
                       whh_gf_ref, bhh_gf_ref, whh_gb_ref, bhh_gb_ref,
                       whh_cf_ref, bhh_cf_ref, whh_cb_ref, bhh_cb_ref,
                       wz_f_ref, wz_b_ref, bz_ref,
                       wfc_f_ref, wfc_b_ref, bfc_ref,
                       logits_ref, z1_ref,
                       xpg_ref, xpc_ref, hseq_f_ref, hseq_b_ref, hgf_ref, hgb_ref):
    """One batch block of BB rows.

    x_ref       (T*BB, Ep)      f32  pre-masked embeddings, row index = t*BB + b
    mask_ref    (T, BB, 1)      f32
    gdiff_ref   (T*BB, 1)       f32  gumbel noise difference g1 - g0
    wih_gen_ref (Ep, 6*H2p)     f32  [fwd r|z|n | bwd r|z|n]
    wih_cls_ref (Ep, 6*H2p)     bf16
    bih_*_ref   (1, 6*H2p)      f32
    whh_g*_ref  (H2p, 3*H2p)    f32  generator recurrent weights [r|z|n]
    whh_c*_ref  (H2p, 3*H2p)    bf16 classifier recurrent weights
    bhh_*_ref   (1, 3*H2p)      f32
    wz_*_ref    (H2p, 128)      f32  col0 = gen_fc[:,1]-gen_fc[:,0] per direction
    bz_ref      (1, 128)        f32
    wfc_*_ref   (H2p, Cp)       bf16
    bfc_ref     (1, Cp)         f32
    logits_ref  (BB, Cp)        f32  out
    z1_ref      (T*BB, 1)       f32  out (hard rationale mask, class 1)
    xpg/xpc_ref (T*BB, 6*H2p)   f32  scratch (hoisted input projections)
    hseq_*_ref  (T*BB, H2p)     f32  scratch (per-step generator hidden states)
    hgf/hgb_ref (BB, H2p)       f32  scratch (generator recurrence state)
    """
    T, BB, _ = mask_ref.shape
    H2p = whh_cf_ref.shape[0]
    G3 = 3 * H2p

    # ---- Phase 1: hoisted input projections for BOTH GRUs (off the serial chain) ----
    x = x_ref[...]
    xpg_ref[...] = (jnp.dot(x, wih_gen_ref[...], preferred_element_type=jnp.float32)
                    + bih_gen_ref[...])
    # classifier bias is added per-step (it must NOT be scaled by z).
    xpc_ref[...] = jnp.dot(x.astype(jnp.bfloat16), wih_cls_ref[...],
                           preferred_element_type=jnp.float32)

    def gru_update(xp, hp, h):
        # PyTorch GRU gate equations, fused gate order [r, z, n].
        r = jax.nn.sigmoid(xp[:, 0:H2p] + hp[:, 0:H2p])
        z = jax.nn.sigmoid(xp[:, H2p:2 * H2p] + hp[:, H2p:2 * H2p])
        n = jnp.tanh(xp[:, 2 * H2p:G3] + r * hp[:, 2 * H2p:G3])
        return (1.0 - z) * n + z * h

    # ---- Phase 2: generator bi-GRU, fwd/bwd interleaved, hidden states stored ----
    hgf_ref[...] = jnp.zeros_like(hgf_ref)
    hgb_ref[...] = jnp.zeros_like(hgb_ref)

    def gen_step(i, carry):
        j = T - 1 - i
        off_i = pl.multiple_of(i * BB, BB)
        off_j = pl.multiple_of(j * BB, BB)
        row_f = xpg_ref[pl.ds(off_i, BB), :]            # (BB, 6*H2p)
        row_b = xpg_ref[pl.ds(off_j, BB), :]
        h_f = hgf_ref[...]
        h_b = hgb_ref[...]
        hp_f = jnp.dot(h_f, whh_gf_ref[...],
                       preferred_element_type=jnp.float32) + bhh_gf_ref[...]
        hp_b = jnp.dot(h_b, whh_gb_ref[...],
                       preferred_element_type=jnp.float32) + bhh_gb_ref[...]
        h_f = gru_update(row_f[:, 0:G3], hp_f, h_f)
        h_b = gru_update(row_b[:, G3:2 * G3], hp_b, h_b)
        hgf_ref[...] = h_f
        hgb_ref[...] = h_b
        hseq_f_ref[pl.ds(off_i, BB), :] = h_f
        hseq_b_ref[pl.ds(off_j, BB), :] = h_b
        return carry

    jax.lax.fori_loop(0, T, gen_step, 0)

    # ---- Phase 3: rationale logit difference + straight-through hard sample z1 ----
    zdiff = (jnp.dot(hseq_f_ref[...], wz_f_ref[...], preferred_element_type=jnp.float32)
             + jnp.dot(hseq_b_ref[...], wz_b_ref[...], preferred_element_type=jnp.float32)
             + bz_ref[...])                              # (T*BB, 128), col 0 meaningful
    z1_ref[...] = (zdiff[:, 0:1] + gdiff_ref[...] > 0.0).astype(jnp.float32)

    # ---- Phase 4: classifier bi-GRU on z-scaled projections + masked running max ----
    bih_cf = bih_cls_ref[:, 0:G3]
    bih_cb = bih_cls_ref[:, G3:2 * G3]

    def cls_step(i, carry):
        h_f, h_b, mx_f, mx_b = carry
        j = T - 1 - i
        off_i = pl.multiple_of(i * BB, BB)
        off_j = pl.multiple_of(j * BB, BB)
        z1_i = z1_ref[pl.ds(off_i, BB), :]               # (BB, 1)
        z1_j = z1_ref[pl.ds(off_j, BB), :]
        row_f = xpc_ref[pl.ds(off_i, BB), :]
        row_b = xpc_ref[pl.ds(off_j, BB), :]
        xp_f = z1_i * row_f[:, 0:G3] + bih_cf
        xp_b = z1_j * row_b[:, G3:2 * G3] + bih_cb
        hp_f = jnp.dot(h_f.astype(jnp.bfloat16), whh_cf_ref[...],
                       preferred_element_type=jnp.float32) + bhh_cf_ref[...]
        hp_b = jnp.dot(h_b.astype(jnp.bfloat16), whh_cb_ref[...],
                       preferred_element_type=jnp.float32) + bhh_cb_ref[...]
        h_f = gru_update(xp_f, hp_f, h_f)
        h_b = gru_update(xp_b, hp_b, h_b)
        m_f = mask_ref[i]                                # (BB, 1)
        m_b = mask_ref[j]
        mx_f = jnp.maximum(mx_f, h_f * m_f + (1.0 - m_f) * NEG_INF_FILL)
        mx_b = jnp.maximum(mx_b, h_b * m_b + (1.0 - m_b) * NEG_INF_FILL)
        return h_f, h_b, mx_f, mx_b

    h0 = jnp.zeros((BB, H2p), jnp.float32)
    mx0 = jnp.full((BB, H2p), NEG_INF_FILL, jnp.float32)
    _, _, mx_f, mx_b = jax.lax.fori_loop(0, T, cls_step, (h0, h0, mx0, mx0))

    # ---- Phase 5: final FC (split per direction -> no in-kernel concat; lane-dense) ----
    logits_ref[...] = (
        jnp.dot(mx_f.astype(jnp.bfloat16), wfc_f_ref[...],
                preferred_element_type=jnp.float32)
        + jnp.dot(mx_b.astype(jnp.bfloat16), wfc_b_ref[...],
                  preferred_element_type=jnp.float32)
        + bfc_ref[...])


def _round_up(n, m):
    return ((n + m - 1) // m) * m


def prepare_kernel_params(p, *, lane=128):
    """Fuse per-gate GRU weights, zero-pad everything to (8,128)-friendly tiles.
    Generator-path weights stay f32 (hard threshold downstream); classifier-path matmul
    operands are cast to bf16 (f32 accumulation inside the kernel)."""
    E = p["emb_table"].shape[1]
    H2 = p["whh_cls_f"].shape[-1]
    C = p["bfc"].shape[-1]
    Ep, H2p, Cp = _round_up(E, lane), _round_up(H2, lane), _round_up(C, lane)

    def pad2(a, rows, cols):
        return jnp.pad(a, ((0, rows - a.shape[0]), (0, cols - a.shape[1])))

    def fuse_gates(w3, rows, cols):   # (3, r, c) -> (rows, 3*cols), gate blocks [r|z|n]
        return jnp.concatenate([pad2(w3[g], rows, cols) for g in range(3)], axis=1)

    def fuse_dirs(wf, wb, rows, cols):
        return jnp.concatenate([fuse_gates(wf, rows, cols),
                                fuse_gates(wb, rows, cols)], axis=1)

    wz_f = jnp.zeros((H2p, lane), jnp.float32)
    wz_f = wz_f.at[0:H2, 0].set(p["wgfc_f"][:, 1] - p["wgfc_f"][:, 0])
    wz_b = jnp.zeros((H2p, lane), jnp.float32)
    wz_b = wz_b.at[0:H2, 0].set(p["wgfc_b"][:, 1] - p["wgfc_b"][:, 0])
    bz = jnp.zeros((1, lane), jnp.float32).at[0, 0].set(p["bgfc"][0, 1] - p["bgfc"][0, 0])

    return {
        "emb_table": jnp.pad(p["emb_table"], ((0, 0), (0, Ep - E))).astype(jnp.float32),
        # generator path (f32)
        "wih_gen": fuse_dirs(p["wih_gen_f"], p["wih_gen_b"], Ep, H2p).astype(jnp.float32),
        "bih_gen": fuse_dirs(p["bih_gen_f"], p["bih_gen_b"], 1, H2p).astype(jnp.float32),
        "whh_gf": fuse_gates(p["whh_gen_f"], H2p, H2p).astype(jnp.float32),
        "whh_gb": fuse_gates(p["whh_gen_b"], H2p, H2p).astype(jnp.float32),
        "bhh_gf": fuse_gates(p["bhh_gen_f"], 1, H2p).astype(jnp.float32),
        "bhh_gb": fuse_gates(p["bhh_gen_b"], 1, H2p).astype(jnp.float32),
        "wz_f": wz_f, "wz_b": wz_b, "bz": bz,
        # classifier path (bf16 matmul operands)
        "wih_cls": fuse_dirs(p["wih_cls_f"], p["wih_cls_b"], Ep, H2p).astype(jnp.bfloat16),
        "bih_cls": fuse_dirs(p["bih_cls_f"], p["bih_cls_b"], 1, H2p).astype(jnp.float32),
        "whh_cf": fuse_gates(p["whh_cls_f"], H2p, H2p).astype(jnp.bfloat16),
        "whh_cb": fuse_gates(p["whh_cls_b"], H2p, H2p).astype(jnp.bfloat16),
        "bhh_cf": fuse_gates(p["bhh_cls_f"], 1, H2p).astype(jnp.float32),
        "bhh_cb": fuse_gates(p["bhh_cls_b"], 1, H2p).astype(jnp.float32),
        "wfc_f": pad2(p["wfc_f"], H2p, Cp).astype(jnp.bfloat16),
        "wfc_b": pad2(p["wfc_b"], H2p, Cp).astype(jnp.bfloat16),
        "bfc": pad2(p["bfc"], 1, Cp).astype(jnp.float32),
    }


def _full_spec(a):
    return pl.BlockSpec(a.shape, lambda i: (0,) * a.ndim)


_WEIGHT_KEYS = ("wih_gen", "bih_gen", "wih_cls", "bih_cls",
                "whh_gf", "bhh_gf", "whh_gb", "bhh_gb",
                "whh_cf", "bhh_cf", "whh_cb", "bhh_cb",
                "wz_f", "wz_b", "bz",
                "wfc_f", "wfc_b", "bfc")


@functools.partial(jax.jit, static_argnames=("num_class", "b_blk"))
def rnp_forward(inputs, masks, gumbel_diff, kp, *, num_class, b_blk=16):
    """Base_RNP.forward (eval-mode dropout).  Returns (z, cls_logits).

    inputs: (B, T) int32 ids.  masks: (B, T) {0,1}.  gumbel_diff: (B, T) = g1 - g0.
    """
    B, T = inputs.shape
    Ep = kp["emb_table"].shape[1]
    H2p = kp["whh_gf"].shape[0]
    G6 = 6 * H2p
    Cp = kp["bfc"].shape[1]
    Bp = _round_up(B, b_blk)
    nb = Bp // b_blk

    # Pad the batch and lay data out in contiguous batch blocks, time-major inside each
    # block (row index t*b_blk + b); the embedding gather happens directly in this layout
    # and the sequence mask is folded into the embeddings here.
    ids = jnp.pad(inputs, ((0, Bp - B), (0, 0)))                       # (Bp, T)
    msk = jnp.pad(masks.astype(jnp.float32), ((0, Bp - B), (0, 0)))    # (Bp, T)
    gdf = jnp.pad(gumbel_diff.astype(jnp.float32), ((0, Bp - B), (0, 0)))
    ids_blk = ids.reshape(nb, b_blk, T).transpose(0, 2, 1)             # (nb, T, BB)
    msk_blk = msk.reshape(nb, b_blk, T).transpose(0, 2, 1)
    gdf_blk = gdf.reshape(nb, b_blk, T).transpose(0, 2, 1)

    x_blk = jnp.take(kp["emb_table"], ids_blk.reshape(nb, T * b_blk), axis=0)   # f32
    x_blk = x_blk * msk_blk.reshape(nb, T * b_blk, 1)                  # (nb, T*BB, Ep)
    mask4 = msk_blk[..., None]                                         # (nb, T, BB, 1)
    gdiff = gdf_blk.reshape(nb, T * b_blk, 1)                          # (nb, T*BB, 1)

    flops = (2 * T * Bp * Ep * (2 * G6)                  # hoisted input projections
             + 2 * 2 * 2 * T * Bp * H2p * (3 * H2p)      # gen+cls, fwd+bwd recurrences
             + 2 * T * Bp * (2 * H2p) * 128              # rationale logit diff
             + 2 * 2 * Bp * H2p * Cp)                    # final FC
    transcendentals = 2 * 2 * 3 * T * Bp * H2p
    bytes_accessed = (x_blk.size * 4 + mask4.size * 4 + gdiff.size * 4
                      + Bp * Cp * 4 + nb * T * b_blk * 4
                      + sum(kp[k].size * kp[k].dtype.itemsize for k in _WEIGHT_KEYS))

    logits, z1 = pl.pallas_call(
        rnp_forward_kernel,
        out_shape=(jax.ShapeDtypeStruct((Bp, Cp), jnp.float32),
                   jax.ShapeDtypeStruct((nb, T * b_blk, 1), jnp.float32)),
        grid=(nb,),
        in_specs=[
            pl.BlockSpec((None, T * b_blk, Ep), lambda i: (i, 0, 0)),
            pl.BlockSpec((None, T, b_blk, 1), lambda i: (i, 0, 0, 0)),
            pl.BlockSpec((None, T * b_blk, 1), lambda i: (i, 0, 0)),
            *[_full_spec(kp[k]) for k in _WEIGHT_KEYS],
        ],
        out_specs=(pl.BlockSpec((b_blk, Cp), lambda i: (i, 0)),
                   pl.BlockSpec((None, T * b_blk, 1), lambda i: (i, 0, 0))),
        scratch_shapes=[
            pltpu.VMEM((T * b_blk, G6), jnp.float32),    # gen input projections
            pltpu.VMEM((T * b_blk, G6), jnp.float32),    # cls input projections
            pltpu.VMEM((T * b_blk, H2p), jnp.float32),   # gen fwd hidden states
            pltpu.VMEM((T * b_blk, H2p), jnp.float32),   # gen bwd hidden states
            pltpu.VMEM((b_blk, H2p), jnp.float32),       # gen fwd recurrence state
            pltpu.VMEM((b_blk, H2p), jnp.float32),       # gen bwd recurrence state
        ],
        compiler_params=pltpu.CompilerParams(
            dimension_semantics=("parallel",),           # megacore-shards batch blocks
            vmem_limit_bytes=64 * 1024 * 1024),
        cost_estimate=pl.CostEstimate(flops=flops,
                                      transcendentals=transcendentals,
                                      bytes_accessed=bytes_accessed),
    )(x_blk, mask4, gdiff, *[kp[k] for k in _WEIGHT_KEYS])

    z1_bt = z1.reshape(nb, T, b_blk).transpose(0, 2, 1).reshape(Bp, T)[:B]
    z = jnp.stack([1.0 - z1_bt, z1_bt], axis=-1)         # hard one-hot (forward value)
    return z, logits[:B, :num_class]


def ref_forward(inputs, masks, gumbel, p):
    """Pure-JAX f32 reference matching the PyTorch forward (eval mode), same gumbel noise."""
    emb = jnp.take(p["emb_table"], inputs, axis=0)
    m = masks.astype(jnp.float32)[..., None]
    x = m * emb
    B, T, _ = x.shape
    H2 = p["whh_cls_f"].shape[-1]

    def run_dir(xseq, wih, whh, bih, bhh):
        def step(h, xt):
            r = jax.nn.sigmoid(xt @ wih[0] + bih[0] + h @ whh[0] + bhh[0])
            z = jax.nn.sigmoid(xt @ wih[1] + bih[1] + h @ whh[1] + bhh[1])
            n = jnp.tanh(xt @ wih[2] + bih[2] + r * (h @ whh[2] + bhh[2]))
            h_new = (1.0 - z) * n + z * h
            return h_new, h_new
        _, hs = jax.lax.scan(step, jnp.zeros((B, H2), jnp.float32), xseq)
        return hs  # (T, B, H2)

    def bigru(xin, name):
        xt = jnp.transpose(xin, (1, 0, 2))
        hf = run_dir(xt, p[f"wih_{name}_f"], p[f"whh_{name}_f"],
                     p[f"bih_{name}_f"], p[f"bhh_{name}_f"])
        hb = run_dir(xt[::-1], p[f"wih_{name}_b"], p[f"whh_{name}_b"],
                     p[f"bih_{name}_b"], p[f"bhh_{name}_b"])[::-1]
        return jnp.transpose(jnp.concatenate([hf, hb], axis=-1), (1, 0, 2))  # (B,T,H)

    gen_out = bigru(x, "gen")
    wgfc = jnp.concatenate([p["wgfc_f"], p["wgfc_b"]], axis=0)
    gen_logits = gen_out @ wgfc + p["bgfc"]
    y = gen_logits + gumbel                                 # tau = 1
    z1 = (y[..., 1] > y[..., 0]).astype(jnp.float32)        # hard one-hot forward value
    z = jnp.stack([1.0 - z1, z1], axis=-1)

    cls_out = bigru(x * z1[..., None], "cls")
    cls_out = cls_out * m + (1.0 - m) * NEG_INF_FILL
    pooled = jnp.max(cls_out, axis=1)
    wfc = jnp.concatenate([p["wfc_f"], p["wfc_b"]], axis=0)
    return z, pooled @ wfc + p["bfc"]


def init_params(key, vocab_size, embedding_dim, hidden_dim, num_class):
    H2 = hidden_dim // 2
    E = embedding_dim
    keys = iter(jax.random.split(key, 32))
    s = 0.1

    def nrm(shape):
        return s * jax.random.normal(next(keys), shape, jnp.float32)

    p = {"emb_table": jax.random.normal(next(keys), (vocab_size, E), jnp.float32)}
    for name in ("gen", "cls"):
        for d in ("f", "b"):
            p[f"wih_{name}_{d}"] = nrm((3, E, H2))      # gate order [r, z, n]
            p[f"whh_{name}_{d}"] = nrm((3, H2, H2))
            p[f"bih_{name}_{d}"] = nrm((3, 1, H2))
            p[f"bhh_{name}_{d}"] = nrm((3, 1, H2))
    p["wgfc_f"] = nrm((H2, 2)); p["wgfc_b"] = nrm((H2, 2)); p["bgfc"] = nrm((1, 2))
    p["wfc_f"] = nrm((H2, num_class)); p["wfc_b"] = nrm((H2, num_class))
    p["bfc"] = nrm((1, num_class))
    return p


if __name__ == "__main__":
    # Small shapes consistent with the module's forward.
    B, T = 2, 8
    vocab_size, embedding_dim, hidden_dim, num_class = 32, 16, 32, 4

    key = jax.random.PRNGKey(0)
    k_par, k_in, k_g = jax.random.split(key, 3)
    params = init_params(k_par, vocab_size, embedding_dim, hidden_dim, num_class)
    kparams = prepare_kernel_params(params)   # fuse / pad / cast once

    inputs = jax.random.randint(k_in, (B, T), 0, vocab_size, dtype=jnp.int32)
    lengths = jnp.array([T, 5], dtype=jnp.int32)
    masks = (jnp.arange(T)[None, :] < lengths[:, None]).astype(jnp.float32)   # (B,T)
    gumbel = jax.random.gumbel(k_g, (B, T, 2), dtype=jnp.float32)
    gdiff = gumbel[..., 1] - gumbel[..., 0]

    z, logits = rnp_forward(inputs, masks, gdiff, kparams, num_class=num_class)
    z = jax.block_until_ready(z)
    logits = jax.block_until_ready(logits)

    z_ref, logits_ref = ref_forward(inputs, masks, gumbel, params)
    assert z.shape == (B, T, 2) and logits.shape == (B, num_class)
    # generator path is f32 in the kernel -> the hard rationale mask must match exactly.
    assert jnp.array_equal(z, z_ref), (z, z_ref)
    # classifier path uses bf16 matmul operands (f32 accumulation) -> looser tolerance.
    assert jnp.allclose(logits, logits_ref, rtol=2e-2, atol=2e-2), (logits, logits_ref)

    print("KERNEL_OK")
</pallas_src>

<mosaic_0001>
module attributes {stable_mosaic.version = 11 : i64} {
  func.func @rnp_forward_kernel(%arg0: i32, %arg1: memref<1x128x128xf32, #tpu.memory_space<vmem>>, %arg2: memref<1x8x16x1xf32, #tpu.memory_space<vmem>>, %arg3: memref<1x128x1xf32, #tpu.memory_space<vmem>>, %arg4: memref<128x768xf32, #tpu.memory_space<vmem>>, %arg5: memref<1x768xf32, #tpu.memory_space<vmem>>, %arg6: memref<128x768xbf16, #tpu.memory_space<vmem>>, %arg7: memref<1x768xf32, #tpu.memory_space<vmem>>, %arg8: memref<128x384xf32, #tpu.memory_space<vmem>>, %arg9: memref<1x384xf32, #tpu.memory_space<vmem>>, %arg10: memref<128x384xf32, #tpu.memory_space<vmem>>, %arg11: memref<1x384xf32, #tpu.memory_space<vmem>>, %arg12: memref<128x384xbf16, #tpu.memory_space<vmem>>, %arg13: memref<1x384xf32, #tpu.memory_space<vmem>>, %arg14: memref<128x384xbf16, #tpu.memory_space<vmem>>, %arg15: memref<1x384xf32, #tpu.memory_space<vmem>>, %arg16: memref<128x128xf32, #tpu.memory_space<vmem>>, %arg17: memref<128x128xf32, #tpu.memory_space<vmem>>, %arg18: memref<1x128xf32, #tpu.memory_space<vmem>>, %arg19: memref<128x128xbf16, #tpu.memory_space<vmem>>, %arg20: memref<128x128xbf16, #tpu.memory_space<vmem>>, %arg21: memref<1x128xf32, #tpu.memory_space<vmem>>, %arg22: memref<16x128xf32, #tpu.memory_space<vmem>>, %arg23: memref<1x128x1xf32, #tpu.memory_space<vmem>>, %arg24: memref<128x768xf32, #tpu.memory_space<vmem>>, %arg25: memref<128x768xf32, #tpu.memory_space<vmem>>, %arg26: memref<128x128xf32, #tpu.memory_space<vmem>>, %arg27: memref<128x128xf32, #tpu.memory_space<vmem>>, %arg28: memref<16x128xf32, #tpu.memory_space<vmem>>, %arg29: memref<16x128xf32, #tpu.memory_space<vmem>>) attributes {dimension_semantics = [#tpu.dimension_semantics<parallel>], iteration_bounds = array<i64: 1>, scalar_prefetch = 0 : i64, scratch_operands = 6 : i64, tpu.core_type = #tpu.core_type<tc>, window_params = [{transform_indices = @transform_0, window_bounds = array<i64: 1, 128, 128>}, {transform_indices = @transform_1, window_bounds = array<i64: 1, 8, 16, 1>}, {transform_indices = @transform_2, window_bounds = array<i64: 1, 128, 1>}, {pipeline_mode = #tpu.pipeline_mode<synchronous>, transform_indices = @transform_3, window_bounds = array<i64: 128, 768>}, {pipeline_mode = #tpu.pipeline_mode<synchronous>, transform_indices = @transform_4, window_bounds = array<i64: 1, 768>}, {pipeline_mode = #tpu.pipeline_mode<synchronous>, transform_indices = @transform_5, window_bounds = array<i64: 128, 768>}, {pipeline_mode = #tpu.pipeline_mode<synchronous>, transform_indices = @transform_6, window_bounds = array<i64: 1, 768>}, {pipeline_mode = #tpu.pipeline_mode<synchronous>, transform_indices = @transform_7, window_bounds = array<i64: 128, 384>}, {pipeline_mode = #tpu.pipeline_mode<synchronous>, transform_indices = @transform_8, window_bounds = array<i64: 1, 384>}, {pipeline_mode = #tpu.pipeline_mode<synchronous>, transform_indices = @transform_9, window_bounds = array<i64: 128, 384>}, {pipeline_mode = #tpu.pipeline_mode<synchronous>, transform_indices = @transform_10, window_bounds = array<i64: 1, 384>}, {pipeline_mode = #tpu.pipeline_mode<synchronous>, transform_indices = @transform_11, window_bounds = array<i64: 128, 384>}, {pipeline_mode = #tpu.pipeline_mode<synchronous>, transform_indices = @transform_12, window_bounds = array<i64: 1, 384>}, {pipeline_mode = #tpu.pipeline_mode<synchronous>, transform_indices = @transform_13, window_bounds = array<i64: 128, 384>}, {pipeline_mode = #tpu.pipeline_mode<synchronous>, transform_indices = @transform_14, window_bounds = array<i64: 1, 384>}, {pipeline_mode = #tpu.pipeline_mode<synchronous>, transform_indices = @transform_15, window_bounds = array<i64: 128, 128>}, {pipeline_mode = #tpu.pipeline_mode<synchronous>, transform_indices = @transform_16, window_bounds = array<i64: 128, 128>}, {pipeline_mode = #tpu.pipeline_mode<synchronous>, transform_indices = @transform_17, window_bounds = array<i64: 1, 128>}, {pipeline_mode = #tpu.pipeline_mode<synchronous>, transform_indices = @transform_18, window_bounds = array<i64: 128, 128>}, {pipeline_mode = #tpu.pipeline_mode<synchronous>, transform_indices = @transform_19, window_bounds = array<i64: 128, 128>}, {pipeline_mode = #tpu.pipeline_mode<synchronous>, transform_indices = @transform_20, window_bounds = array<i64: 1, 128>}, {transform_indices = @transform_21, window_bounds = array<i64: 16, 128>}, {transform_indices = @transform_22, window_bounds = array<i64: 1, 128, 1>}]} {
    %c0 = arith.constant 0 : index
    %c0_0 = arith.constant 0 : index
    %c0_1 = arith.constant 0 : index
    %0 = vector.load %arg1[%c0, %c0_0, %c0_1] : memref<1x128x128xf32, #tpu.memory_space<vmem>>, vector<1x128x128xf32>
    %1 = vector.shape_cast %0 : vector<1x128x128xf32> to vector<128x128xf32>
    %c0_2 = arith.constant 0 : index
    %c0_3 = arith.constant 0 : index
    %2 = vector.load %arg4[%c0_2, %c0_3] : memref<128x768xf32, #tpu.memory_space<vmem>>, vector<128x768xf32>
    %cst = arith.constant dense<0.000000e+00> : vector<128x768xf32>
    %3 = tpu.matmul %1, %2, %cst {dimension_numbers = #tpu.dot_dimension_numbers<[1], [0], [0], [1], [0, 0, 1, 1], [], []>} : vector<128x128xf32>, vector<128x768xf32>, vector<128x768xf32> -> vector<128x768xf32>
    %c0_4 = arith.constant 0 : index
    %c0_5 = arith.constant 0 : index
    %4 = vector.load %arg5[%c0_4, %c0_5] : memref<1x768xf32, #tpu.memory_space<vmem>>, vector<1x768xf32>
    %5 = vector.broadcast %4 : vector<1x768xf32> to vector<128x768xf32>
    %6 = arith.addf %3, %5 : vector<128x768xf32>
    %c0_6 = arith.constant 0 : index
    %c0_7 = arith.constant 0 : index
    %7 = vector.load %arg24[%c0_6, %c0_7] : memref<128x768xf32, #tpu.memory_space<vmem>>, vector<128x768xf32>
    tpu.vector_store %arg24[%c0_6, %c0_7], %6 {strides = array<i32>} : memref<128x768xf32, #tpu.memory_space<vmem>>, vector<128x768xf32>,
    %8 = arith.truncf %1 : vector<128x128xf32> to vector<128x128xbf16>
    %c0_8 = arith.constant 0 : index
    %c0_9 = arith.constant 0 : index
    %9 = vector.load %arg6[%c0_8, %c0_9] : memref<128x768xbf16, #tpu.memory_space<vmem>>, vector<128x768xbf16>
    %cst_10 = arith.constant dense<0.000000e+00> : vector<128x768xf32>
    %10 = tpu.matmul %8, %9, %cst_10 {dimension_numbers = #tpu.dot_dimension_numbers<[1], [0], [0], [1], [0, 0, 1, 1], [], []>} : vector<128x128xbf16>, vector<128x768xbf16>, vector<128x768xf32> -> vector<128x768xf32>
    %c0_11 = arith.constant 0 : index
    %c0_12 = arith.constant 0 : index
    %11 = vector.load %arg25[%c0_11, %c0_12] : memref<128x768xf32, #tpu.memory_space<vmem>>, vector<128x768xf32>
    tpu.vector_store %arg25[%c0_11, %c0_12], %10 {strides = array<i32>} : memref<128x768xf32, #tpu.memory_space<vmem>>, vector<128x768xf32>,
    %cst_13 = arith.constant 0.000000e+00 : f32
    %12 = vector.broadcast %cst_13 : f32 to vector<16x128xf32>
    %c0_14 = arith.constant 0 : index
    %c0_15 = arith.constant 0 : index
    %13 = vector.load %arg28[%c0_14, %c0_15] : memref<16x128xf32, #tpu.memory_space<vmem>>, vector<16x128xf32>
    tpu.vector_store %arg28[%c0_14, %c0_15], %12 {strides = array<i32>} : memref<16x128xf32, #tpu.memory_space<vmem>>, vector<16x128xf32>,
    %cst_16 = arith.constant 0.000000e+00 : f32
    %14 = vector.broadcast %cst_16 : f32 to vector<16x128xf32>
    %c0_17 = arith.constant 0 : index
    %c0_18 = arith.constant 0 : index
    %15 = vector.load %arg29[%c0_17, %c0_18] : memref<16x128xf32, #tpu.memory_space<vmem>>, vector<16x128xf32>
    tpu.vector_store %arg29[%c0_17, %c0_18], %14 {strides = array<i32>} : memref<16x128xf32, #tpu.memory_space<vmem>>, vector<16x128xf32>,
    %c0_i32 = arith.constant 0 : i32
    %c8_i32 = arith.constant 8 : i32
    %16 = arith.addi %c0_i32, %c8_i32 : i32
    %c1_i32 = arith.constant 1 : i32
    scf.for %arg30 = %c0_i32 to %16 step %c1_i32  : i32 {
      %c7_i32 = arith.constant 7 : i32
      %55 = arith.subi %c7_i32, %arg30 : i32
      %c16_i32 = arith.constant 16 : i32
      %56 = arith.muli %arg30, %c16_i32 : i32
      %57 = tpu.assume_multiple %56, 16 : i32
      %c16_i32_58 = arith.constant 16 : i32
      %58 = arith.muli %55, %c16_i32_58 : i32
      %59 = tpu.assume_multiple %58, 16 : i32
      %60 = arith.index_cast %57 : i32 to index
      %c0_59 = arith.constant 0 : index
      %61 = vector.load %arg24[%60, %c0_59] : memref<128x768xf32, #tpu.memory_space<vmem>>, vector<16x768xf32>
      %62 = arith.index_cast %59 : i32 to index
      %c0_60 = arith.constant 0 : index
      %63 = vector.load %arg24[%62, %c0_60] : memref<128x768xf32, #tpu.memory_space<vmem>>, vector<16x768xf32>
      %c0_61 = arith.constant 0 : index
      %c0_62 = arith.constant 0 : index
      %64 = vector.load %arg28[%c0_61, %c0_62] : memref<16x128xf32, #tpu.memory_space<vmem>>, vector<16x128xf32>
      %c0_63 = arith.constant 0 : index
      %c0_64 = arith.constant 0 : index
      %65 = vector.load %arg29[%c0_63, %c0_64] : memref<16x128xf32, #tpu.memory_space<vmem>>, vector<16x128xf32>
      %c0_65 = arith.constant 0 : index
      %c0_66 = arith.constant 0 : index
      %66 = vector.load %arg8[%c0_65, %c0_66] : memref<128x384xf32, #tpu.memory_space<vmem>>, vector<128x384xf32>
      %cst_67 = arith.constant dense<0.000000e+00> : vector<16x384xf32>
      %67 = tpu.matmul %64, %66, %cst_67 {dimension_numbers = #tpu.dot_dimension_numbers<[1], [0], [0], [1], [0, 0, 1, 1], [], []>} : vector<16x128xf32>, vector<128x384xf32>, vector<16x384xf32> -> vector<16x384xf32>
      %c0_68 = arith.constant 0 : index
      %c0_69 = arith.constant 0 : index
      %68 = vector.load %arg9[%c0_68, %c0_69] : memref<1x384xf32, #tpu.memory_space<vmem>>, vector<1x384xf32>
      %69 = vector.broadcast %68 : vector<1x384xf32> to vector<16x384xf32>
      %70 = arith.addf %67, %69 : vector<16x384xf32>
      %c0_70 = arith.constant 0 : index
      %c0_71 = arith.constant 0 : index
      %71 = vector.load %arg10[%c0_70, %c0_71] : memref<128x384xf32, #tpu.memory_space<vmem>>, vector<128x384xf32>
      %cst_72 = arith.constant dense<0.000000e+00> : vector<16x384xf32>
      %72 = tpu.matmul %65, %71, %cst_72 {dimension_numbers = #tpu.dot_dimension_numbers<[1], [0], [0], [1], [0, 0, 1, 1], [], []>} : vector<16x128xf32>, vector<128x384xf32>, vector<16x384xf32> -> vector<16x384xf32>
      %c0_73 = arith.constant 0 : index
      %c0_74 = arith.constant 0 : index
      %73 = vector.load %arg11[%c0_73, %c0_74] : memref<1x384xf32, #tpu.memory_space<vmem>>, vector<1x384xf32>
      %74 = vector.broadcast %73 : vector<1x384xf32> to vector<16x384xf32>
      %75 = arith.addf %72, %74 : vector<16x384xf32>
      %76 = vector.extract_strided_slice %61 {offsets = [0, 0], sizes = [16, 384], strides = [1, 1]} : vector<16x768xf32> to vector<16x384xf32>
      %77 = vector.extract_strided_slice %76 {offsets = [0, 0], sizes = [16, 128], strides = [1, 1]} : vector<16x384xf32> to vector<16x128xf32>
      %78 = vector.extract_strided_slice %70 {offsets = [0, 0], sizes = [16, 128], strides = [1, 1]} : vector<16x384xf32> to vector<16x128xf32>
      %79 = arith.addf %77, %78 : vector<16x128xf32>
      %80 = arith.negf %79 : vector<16x128xf32>
      %81 = math.exp %80 : vector<16x128xf32>
      %cst_75 = arith.constant 1.000000e+00 : f32
      %82 = vector.broadcast %cst_75 : f32 to vector<16x128xf32>
      %83 = arith.addf %82, %81 : vector<16x128xf32>
      %84 = arith.divf %82, %83 : vector<16x128xf32>
      %85 = vector.extract_strided_slice %76 {offsets = [0, 128], sizes = [16, 128], strides = [1, 1]} : vector<16x384xf32> to vector<16x128xf32>
      %86 = vector.extract_strided_slice %70 {offsets = [0, 128], sizes = [16, 128], strides = [1, 1]} : vector<16x384xf32> to vector<16x128xf32>
      %87 = arith.addf %85, %86 : vector<16x128xf32>
      %88 = arith.negf %87 : vector<16x128xf32>
      %89 = math.exp %88 : vector<16x128xf32>
      %cst_76 = arith.constant 1.000000e+00 : f32
      %90 = vector.broadcast %cst_76 : f32 to vector<16x128xf32>
      %91 = arith.addf %90, %89 : vector<16x128xf32>
      %92 = arith.divf %90, %91 : vector<16x128xf32>
      %93 = vector.extract_strided_slice %76 {offsets = [0, 256], sizes = [16, 128], strides = [1, 1]} : vector<16x384xf32> to vector<16x128xf32>
      %94 = vector.extract_strided_slice %70 {offsets = [0, 256], sizes = [16, 128], strides = [1, 1]} : vector<16x384xf32> to vector<16x128xf32>
      %95 = arith.mulf %84, %94 : vector<16x128xf32>
      %96 = arith.addf %93, %95 : vector<16x128xf32>
      %97 = math.tanh %96 : vector<16x128xf32>
      %cst_77 = arith.constant 1.000000e+00 : f32
      %98 = vector.broadcast %cst_77 : f32 to vector<16x128xf32>
      %99 = arith.subf %98, %92 : vector<16x128xf32>
      %100 = arith.mulf %99, %97 : vector<16x128xf32>
      %101 = arith.mulf %92, %64 : vector<16x128xf32>
      %102 = arith.addf %100, %101 : vector<16x128xf32>
      %103 = vector.extract_strided_slice %63 {offsets = [0, 384], sizes = [16, 384], strides = [1, 1]} : vector<16x768xf32> to vector<16x384xf32>
      %104 = vector.extract_strided_slice %103 {offsets = [0, 0], sizes = [16, 128], strides = [1, 1]} : vector<16x384xf32> to vector<16x128xf32>
      %105 = vector.extract_strided_slice %75 {offsets = [0, 0], sizes = [16, 128], strides = [1, 1]} : vector<16x384xf32> to vector<16x128xf32>
      %106 = arith.addf %104, %105 : vector<16x128xf32>
      %107 = arith.negf %106 : vector<16x128xf32>
      %108 = math.exp %107 : vector<16x128xf32>
      %cst_78 = arith.constant 1.000000e+00 : f32
      %109 = vector.broadcast %cst_78 : f32 to vector<16x128xf32>
      %110 = arith.addf %109, %108 : vector<16x128xf32>
      %111 = arith.divf %109, %110 : vector<16x128xf32>
      %112 = vector.extract_strided_slice %103 {offsets = [0, 128], sizes = [16, 128], strides = [1, 1]} : vector<16x384xf32> to vector<16x128xf32>
      %113 = vector.extract_strided_slice %75 {offsets = [0, 128], sizes = [16, 128], strides = [1, 1]} : vector<16x384xf32> to vector<16x128xf32>
      %114 = arith.addf %112, %113 : vector<16x128xf32>
      %115 = arith.negf %114 : vector<16x128xf32>
      %116 = math.exp %115 : vector<16x128xf32>
      %cst_79 = arith.constant 1.000000e+00 : f32
      %117 = vector.broadcast %cst_79 : f32 to vector<16x128xf32>
      %118 = arith.addf %117, %116 : vector<16x128xf32>
      %119 = arith.divf %117, %118 : vector<16x128xf32>
      %120 = vector.extract_strided_slice %103 {offsets = [0, 256], sizes = [16, 128], strides = [1, 1]} : vector<16x384xf32> to vector<16x128xf32>
      %121 = vector.extract_strided_slice %75 {offsets = [0, 256], sizes = [16, 128], strides = [1, 1]} : vector<16x384xf32> to vector<16x128xf32>
      %122 = arith.mulf %111, %121 : vector<16x128xf32>
      %123 = arith.addf %120, %122 : vector<16x128xf32>
      %124 = math.tanh %123 : vector<16x128xf32>
      %cst_80 = arith.constant 1.000000e+00 : f32
      %125 = vector.broadcast %cst_80 : f32 to vector<16x128xf32>
      %126 = arith.subf %125, %119 : vector<16x128xf32>
      %127 = arith.mulf %126, %124 : vector<16x128xf32>
      %128 = arith.mulf %119, %65 : vector<16x128xf32>
      %129 = arith.addf %127, %128 : vector<16x128xf32>
      %c0_81 = arith.constant 0 : index
      %c0_82 = arith.constant 0 : index
      %130 = vector.load %arg28[%c0_81, %c0_82] : memref<16x128xf32, #tpu.memory_space<vmem>>, vector<16x128xf32>
      tpu.vector_store %arg28[%c0_81, %c0_82], %102 {strides = array<i32>} : memref<16x128xf32, #tpu.memory_space<vmem>>, vector<16x128xf32>,
      %c0_83 = arith.constant 0 : index
      %c0_84 = arith.constant 0 : index
      %131 = vector.load %arg29[%c0_83, %c0_84] : memref<16x128xf32, #tpu.memory_space<vmem>>, vector<16x128xf32>
      tpu.vector_store %arg29[%c0_83, %c0_84], %129 {strides = array<i32>} : memref<16x128xf32, #tpu.memory_space<vmem>>, vector<16x128xf32>,
      %132 = arith.index_cast %57 : i32 to index
      %c0_85 = arith.constant 0 : index
      %133 = vector.load %arg26[%132, %c0_85] : memref<128x128xf32, #tpu.memory_space<vmem>>, vector<16x128xf32>
      tpu.vector_store %arg26[%132, %c0_85], %102 {strides = array<i32>} : memref<128x128xf32, #tpu.memory_space<vmem>>, vector<16x128xf32>,
      %134 = arith.index_cast %59 : i32 to index
      %c0_86 = arith.constant 0 : index
      %135 = vector.load %arg27[%134, %c0_86] : memref<128x128xf32, #tpu.memory_space<vmem>>, vector<16x128xf32>
      tpu.vector_store %arg27[%134, %c0_86], %129 {strides = array<i32>} : memref<128x128xf32, #tpu.memory_space<vmem>>, vector<16x128xf32>,
    }
    %c8_i32_19 = arith.constant 8 : i32
    %c0_20 = arith.constant 0 : index
    %c0_21 = arith.constant 0 : index
    %17 = vector.load %arg26[%c0_20, %c0_21] : memref<128x128xf32, #tpu.memory_space<vmem>>, vector<128x128xf32>
    %c0_22 = arith.constant 0 : index
    %c0_23 = arith.constant 0 : index
    %18 = vector.load %arg16[%c0_22, %c0_23] : memref<128x128xf32, #tpu.memory_space<vmem>>, vector<128x128xf32>
    %cst_24 = arith.constant dense<0.000000e+00> : vector<128x128xf32>
    %19 = tpu.matmul %17, %18, %cst_24 {dimension_numbers = #tpu.dot_dimension_numbers<[1], [0], [0], [1], [0, 0, 1, 1], [], []>} : vector<128x128xf32>, vector<128x128xf32>, vector<128x128xf32> -> vector<128x128xf32>
    %c0_25 = arith.constant 0 : index
    %c0_26 = arith.constant 0 : index
    %20 = vector.load %arg27[%c0_25, %c0_26] : memref<128x128xf32, #tpu.memory_space<vmem>>, vector<128x128xf32>
    %c0_27 = arith.constant 0 : index
    %c0_28 = arith.constant 0 : index
    %21 = vector.load %arg17[%c0_27, %c0_28] : memref<128x128xf32, #tpu.memory_space<vmem>>, vector<128x128xf32>
    %cst_29 = arith.constant dense<0.000000e+00> : vector<128x128xf32>
    %22 = tpu.matmul %20, %21, %cst_29 {dimension_numbers = #tpu.dot_dimension_numbers<[1], [0], [0], [1], [0, 0, 1, 1], [], []>} : vector<128x128xf32>, vector<128x128xf32>, vector<128x128xf32> -> vector<128x128xf32>
    %23 = arith.addf %19, %22 : vector<128x128xf32>
    %c0_30 = arith.constant 0 : index
    %c0_31 = arith.constant 0 : index
    %24 = vector.load %arg18[%c0_30, %c0_31] : memref<1x128xf32, #tpu.memory_space<vmem>>, vector<1x128xf32>
    %25 = vector.broadcast %24 : vector<1x128xf32> to vector<128x128xf32>
    %26 = arith.addf %23, %25 : vector<128x128xf32>
    %27 = vector.extract_strided_slice %26 {offsets = [0, 0], sizes = [128, 1], strides = [1, 1]} : vector<128x128xf32> to vector<128x1xf32>
    %c0_32 = arith.constant 0 : index
    %c0_33 = arith.constant 0 : index
    %c0_34 = arith.constant 0 : index
    %28 = vector.load %arg3[%c0_32, %c0_33, %c0_34] : memref<1x128x1xf32, #tpu.memory_space<vmem>>, vector<1x128x1xf32>
    %29 = vector.shape_cast %28 : vector<1x128x1xf32> to vector<128x1xf32>
    %30 = arith.addf %27, %29 : vector<128x1xf32>
    %cst_35 = arith.constant 0.000000e+00 : f32
    %31 = vector.broadcast %cst_35 : f32 to vector<128x1xf32>
    %32 = arith.cmpf ogt, %30, %31 : vector<128x1xf32>
    %33 = arith.extui %32 : vector<128x1xi1> to vector<128x1xi32>
    %34 = arith.sitofp %33 : vector<128x1xi32> to vector<128x1xf32>
    %c0_36 = arith.constant 0 : index
    %c0_37 = arith.constant 0 : index
    %c0_38 = arith.constant 0 : index
    %35 = vector.load %arg23[%c0_36, %c0_37, %c0_38] : memref<1x128x1xf32, #tpu.memory_space<vmem>>, vector<1x128x1xf32>
    %36 = vector.shape_cast %35 : vector<1x128x1xf32> to vector<128x1xf32>
    %37 = vector.shape_cast %34 : vector<128x1xf32> to vector<1x128x1xf32>
    tpu.vector_store %arg23[%c0_36, %c0_37, %c0_38], %37 {strides = array<i32>} : memref<1x128x1xf32, #tpu.memory_space<vmem>>, vector<1x128x1xf32>,
    %c0_39 = arith.constant 0 : index
    %c0_40 = arith.constant 0 : index
    %38 = vector.load %arg7[%c0_39, %c0_40] : memref<1x768xf32, #tpu.memory_space<vmem>>, vector<1x384xf32>
    %c0_41 = arith.constant 0 : index
    %c384 = arith.constant 384 : index
    %39 = vector.load %arg7[%c0_41, %c384] : memref<1x768xf32, #tpu.memory_space<vmem>>, vector<1x384xf32>
    %cst_42 = arith.constant 0.000000e+00 : f32
    %40 = vector.broadcast %cst_42 : f32 to vector<16x128xf32>
    %cst_43 = arith.constant -1.000000e+06 : f32
    %41 = vector.broadcast %cst_43 : f32 to vector<16x128xf32>
    %c0_i32_44 = arith.constant 0 : i32
    %c8_i32_45 = arith.constant 8 : i32
    %42 = arith.addi %c0_i32_44, %c8_i32_45 : i32
    %c1_i32_46 = arith.constant 1 : i32
    %43:4 = scf.for %arg30 = %c0_i32_44 to %42 step %c1_i32_46 iter_args(%arg31 = %40, %arg32 = %40, %arg33 = %41, %arg34 = %41) -> (vector<16x128xf32>, vector<16x128xf32>, vector<16x128xf32>, vector<16x128xf32>)  : i32 {
      %c7_i32 = arith.constant 7 : i32
      %55 = arith.subi %c7_i32, %arg30 : i32
      %c16_i32 = arith.constant 16 : i32
      %56 = arith.muli %arg30, %c16_i32 : i32
      %57 = tpu.assume_multiple %56, 16 : i32
      %c16_i32_58 = arith.constant 16 : i32
      %58 = arith.muli %55, %c16_i32_58 : i32
      %59 = tpu.assume_multiple %58, 16 : i32
      %c0_59 = arith.constant 0 : index
      %60 = arith.index_cast %57 : i32 to index
      %c0_60 = arith.constant 0 : index
      %61 = vector.load %arg23[%c0_59, %60, %c0_60] : memref<1x128x1xf32, #tpu.memory_space<vmem>>, vector<1x16x1xf32>
      %62 = vector.shape_cast %61 : vector<1x16x1xf32> to vector<16x1xf32>
      %c0_61 = arith.constant 0 : index
      %63 = arith.index_cast %59 : i32 to index
      %c0_62 = arith.constant 0 : index
      %64 = vector.load %arg23[%c0_61, %63, %c0_62] : memref<1x128x1xf32, #tpu.memory_space<vmem>>, vector<1x16x1xf32>
      %65 = vector.shape_cast %64 : vector<1x16x1xf32> to vector<16x1xf32>
      %66 = arith.index_cast %57 : i32 to index
      %c0_63 = arith.constant 0 : index
      %67 = vector.load %arg25[%66, %c0_63] : memref<128x768xf32, #tpu.memory_space<vmem>>, vector<16x768xf32>
      %68 = arith.index_cast %59 : i32 to index
      %c0_64 = arith.constant 0 : index
      %69 = vector.load %arg25[%68, %c0_64] : memref<128x768xf32, #tpu.memory_space<vmem>>, vector<16x768xf32>
      %70 = vector.extract_strided_slice %67 {offsets = [0, 0], sizes = [16, 384], strides = [1, 1]} : vector<16x768xf32> to vector<16x384xf32>
      %71 = vector.broadcast %62 : vector<16x1xf32> to vector<16x384xf32>
      %72 = arith.mulf %71, %70 : vector<16x384xf32>
      %73 = vector.broadcast %38 : vector<1x384xf32> to vector<16x384xf32>
      %74 = arith.addf %72, %73 : vector<16x384xf32>
      %75 = vector.extract_strided_slice %69 {offsets = [0, 384], sizes = [16, 384], strides = [1, 1]} : vector<16x768xf32> to vector<16x384xf32>
      %76 = vector.broadcast %65 : vector<16x1xf32> to vector<16x384xf32>
      %77 = arith.mulf %76, %75 : vector<16x384xf32>
      %78 = vector.broadcast %39 : vector<1x384xf32> to vector<16x384xf32>
      %79 = arith.addf %77, %78 : vector<16x384xf32>
      %80 = arith.truncf %arg31 : vector<16x128xf32> to vector<16x128xbf16>
      %c0_65 = arith.constant 0 : index
      %c0_66 = arith.constant 0 : index
      %81 = vector.load %arg12[%c0_65, %c0_66] : memref<128x384xbf16, #tpu.memory_space<vmem>>, vector<128x384xbf16>
      %cst_67 = arith.constant dense<0.000000e+00> : vector<16x384xf32>
      %82 = tpu.matmul %80, %81, %cst_67 {dimension_numbers = #tpu.dot_dimension_numbers<[1], [0], [0], [1], [0, 0, 1, 1], [], []>} : vector<16x128xbf16>, vector<128x384xbf16>, vector<16x384xf32> -> vector<16x384xf32>
      %c0_68 = arith.constant 0 : index
      %c0_69 = arith.constant 0 : index
      %83 = vector.load %arg13[%c0_68, %c0_69] : memref<1x384xf32, #tpu.memory_space<vmem>>, vector<1x384xf32>
      %84 = vector.broadcast %83 : vector<1x384xf32> to vector<16x384xf32>
      %85 = arith.addf %82, %84 : vector<16x384xf32>
      %86 = arith.truncf %arg32 : vector<16x128xf32> to vector<16x128xbf16>
      %c0_70 = arith.constant 0 : index
      %c0_71 = arith.constant 0 : index
      %87 = vector.load %arg14[%c0_70, %c0_71] : memref<128x384xbf16, #tpu.memory_space<vmem>>, vector<128x384xbf16>
      %cst_72 = arith.constant dense<0.000000e+00> : vector<16x384xf32>
      %88 = tpu.matmul %86, %87, %cst_72 {dimension_numbers = #tpu.dot_dimension_numbers<[1], [0], [0], [1], [0, 0, 1, 1], [], []>} : vector<16x128xbf16>, vector<128x384xbf16>, vector<16x384xf32> -> vector<16x384xf32>
      %c0_73 = arith.constant 0 : index
      %c0_74 = arith.constant 0 : index
      %89 = vector.load %arg15[%c0_73, %c0_74] : memref<1x384xf32, #tpu.memory_space<vmem>>, vector<1x384xf32>
      %90 = vector.broadcast %89 : vector<1x384xf32> to vector<16x384xf32>
      %91 = arith.addf %88, %90 : vector<16x384xf32>
      %92 = vector.extract_strided_slice %74 {offsets = [0, 0], sizes = [16, 128], strides = [1, 1]} : vector<16x384xf32> to vector<16x128xf32>
      %93 = vector.extract_strided_slice %85 {offsets = [0, 0], sizes = [16, 128], strides = [1, 1]} : vector<16x384xf32> to vector<16x128xf32>
      %94 = arith.addf %92, %93 : vector<16x128xf32>
      %95 = arith.negf %94 : vector<16x128xf32>
      %96 = math.exp %95 : vector<16x128xf32>
      %cst_75 = arith.constant 1.000000e+00 : f32
      %97 = vector.broadcast %cst_75 : f32 to vector<16x128xf32>
      %98 = arith.addf %97, %96 : vector<16x128xf32>
      %99 = arith.divf %97, %98 : vector<16x128xf32>
      %100 = vector.extract_strided_slice %74 {offsets = [0, 128], sizes = [16, 128], strides = [1, 1]} : vector<16x384xf32> to vector<16x128xf32>
      %101 = vector.extract_strided_slice %85 {offsets = [0, 128], sizes = [16, 128], strides = [1, 1]} : vector<16x384xf32> to vector<16x128xf32>
      %102 = arith.addf %100, %101 : vector<16x128xf32>
      %103 = arith.negf %102 : vector<16x128xf32>
      %104 = math.exp %103 : vector<16x128xf32>
      %cst_76 = arith.constant 1.000000e+00 : f32
      %105 = vector.broadcast %cst_76 : f32 to vector<16x128xf32>
      %106 = arith.addf %105, %104 : vector<16x128xf32>
      %107 = arith.divf %105, %106 : vector<16x128xf32>
      %108 = vector.extract_strided_slice %74 {offsets = [0, 256], sizes = [16, 128], strides = [1, 1]} : vector<16x384xf32> to vector<16x128xf32>
      %109 = vector.extract_strided_slice %85 {offsets = [0, 256], sizes = [16, 128], strides = [1, 1]} : vector<16x384xf32> to vector<16x128xf32>
      %110 = arith.mulf %99, %109 : vector<16x128xf32>
      %111 = arith.addf %108, %110 : vector<16x128xf32>
      %112 = math.tanh %111 : vector<16x128xf32>
      %cst_77 = arith.constant 1.000000e+00 : f32
      %113 = vector.broadcast %cst_77 : f32 to vector<16x128xf32>
      %114 = arith.subf %113, %107 : vector<16x128xf32>
      %115 = arith.mulf %114, %112 : vector<16x128xf32>
      %116 = arith.mulf %107, %arg31 : vector<16x128xf32>
      %117 = arith.addf %115, %116 : vector<16x128xf32>
      %118 = vector.extract_strided_slice %79 {offsets = [0, 0], sizes = [16, 128], strides = [1, 1]} : vector<16x384xf32> to vector<16x128xf32>
      %119 = vector.extract_strided_slice %91 {offsets = [0, 0], sizes = [16, 128], strides = [1, 1]} : vector<16x384xf32> to vector<16x128xf32>
      %120 = arith.addf %118, %119 : vector<16x128xf32>
      %121 = arith.negf %120 : vector<16x128xf32>
      %122 = math.exp %121 : vector<16x128xf32>
      %cst_78 = arith.constant 1.000000e+00 : f32
      %123 = vector.broadcast %cst_78 : f32 to vector<16x128xf32>
      %124 = arith.addf %123, %122 : vector<16x128xf32>
      %125 = arith.divf %123, %124 : vector<16x128xf32>
      %126 = vector.extract_strided_slice %79 {offsets = [0, 128], sizes = [16, 128], strides = [1, 1]} : vector<16x384xf32> to vector<16x128xf32>
      %127 = vector.extract_strided_slice %91 {offsets = [0, 128], sizes = [16, 128], strides = [1, 1]} : vector<16x384xf32> to vector<16x128xf32>
      %128 = arith.addf %126, %127 : vector<16x128xf32>
      %129 = arith.negf %128 : vector<16x128xf32>
      %130 = math.exp %129 : vector<16x128xf32>
      %cst_79 = arith.constant 1.000000e+00 : f32
      %131 = vector.broadcast %cst_79 : f32 to vector<16x128xf32>
      %132 = arith.addf %131, %130 : vector<16x128xf32>
      %133 = arith.divf %131, %132 : vector<16x128xf32>
      %134 = vector.extract_strided_slice %79 {offsets = [0, 256], sizes = [16, 128], strides = [1, 1]} : vector<16x384xf32> to vector<16x128xf32>
      %135 = vector.extract_strided_slice %91 {offsets = [0, 256], sizes = [16, 128], strides = [1, 1]} : vector<16x384xf32> to vector<16x128xf32>
      %136 = arith.mulf %125, %135 : vector<16x128xf32>
      %137 = arith.addf %134, %136 : vector<16x128xf32>
      %138 = math.tanh %137 : vector<16x128xf32>
      %cst_80 = arith.constant 1.000000e+00 : f32
      %139 = vector.broadcast %cst_80 : f32 to vector<16x128xf32>
      %140 = arith.subf %139, %133 : vector<16x128xf32>
      %141 = arith.mulf %140, %138 : vector<16x128xf32>
      %142 = arith.mulf %133, %arg32 : vector<16x128xf32>
      %143 = arith.addf %141, %142 : vector<16x128xf32>
      %c0_81 = arith.constant 0 : index
      %144 = arith.index_cast %arg30 : i32 to index
      %c0_82 = arith.constant 0 : index
      %c0_83 = arith.constant 0 : index
      %145 = vector.load %arg2[%c0_81, %144, %c0_82, %c0_83] : memref<1x8x16x1xf32, #tpu.memory_space<vmem>>, vector<1x1x16x1xf32>
      %146 = vector.shape_cast %145 : vector<1x1x16x1xf32> to vector<16x1xf32>
      %c0_84 = arith.constant 0 : index
      %147 = arith.index_cast %55 : i32 to index
      %c0_85 = arith.constant 0 : index
      %c0_86 = arith.constant 0 : index
      %148 = vector.load %arg2[%c0_84, %147, %c0_85, %c0_86] : memref<1x8x16x1xf32, #tpu.memory_space<vmem>>, vector<1x1x16x1xf32>
      %149 = vector.shape_cast %148 : vector<1x1x16x1xf32> to vector<16x1xf32>
      %150 = vector.broadcast %146 : vector<16x1xf32> to vector<16x128xf32>
      %151 = arith.mulf %117, %150 : vector<16x128xf32>
      %cst_87 = arith.constant 1.000000e+00 : f32
      %152 = vector.broadcast %cst_87 : f32 to vector<16x1xf32>
      %153 = arith.subf %152, %146 : vector<16x1xf32>
      %cst_88 = arith.constant -1.000000e+06 : f32
      %154 = vector.broadcast %cst_88 : f32 to vector<16x1xf32>
      %155 = arith.mulf %153, %154 : vector<16x1xf32>
      %156 = vector.broadcast %155 : vector<16x1xf32> to vector<16x128xf32>
      %157 = arith.addf %151, %156 : vector<16x128xf32>
      %158 = arith.maximumf %arg33, %157 : vector<16x128xf32>
      %159 = vector.broadcast %149 : vector<16x1xf32> to vector<16x128xf32>
      %160 = arith.mulf %143, %159 : vector<16x128xf32>
      %cst_89 = arith.constant 1.000000e+00 : f32
      %161 = vector.broadcast %cst_89 : f32 to vector<16x1xf32>
      %162 = arith.subf %161, %149 : vector<16x1xf32>
      %cst_90 = arith.constant -1.000000e+06 : f32
      %163 = vector.broadcast %cst_90 : f32 to vector<16x1xf32>
      %164 = arith.mulf %162, %163 : vector<16x1xf32>
      %165 = vector.broadcast %164 : vector<16x1xf32> to vector<16x128xf32>
      %166 = arith.addf %160, %165 : vector<16x128xf32>
      %167 = arith.maximumf %arg34, %166 : vector<16x128xf32>
      scf.yield %117, %143, %158, %167 : vector<16x128xf32>, vector<16x128xf32>, vector<16x128xf32>, vector<16x128xf32>
    }
    %c8_i32_47 = arith.constant 8 : i32
    %44 = arith.truncf %43#2 : vector<16x128xf32> to vector<16x128xbf16>
    %c0_48 = arith.constant 0 : index
    %c0_49 = arith.constant 0 : index
    %45 = vector.load %arg19[%c0_48, %c0_49] : memref<128x128xbf16, #tpu.memory_space<vmem>>, vector<128x128xbf16>
    %cst_50 = arith.constant dense<0.000000e+00> : vector<16x128xf32>
    %46 = tpu.matmul %44, %45, %cst_50 {dimension_numbers = #tpu.dot_dimension_numbers<[1], [0], [0], [1], [0, 0, 1, 1], [], []>} : vector<16x128xbf16>, vector<128x128xbf16>, vector<16x128xf32> -> vector<16x128xf32>
    %47 = arith.truncf %43#3 : vector<16x128xf32> to vector<16x128xbf16>
    %c0_51 = arith.constant 0 : index
    %c0_52 = arith.constant 0 : index
    %48 = vector.load %arg20[%c0_51, %c0_52] : memref<128x128xbf16, #tpu.memory_space<vmem>>, vector<128x128xbf16>
    %cst_53 = arith.constant dense<0.000000e+00> : vector<16x128xf32>
    %49 = tpu.matmul %47, %48, %cst_53 {dimension_numbers = #tpu.dot_dimension_numbers<[1], [0], [0], [1], [0, 0, 1, 1], [], []>} : vector<16x128xbf16>, vector<128x128xbf16>, vector<16x128xf32> -> vector<16x128xf32>
    %50 = arith.addf %46, %49 : vector<16x128xf32>
    %c0_54 = arith.constant 0 : index
    %c0_55 = arith.constant 0 : index
    %51 = vector.load %arg21[%c0_54, %c0_55] : memref<1x128xf32, #tpu.memory_space<vmem>>, vector<1x128xf32>
    %52 = vector.broadcast %51 : vector<1x128xf32> to vector<16x128xf32>
    %53 = arith.addf %50, %52 : vector<16x128xf32>
    %c0_56 = arith.constant 0 : index
    %c0_57 = arith.constant 0 : index
    %54 = vector.load %arg22[%c0_56, %c0_57] : memref<16x128xf32, #tpu.memory_space<vmem>>, vector<16x128xf32>
    tpu.vector_store %arg22[%c0_56, %c0_57], %53 {strides = array<i32>} : memref<16x128xf32, #tpu.memory_space<vmem>>, vector<16x128xf32>,
    return
  }
  func.func @transform_0(%arg0: i32) -> (i32, i32, i32) {
    %c0_i32 = arith.constant 0 : i32
    %c0_i32_0 = arith.constant 0 : i32
    %c0_i32_1 = arith.constant 0 : i32
    return %arg0, %c0_i32, %c0_i32_0 : i32, i32, i32
  }
  func.func @transform_1(%arg0: i32) -> (i32, i32, i32, i32) {
    %c0_i32 = arith.constant 0 : i32
    %c0_i32_0 = arith.constant 0 : i32
    %c0_i32_1 = arith.constant 0 : i32
    %c0_i32_2 = arith.constant 0 : i32
    return %arg0, %c0_i32, %c0_i32_0, %c0_i32_1 : i32, i32, i32, i32
  }
  func.func @transform_2(%arg0: i32) -> (i32, i32, i32) {
    %c0_i32 = arith.constant 0 : i32
    %c0_i32_0 = arith.constant 0 : i32
    %c0_i32_1 = arith.constant 0 : i32
    return %arg0, %c0_i32, %c0_i32_0 : i32, i32, i32
  }
  func.func @transform_3(%arg0: i32) -> (i32, i32) {
    %c0_i32 = arith.constant 0 : i32
    %c0_i32_0 = arith.constant 0 : i32
    %c0_i32_1 = arith.constant 0 : i32
    return %c0_i32, %c0_i32_0 : i32, i32
  }
  func.func @transform_4(%arg0: i32) -> (i32, i32) {
    %c0_i32 = arith.constant 0 : i32
    %c0_i32_0 = arith.constant 0 : i32
    %c0_i32_1 = arith.constant 0 : i32
    return %c0_i32, %c0_i32_0 : i32, i32
  }
  func.func @transform_5(%arg0: i32) -> (i32, i32) {
    %c0_i32 = arith.constant 0 : i32
    %c0_i32_0 = arith.constant 0 : i32
    %c0_i32_1 = arith.constant 0 : i32
    return %c0_i32, %c0_i32_0 : i32, i32
  }
  func.func @transform_6(%arg0: i32) -> (i32, i32) {
    %c0_i32 = arith.constant 0 : i32
    %c0_i32_0 = arith.constant 0 : i32
    %c0_i32_1 = arith.constant 0 : i32
    return %c0_i32, %c0_i32_0 : i32, i32
  }
  func.func @transform_7(%arg0: i32) -> (i32, i32) {
    %c0_i32 = arith.constant 0 : i32
    %c0_i32_0 = arith.constant 0 : i32
    %c0_i32_1 = arith.constant 0 : i32
    return %c0_i32, %c0_i32_0 : i32, i32
  }
  func.func @transform_8(%arg0: i32) -> (i32, i32) {
    %c0_i32 = arith.constant 0 : i32
    %c0_i32_0 = arith.constant 0 : i32
    %c0_i32_1 = arith.constant 0 : i32
    return %c0_i32, %c0_i32_0 : i32, i32
  }
  func.func @transform_9(%arg0: i32) -> (i32, i32) {
    %c0_i32 = arith.constant 0 : i32
    %c0_i32_0 = arith.constant 0 : i32
    %c0_i32_1 = arith.constant 0 : i32
    return %c0_i32, %c0_i32_0 : i32, i32
  }
  func.func @transform_10(%arg0: i32) -> (i32, i32) {
    %c0_i32 = arith.constant 0 : i32
    %c0_i32_0 = arith.constant 0 : i32
    %c0_i32_1 = arith.constant 0 : i32
    return %c0_i32, %c0_i32_0 : i32, i32
  }
  func.func @transform_11(%arg0: i32) -> (i32, i32) {
    %c0_i32 = arith.constant 0 : i32
    %c0_i32_0 = arith.constant 0 : i32
    %c0_i32_1 = arith.constant 0 : i32
    return %c0_i32, %c0_i32_0 : i32, i32
  }
  func.func @transform_12(%arg0: i32) -> (i32, i32) {
    %c0_i32 = arith.constant 0 : i32
    %c0_i32_0 = arith.constant 0 : i32
    %c0_i32_1 = arith.constant 0 : i32
    return %c0_i32, %c0_i32_0 : i32, i32
  }
  func.func @transform_13(%arg0: i32) -> (i32, i32) {
    %c0_i32 = arith.constant 0 : i32
    %c0_i32_0 = arith.constant 0 : i32
    %c0_i32_1 = arith.constant 0 : i32
    return %c0_i32, %c0_i32_0 : i32, i32
  }
  func.func @transform_14(%arg0: i32) -> (i32, i32) {
    %c0_i32 = arith.constant 0 : i32
    %c0_i32_0 = arith.constant 0 : i32
    %c0_i32_1 = arith.constant 0 : i32
    return %c0_i32, %c0_i32_0 : i32, i32
  }
  func.func @transform_15(%arg0: i32) -> (i32, i32) {
    %c0_i32 = arith.constant 0 : i32
    %c0_i32_0 = arith.constant 0 : i32
    %c0_i32_1 = arith.constant 0 : i32
    return %c0_i32, %c0_i32_0 : i32, i32
  }
  func.func @transform_16(%arg0: i32) -> (i32, i32) {
    %c0_i32 = arith.constant 0 : i32
    %c0_i32_0 = arith.constant 0 : i32
    %c0_i32_1 = arith.constant 0 : i32
    return %c0_i32, %c0_i32_0 : i32, i32
  }
  func.func @transform_17(%arg0: i32) -> (i32, i32) {
    %c0_i32 = arith.constant 0 : i32
    %c0_i32_0 = arith.constant 0 : i32
    %c0_i32_1 = arith.constant 0 : i32
    return %c0_i32, %c0_i32_0 : i32, i32
  }
  func.func @transform_18(%arg0: i32) -> (i32, i32) {
    %c0_i32 = arith.constant 0 : i32
    %c0_i32_0 = arith.constant 0 : i32
    %c0_i32_1 = arith.constant 0 : i32
    return %c0_i32, %c0_i32_0 : i32, i32
  }
  func.func @transform_19(%arg0: i32) -> (i32, i32) {
    %c0_i32 = arith.constant 0 : i32
    %c0_i32_0 = arith.constant 0 : i32
    %c0_i32_1 = arith.constant 0 : i32
    return %c0_i32, %c0_i32_0 : i32, i32
  }
  func.func @transform_20(%arg0: i32) -> (i32, i32) {
    %c0_i32 = arith.constant 0 : i32
    %c0_i32_0 = arith.constant 0 : i32
    %c0_i32_1 = arith.constant 0 : i32
    return %c0_i32, %c0_i32_0 : i32, i32
  }
  func.func @transform_21(%arg0: i32) -> (i32, i32) {
    %c0_i32 = arith.constant 0 : i32
    %c0_i32_0 = arith.constant 0 : i32
    return %arg0, %c0_i32 : i32, i32
  }
  func.func @transform_22(%arg0: i32) -> (i32, i32, i32) {
    %c0_i32 = arith.constant 0 : i32
    %c0_i32_0 = arith.constant 0 : i32
    %c0_i32_1 = arith.constant 0 : i32
    return %arg0, %c0_i32, %c0_i32_0 : i32, i32, i32
  }
}

</mosaic_0001>

<bundles_post_ra>
// kernel: rnp_forward.1
= control target key start
LH: loop header
LB: loop body
LE: loop exit
PB: predicated region body
PF: predicated region fallthrough
CT: control target
= control target key end

     0   :  { %s6609_s0 = inlined_call_operand.vmem [shape: f32[1,128,128], index: 0, kind: input, shape index: {}]   ;;  %s6610_s1 = inlined_call_operand.vmem [shape: f32[1,8,16,1], index: 1, kind: input, shape index: {}]   ;;  %s6611_s2 = inlined_call_operand.vmem [shape: f32[1,128,1], index: 2, kind: input, shape index: {}]   ;;  %s6612_s3 = inlined_call_operand.vmem [shape: f32[128,768], index: 3, kind: input, shape index: {}]   ;;  %s6613_s4 = inlined_call_operand.vmem [shape: f32[1,768], index: 4, kind: input, shape index: {}]   ;;  %s6614_s5 = inlined_call_operand.vmem [shape: bf16[128,768], index: 5, kind: input, shape index: {}]   ;;  %s6615_s6 = inlined_call_operand.vmem [shape: f32[1,768], index: 6, kind: input, shape index: {}]   ;;  %s6616_s7 = inlined_call_operand.vmem [shape: f32[128,384], index: 7, kind: input, shape index: {}]   ;;  %s6617_s8 = inlined_call_operand.vmem [shape: f32[1,384], index: 8, kind: input, shape index: {}]   ;;  %s6618_s9 = inlined_call_operand.hbm [shape: f32[128,384], index: 9, kind: input, shape index: {}]   ;;  %s6619_s10 = inlined_call_operand.vmem [shape: f32[1,384], index: 10, kind: input, shape index: {}]   ;;  %s6620_s11 = inlined_call_operand.vmem [shape: bf16[128,384], index: 11, kind: input, shape index: {}]   ;;  %s6621_s12 = inlined_call_operand.hbm [shape: f32[1,384], index: 12, kind: input, shape index: {}]   ;;  %s6622_s13 = inlined_call_operand.hbm [shape: bf16[128,384], index: 13, kind: input, shape index: {}]   ;;  %s6623_s14 = inlined_call_operand.hbm [shape: f32[1,384], index: 14, kind: input, shape index: {}]   ;;  %s6624_s15 = inlined_call_operand.hbm [shape: f32[128,128], index: 15, kind: input, shape index: {}]   ;;  %s6625_s16 = inlined_call_operand.hbm [shape: f32[128,128], index: 16, kind: input, shape index: {}]   ;;  %s6626_s17 = inlined_call_operand.hbm [shape: f32[1,128], index: 17, kind: input, shape index: {}]   ;;  %s6627_s18 = inlined_call_operand.vmem [shape: bf16[128,128], index: 18, kind: input, shape index: {}]   ;;  %s6628_s19 = inlined_call_operand.hbm [shape: bf16[128,128], index: 19, kind: input, shape index: {}]   ;;  %s6629_s20 = inlined_call_operand.hbm [shape: f32[1,128], index: 20, kind: input, shape index: {}]   ;;  %s6630_s21 = inlined_call_operand.vmem [shape: f32[16,128], index: 21, kind: output, shape index: {0}]   ;;  %s6631_s22 = inlined_call_operand.vmem [shape: f32[1,128,1], index: 22, kind: output, shape index: {1}]  }
   0x1   :  { %6638 = sst [smem:[#allocation27_spill]] %s6609_s0 }
   0x2   :  { %6639 = sst [smem:[#allocation28_spill]] %s6610_s1 }
   0x3   :  { %6640 = sst [smem:[#allocation29_spill]] %s6611_s2 }
   0x4   :  { %6641 = sst [smem:[#allocation30_spill]] %s6612_s3 }
   0x5   :  { %6642 = sst [smem:[#allocation31_spill]] %s6613_s4 }
   0x6   :  { %6643 = sst [smem:[#allocation32_spill]] %s6614_s5 }
   0x7   :  { %6644 = sst [smem:[#allocation33_spill]] %s6615_s6 }
   0x8   :  { %28 = vsyncpa [#allocation9], 0 }
   0x9   :  { %29 = vsyncpa [#allocation11], 0 }
   0xa   :  { %30 = vsyncpa [#allocation14], 0 }
   0xb   :  { %31 = vsyncpa [#allocation17], 0 }
   0xc   :  { %32 = vsyncpa [#allocation20], 0  ;;  %s4931_s3 = smov [#allocation10]   ;;  %s4932_s29 = smov [#allocation13]  }
   0xd   :  { %s73_s28 = sshll.u32 %s4931_s3, 4  ;;  %s95_s30 = sshll.u32 %s4932_s29, 4  ;;  %s74_s28 = int_to_ptr.vmem [resolvable:$true] %s73_s28  ;;  %s96_s30 = int_to_ptr.vmem [resolvable:$true] %s95_s30 }
   0xe   :  { %s4669_s4 = scalar_lea.vmem %s74_s28, 48  ;;  %s4673_s0 = scalar_lea.vmem %s74_s28, 64 }
   0xf   :  { %p4670_p0 = scmp.ne.s32.totalorder %s74_s28, %s4669_s4  ;;  %p4674_p1 = scmp.lt.s32.totalorder %s74_s28, %s74_s28 }
  0x10   :  { %p4675_p2 = scmp.lt.s32.totalorder %s4673_s0, %s4669_s4 }
  0x12   :  { %p4676_p3 = por %p4675_p2, %p4674_p1 }
  0x14   :  { %p4677_p4 = pnand %p4676_p3, %p4670_p0 }
  0x16   :  { %4680 = shalt.err (!%p4677_p4)
}
  0x17   :  { %76 = dma.hbm_to_vmem [thread:$0]  %s6621_s12, 48, %s74_s28, [#allocation11]  }
  0x18   :  { %s4689_s5 = scalar_lea.vmem %s96_s30, 48  ;;  %s4693_s24 = scalar_lea.vmem %s96_s30, 64 }
  0x19   :  { %p4690_p5 = scmp.ne.s32.totalorder %s96_s30, %s4689_s5  ;;  %p4694_p6 = scmp.lt.s32.totalorder %s96_s30, %s96_s30 }
  0x1a   :  { %p4695_p7 = scmp.lt.s32.totalorder %s4693_s24, %s4689_s5 }
  0x1c   :  { %p4696_p8 = por %p4695_p7, %p4694_p6 }
  0x1e   :  { %p4697_p9 = pnand %p4696_p8, %p4690_p5 }
  0x20   :  { %4700 = shalt.err (!%p4697_p9)
}
  0x21   :  { %98 = dma.hbm_to_vmem [thread:$0]  %s6623_s14, 48, %s96_s30, [#allocation14]  }
  0x22   :  { %s4933_s26 = smov [#allocation16]   ;;  %s4934_s27 = smov [#allocation19]  }
  0x23   :  { %s116_s2 = sshll.u32 %s4933_s26, 4  ;;  %s140_s3 = sshll.u32 %s4934_s27, 4  ;;  %s117_s2 = int_to_ptr.vmem [resolvable:$true] %s116_s2  ;;  %s141_s3 = int_to_ptr.vmem [resolvable:$true] %s140_s3 }
  0x24   :  { %s4709_s29 = scalar_lea.vmem %s117_s2, 2048  ;;  %p4714_p11 = scmp.lt.s32.totalorder %s117_s2, %s117_s2 }
  0x25   :  { %p4710_p10 = scmp.ne.s32.totalorder %s117_s2, %s4709_s29  ;;  %p4715_p12 = scmp.lt.s32.totalorder %s4709_s29, %s4709_s29 }
  0x27   :  { %p4716_p13 = por %p4715_p12, %p4714_p11 }
  0x29   :  { %p4717_p0 = pnand %p4716_p13, %p4710_p10 }
  0x2b   :  { %4720 = shalt.err (!%p4717_p0)
}
  0x2c   :  { %s4935_s12 = smov 128   ;;  %s4936_s28 = smov 8  }
  0x2d   :  { %122 = dma.hbm_to_vmem [thread:$0]  %s6625_s16, 2048, %s117_s2, [#allocation17], %s4935_s12, %s4935_s12, %s4936_s28  }
  0x2e   :  { %s4729_s30 = scalar_lea.vmem %s141_s3, 1024  ;;  %p4734_p2 = scmp.lt.s32.totalorder %s141_s3, %s141_s3 }
  0x2f   :  { %p4730_p1 = scmp.ne.s32.totalorder %s141_s3, %s4729_s30  ;;  %p4735_p3 = scmp.lt.s32.totalorder %s4729_s30, %s4729_s30 }
  0x31   :  { %p4736_p4 = por %p4735_p3, %p4734_p2 }
  0x33   :  { %p4737_p5 = pnand %p4736_p4, %p4730_p1 }
  0x35   :  { %4740 = shalt.err (!%p4737_p5)
}
  0x36   :  { %s4937_s0 = smov 64   ;;  %s4938_s23 = smov 4  }
  0x37   :  { %146 = dma.hbm_to_vmem [thread:$0]  %s6628_s19, 1024, %s141_s3, [#allocation20], %s4937_s0, %s4937_s0, %s4938_s23  }
  0x38   :  { %s4939_s24 = smov [#allocation8]  }
  0x39   :  { %s56_s6 = sshll.u32 %s4939_s24, 4  ;;  %s57_s6 = int_to_ptr.vmem [resolvable:$true] %s56_s6 }
  0x3a   :  { %s4749_s25 = scalar_lea.vmem %s57_s6, 6144  ;;  %p4754_p7 = scmp.lt.s32.totalorder %s57_s6, %s57_s6 }
  0x3b   :  { %p4750_p6 = scmp.ne.s32.totalorder %s57_s6, %s4749_s25  ;;  %p4755_p8 = scmp.lt.s32.totalorder %s4749_s25, %s4749_s25 }
  0x3d   :  { %p4756_p9 = por %p4755_p8, %p4754_p7 }
  0x3f   :  { %p4757_p10 = pnand %p4756_p9, %p4750_p6 }
  0x41   :  { %4760 = shalt.err (!%p4757_p10)
}
  0x42   :  { %s4940_s16 = smov 384   ;;  %s4941_s26 = smov 24  }
  0x43   :  { %62 = dma.hbm_to_vmem [thread:$0]  %s6618_s9, 6144, %s57_s6, [#allocation9], %s4940_s16, %s4940_s16, %s4941_s26  }
  0x44   :  { %s4942_s29 = smov [#allocation12]  }
  0x45   :  { %s82_s4 = sshll.u32 %s4942_s29, 4  ;;  %s83_s4 = int_to_ptr.vmem [resolvable:$true] %s82_s4 }
  0x46   :  { %s4769_s19 = scalar_lea.vmem %s83_s4, 3072  ;;  %p4774_p12 = scmp.lt.s32.totalorder %s83_s4, %s83_s4 }
  0x47   :  { %p4770_p11 = scmp.ne.s32.totalorder %s83_s4, %s4769_s19  ;;  %p4775_p13 = scmp.lt.s32.totalorder %s4769_s19, %s4769_s19 }
  0x49   :  { %p4776_p0 = por %p4775_p13, %p4774_p12 }
  0x4b   :  { %p4777_p1 = pnand %p4776_p0, %p4770_p11 }
  0x4d   :  { %4780 = shalt.err (!%p4777_p1)
}
  0x4e   :  { %s4943_s3 = smov 192   ;;  %s4944_s14 = smov 12  }
  0x4f   :  { %88 = dma.hbm_to_vmem [thread:$0]  %s6622_s13, 3072, %s83_s4, [#allocation11], %s4943_s3, %s4943_s3, %s4944_s14  }
  0x50   :  { %s4945_s23 = smov [#allocation15]   ;;  %s4946_s5 = smov [#allocation18]  }
  0x51   :  { %s104_s1 = sshll.u32 %s4945_s23, 4  ;;  %s129_s9 = sshll.u32 %s4946_s5, 4  ;;  %s105_s1 = int_to_ptr.vmem [resolvable:$true] %s104_s1  ;;  %s130_s9 = int_to_ptr.vmem [resolvable:$true] %s129_s9 }
  0x52   :  { %s4789_s24 = scalar_lea.vmem %s105_s1, 2048  ;;  %p4794_p3 = scmp.lt.s32.totalorder %s105_s1, %s105_s1 }
  0x53   :  { %p4790_p2 = scmp.ne.s32.totalorder %s105_s1, %s4789_s24  ;;  %p4795_p4 = scmp.lt.s32.totalorder %s4789_s24, %s4789_s24 }
  0x55   :  { %p4796_p5 = por %p4795_p4, %p4794_p3 }
  0x57   :  { %p4797_p6 = pnand %p4796_p5, %p4790_p2 }
  0x59   :  { %4800 = shalt.err (!%p4797_p6)
}
  0x5a   :  { %110 = dma.hbm_to_vmem [thread:$0]  %s6624_s15, 2048, %s105_s1, [#allocation14], %s4935_s12, %s4935_s12, %s4936_s28  }
  0x5b   :  { %s4809_s13 = scalar_lea.vmem %s130_s9, 16  ;;  %s4813_s16 = scalar_lea.vmem %s130_s9, 32 }
  0x5c   :  { %p4810_p7 = scmp.ne.s32.totalorder %s130_s9, %s4809_s13  ;;  %p4814_p8 = scmp.lt.s32.totalorder %s130_s9, %s130_s9 }
  0x5d   :  { %p4815_p9 = scmp.lt.s32.totalorder %s4813_s16, %s4809_s13 }
  0x5f   :  { %p4816_p10 = por %p4815_p9, %p4814_p8 }
  0x61   :  { %p4817_p11 = pnand %p4816_p10, %p4810_p7 }
  0x63   :  { %4820 = shalt.err (!%p4817_p11)
}
  0x64   :  { %132 = dma.hbm_to_vmem [thread:$0]  %s6626_s17, 16, %s130_s9, [#allocation17]  }
  0x65   :  { %s4947_s27 = smov [#allocation21]  }
  0x66   :  { %s153_s29 = sshll.u32 %s4947_s27, 4  ;;  %s154_s29 = int_to_ptr.vmem [resolvable:$true] %s153_s29 }
  0x67   :  { %s4829_s4 = scalar_lea.vmem %s154_s29, 16  ;;  %s4833_s19 = scalar_lea.vmem %s154_s29, 32 }
  0x68   :  { %p4830_p12 = scmp.ne.s32.totalorder %s154_s29, %s4829_s4  ;;  %p4834_p13 = scmp.lt.s32.totalorder %s154_s29, %s154_s29 }
  0x69   :  { %p4835_p0 = scmp.lt.s32.totalorder %s4833_s19, %s4829_s4 }
  0x6b   :  { %p4836_p1 = por %p4835_p0, %p4834_p13 }
  0x6d   :  { %p4837_p2 = pnand %p4836_p1, %p4830_p12 }
  0x6f   :  { %4840 = shalt.err (!%p4837_p2)
}
  0x70   :  { %156 = dma.hbm_to_vmem [thread:$0]  %s6629_s20, 16, %s154_s29, [#allocation20]  }
  0x71   :  { %4881 = dma.done.wait [#allocation9], 6144  }
  0x72   :  { %4882 = vsyncadd [#allocation9], 4294961152 }
  0x73   :  { %4883 = dma.done.wait [#allocation11], 3120  }
  0x74   :  { %4884 = vsyncadd [#allocation11], 4294964176 }
  0x75   :  { %4885 = dma.done.wait [#allocation14], 2096  }
  0x76   :  { %4886 = vsyncadd [#allocation14], 4294965200 }
  0x77   :  { %4887 = dma.done.wait [#allocation17], 2064  }
  0x78   :  { %4888 = vsyncadd [#allocation17], 4294965232 }
  0x79   :  { %4889 = dma.done.wait [#allocation20], 1040  }
  0x7a   :  { %4890 = vsyncadd [#allocation20], 4294966256  ;;  %v4948_v0 = vmov 0.0   ;;  %s6645_s28 = sld [smem:[#allocation30_spill]]  ;;  %s5911_s25 = smov 0  }
  0x7b   :  { %1639 = vst [vmem:[#allocation6] sm:$0xff] %v4948_v0  ;;  %1640 = vst [vmem:[#allocation6 + $0x8] sm:$0xff] %v4948_v0  ;;  %393 = vmatprep.mubr.f32.mxu0 %v4948_v0  ;;  %554 = vmatprep.mubr.f32.mxu1 %v4948_v0  ;;  %s6646_s26 = sld [smem:[#allocation27_spill]] }
  0x7c   :  { %1641 = vst [vmem:[#allocation7 + $0x8] sm:$0xff] %v4948_v0  ;;  %1642 = vst [vmem:[#allocation7] sm:$0xff] %v4948_v0  ;;  %s6647_s29 = sld [smem:[#allocation32_spill]] }
  0x7d   :  { %s6648_s6 = sld [smem:[#allocation31_spill]] }
  0x80   :  { %v292_v1 = vld [vmem:[%s6645_s28 + $0x2d8] sm:$0xff]  ;;  %v294_v2 = vld [vmem:[%s6645_s28 + $0x2e8] sm:$0xff]  ;;  %v291_v3 = vld [vmem:[%s6645_s28 + $0x2d0] sm:$0xff] }
  0x81   :  { %329 = vmatprep.subr.mxu0 %v292_v1  ;;  %490 = vmatprep.subr.mxu1 %v294_v2  ;;  %v293_v4 = vld [vmem:[%s6645_s28 + $0x2e0] sm:$0xff]  ;;  %v286_v5 = vld [vmem:[%s6645_s28 + $0x2a8] sm:$0xff]  ;;  %v288_v6 = vld [vmem:[%s6645_s28 + $0x2b8] sm:$0xff] }
  0x82   :  { %330 = vmatpush1.msra.mxu0 %v291_v3  ;;  %491 = vmatpush1.msra.mxu1 %v293_v4  ;;  %v285_v7 = vld [vmem:[%s6645_s28 + $0x2a0] sm:$0xff]  ;;  %v287_v8 = vld [vmem:[%s6645_s28 + $0x2b0] sm:$0xff]  ;;  %v280_v9 = vld [vmem:[%s6645_s28 + $0x278] sm:$0xff] }
  0x83   :  { %331 = vmatprep.subr.mxu0 %v286_v5  ;;  %492 = vmatprep.subr.mxu1 %v288_v6  ;;  %v282_v10 = vld [vmem:[%s6645_s28 + $0x288] sm:$0xff]  ;;  %v279_v11 = vld [vmem:[%s6645_s28 + $0x270] sm:$0xff]  ;;  %v281_v12 = vld [vmem:[%s6645_s28 + $0x280] sm:$0xff] }
  0x84   :  { %332 = vmatpush1.msra.mxu0 %v285_v7  ;;  %493 = vmatpush1.msra.mxu1 %v287_v8  ;;  %v274_v13 = vld [vmem:[%s6645_s28 + $0x248] sm:$0xff]  ;;  %v276_v14 = vld [vmem:[%s6645_s28 + $0x258] sm:$0xff]  ;;  %v273_v15 = vld [vmem:[%s6645_s28 + $0x240] sm:$0xff] }
  0x85   :  { %333 = vmatprep.subr.mxu0 %v280_v9  ;;  %494 = vmatprep.subr.mxu1 %v282_v10  ;;  %v275_v16 = vld [vmem:[%s6645_s28 + $0x250] sm:$0xff]  ;;  %v268_v17 = vld [vmem:[%s6645_s28 + $0x218] sm:$0xff]  ;;  %v270_v18 = vld [vmem:[%s6645_s28 + $0x228] sm:$0xff] }
  0x86   :  { %334 = vmatpush1.msra.mxu0 %v279_v11  ;;  %495 = vmatpush1.msra.mxu1 %v281_v12  ;;  %v267_v19 = vld [vmem:[%s6645_s28 + $0x210] sm:$0xff]  ;;  %v269_v20 = vld [vmem:[%s6645_s28 + $0x220] sm:$0xff]  ;;  %v262_v21 = vld [vmem:[%s6645_s28 + $0x1e8] sm:$0xff] }
  0x87   :  { %335 = vmatprep.subr.mxu0 %v274_v13  ;;  %496 = vmatprep.subr.mxu1 %v276_v14  ;;  %v264_v22 = vld [vmem:[%s6645_s28 + $0x1f8] sm:$0xff]  ;;  %v261_v23 = vld [vmem:[%s6645_s28 + $0x1e0] sm:$0xff]  ;;  %v263_v24 = vld [vmem:[%s6645_s28 + $0x1f0] sm:$0xff] }
  0x88   :  { %336 = vmatpush1.msra.mxu0 %v273_v15  ;;  %497 = vmatpush1.msra.mxu1 %v275_v16  ;;  %v256_v25 = vld [vmem:[%s6645_s28 + $0x1b8] sm:$0xff]  ;;  %v258_v26 = vld [vmem:[%s6645_s28 + $0x1c8] sm:$0xff]  ;;  %v255_v27 = vld [vmem:[%s6645_s28 + $0x1b0] sm:$0xff] }
  0x89   :  { %337 = vmatprep.subr.mxu0 %v268_v17  ;;  %498 = vmatprep.subr.mxu1 %v270_v18  ;;  %v257_v28 = vld [vmem:[%s6645_s28 + $0x1c0] sm:$0xff]  ;;  %v250_v29 = vld [vmem:[%s6645_s28 + $0x188] sm:$0xff]  ;;  %v252_v30 = vld [vmem:[%s6645_s28 + $0x198] sm:$0xff] }
  0x8a   :  { %338 = vmatpush1.msra.mxu0 %v267_v19  ;;  %499 = vmatpush1.msra.mxu1 %v269_v20  ;;  %v249_v31 = vld [vmem:[%s6645_s28 + $0x180] sm:$0xff]  ;;  %v251_v32 = vld [vmem:[%s6645_s28 + $0x190] sm:$0xff]  ;;  %v244_v33 = vld [vmem:[%s6645_s28 + $0x158] sm:$0xff] }
  0x8b   :  { %339 = vmatprep.subr.mxu0 %v262_v21  ;;  %500 = vmatprep.subr.mxu1 %v264_v22  ;;  %v246_v34 = vld [vmem:[%s6645_s28 + $0x168] sm:$0xff]  ;;  %v243_v35 = vld [vmem:[%s6645_s28 + $0x150] sm:$0xff]  ;;  %v245_v36 = vld [vmem:[%s6645_s28 + $0x160] sm:$0xff] }
  0x8c   :  { %340 = vmatpush1.msra.mxu0 %v261_v23  ;;  %501 = vmatpush1.msra.mxu1 %v263_v24  ;;  %v238_v37 = vld [vmem:[%s6645_s28 + $0x128] sm:$0xff]  ;;  %v240_v38 = vld [vmem:[%s6645_s28 + $0x138] sm:$0xff]  ;;  %v237_v39 = vld [vmem:[%s6645_s28 + $0x120] sm:$0xff] }
  0x8d   :  { %341 = vmatprep.subr.mxu0 %v256_v25  ;;  %502 = vmatprep.subr.mxu1 %v258_v26  ;;  %v239_v40 = vld [vmem:[%s6645_s28 + $0x130] sm:$0xff]  ;;  %v232_v41 = vld [vmem:[%s6645_s28 + $0xf8] sm:$0xff]  ;;  %v234_v42 = vld [vmem:[%s6645_s28 + $0x108] sm:$0xff] }
  0x8e   :  { %342 = vmatpush1.msra.mxu0 %v255_v27  ;;  %503 = vmatpush1.msra.mxu1 %v257_v28  ;;  %v231_v43 = vld [vmem:[%s6645_s28 + $0xf0] sm:$0xff]  ;;  %v233_v44 = vld [vmem:[%s6645_s28 + $0x100] sm:$0xff]  ;;  %v226_v45 = vld [vmem:[%s6645_s28 + $0xc8] sm:$0xff] }
  0x8f   :  { %343 = vmatprep.subr.mxu0 %v250_v29  ;;  %504 = vmatprep.subr.mxu1 %v252_v30  ;;  %v228_v46 = vld [vmem:[%s6645_s28 + $0xd8] sm:$0xff]  ;;  %v225_v47 = vld [vmem:[%s6645_s28 + $0xc0] sm:$0xff]  ;;  %v227_v48 = vld [vmem:[%s6645_s28 + $0xd0] sm:$0xff] }
  0x90   :  { %344 = vmatpush1.msra.mxu0 %v249_v31  ;;  %505 = vmatpush1.msra.mxu1 %v251_v32  ;;  %v220_v49 = vld [vmem:[%s6645_s28 + $0x98] sm:$0xff]  ;;  %v222_v50 = vld [vmem:[%s6645_s28 + $0xa8] sm:$0xff]  ;;  %v219_v51 = vld [vmem:[%s6645_s28 + $0x90] sm:$0xff] }
  0x91   :  { %345 = vmatprep.subr.mxu0 %v244_v33  ;;  %506 = vmatprep.subr.mxu1 %v246_v34  ;;  %v221_v52 = vld [vmem:[%s6645_s28 + $0xa0] sm:$0xff]  ;;  %v214_v53 = vld [vmem:[%s6645_s28 + $0x68] sm:$0xff]  ;;  %v216_v54 = vld [vmem:[%s6645_s28 + $0x78] sm:$0xff] }
  0x92   :  { %346 = vmatpush1.msra.mxu0 %v243_v35  ;;  %507 = vmatpush1.msra.mxu1 %v245_v36  ;;  %v213_v55 = vld [vmem:[%s6645_s28 + $0x60] sm:$0xff]  ;;  %v215_v56 = vld [vmem:[%s6645_s28 + $0x70] sm:$0xff]  ;;  %v208_v57 = vld [vmem:[%s6645_s28 + $0x38] sm:$0xff] }
  0x93   :  { %347 = vmatprep.subr.mxu0 %v238_v37  ;;  %508 = vmatprep.subr.mxu1 %v240_v38  ;;  %v210_v58 = vld [vmem:[%s6645_s28 + $0x48] sm:$0xff]  ;;  %v207_v59 = vld [vmem:[%s6645_s28 + $0x30] sm:$0xff]  ;;  %v209_v60 = vld [vmem:[%s6645_s28 + $0x40] sm:$0xff] }
  0x94   :  { %348 = vmatpush1.msra.mxu0 %v237_v39  ;;  %509 = vmatpush1.msra.mxu1 %v239_v40  ;;  %v202_v61 = vld [vmem:[%s6645_s28 + $0x8] sm:$0xff]  ;;  %v204_v62 = vld [vmem:[%s6645_s28 + $0x18] sm:$0xff]  ;;  %v201_v63 = vld [vmem:[%s6645_s28] sm:$0xff] }
  0x95   :  { %349 = vmatprep.subr.mxu0 %v232_v41  ;;  %510 = vmatprep.subr.mxu1 %v234_v42  ;;  %v203_v1 = vld [vmem:[%s6645_s28 + $0x10] sm:$0xff]  ;;  %v5304_v2 = vld [vmem:[%s6646_s26] sm:$0xff]  ;;  %v296_v4 = vld [vmem:[%s6645_s28 + $0x2f8] sm:$0xff] }
  0x96   :  { %350 = vmatpush1.msra.mxu0 %v231_v43  ;;  %511 = vmatpush1.msra.mxu1 %v233_v44  ;;  %v4429_v3 = vld [vmem:[%s6647_s29 + $0x154] ss:$24 sps:$4 sm:$0xff]   ;;  %v4427_v5 = vld [vmem:[%s6647_s29 + $0x150] ss:$24 sps:$4 sm:$0xff]   ;;  %v289_v9 = vld [vmem:[%s6645_s28 + $0x2c0] sm:$0xff] }
  0x97   :  { %351 = vmatprep.subr.mxu0 %v226_v45  ;;  %512 = vmatprep.subr.mxu1 %v228_v46  ;;  %v295_v6 = vld [vmem:[%s6645_s28 + $0x2f0] sm:$0xff]  ;;  %v5323_v7 = vld [vmem:[%s6646_s26 + $0x8] sm:$0xff]  ;;  %v4432_v10 = vld [vmem:[%s6647_s29 + $0x124] ss:$24 sps:$4 sm:$0xff]  }
  0x98   :  { %352 = vmatpush1.msra.mxu0 %v225_v47  ;;  %513 = vmatpush1.msra.mxu1 %v227_v48  ;;  %v290_v8 = vld [vmem:[%s6645_s28 + $0x2c8] sm:$0xff]  ;;  %v284_v11 = vld [vmem:[%s6645_s28 + $0x298] sm:$0xff]  ;;  %v5345_v12 = vld [vmem:[%s6646_s26 + $0x10] sm:$0xff] }
  0x99   :  { %353 = vmatprep.subr.mxu0 %v220_v49  ;;  %514 = vmatprep.subr.mxu1 %v222_v50  ;;  %v4430_v13 = vld [vmem:[%s6647_s29 + $0x120] ss:$24 sps:$4 sm:$0xff]   ;;  %v283_v14 = vld [vmem:[%s6645_s28 + $0x290] sm:$0xff]  ;;  %v278_v16 = vld [vmem:[%s6645_s28 + $0x268] sm:$0xff] }
  0x9a   :  { %354 = vmatpush1.msra.mxu0 %v219_v51  ;;  %515 = vmatpush1.msra.mxu1 %v221_v52  ;;  %v4435_v15 = vld [vmem:[%s6647_s29 + $0xf4] ss:$24 sps:$4 sm:$0xff]   ;;  %v5365_v17 = vld [vmem:[%s6646_s26 + $0x18] sm:$0xff]  ;;  %v277_v18 = vld [vmem:[%s6645_s28 + $0x260] sm:$0xff] }
  0x9b   :  { %355 = vmatprep.subr.mxu0 %v214_v53  ;;  %516 = vmatprep.subr.mxu1 %v216_v54  ;;  %v272_v19 = vld [vmem:[%s6645_s28 + $0x238] sm:$0xff]  ;;  %v4433_v20 = vld [vmem:[%s6647_s29 + $0xf0] ss:$24 sps:$4 sm:$0xff]   ;;  %v5387_v22 = vld [vmem:[%s6646_s26 + $0x20] sm:$0xff] }
  0x9c   :  { %356 = vmatpush1.msra.mxu0 %v213_v55  ;;  %517 = vmatpush1.msra.mxu1 %v215_v56  ;;  %v271_v21 = vld [vmem:[%s6645_s28 + $0x230] sm:$0xff]  ;;  %v266_v23 = vld [vmem:[%s6645_s28 + $0x208] sm:$0xff]  ;;  %v4438_v24 = vld [vmem:[%s6647_s29 + $0xc4] ss:$24 sps:$4 sm:$0xff]  }
  0x9d   :  { %357 = vmatprep.subr.mxu0 %v208_v57  ;;  %518 = vmatprep.subr.mxu1 %v210_v58  ;;  %v4436_v25 = vld [vmem:[%s6647_s29 + $0xc0] ss:$24 sps:$4 sm:$0xff]   ;;  %v5409_v27 = vld [vmem:[%s6646_s26 + $0x28] sm:$0xff]  ;;  %v259_v31 = vld [vmem:[%s6645_s28 + $0x1d0] sm:$0xff] }
  0x9e   :  { %358 = vmatpush1.msra.mxu0 %v207_v59  ;;  %519 = vmatpush1.msra.mxu1 %v209_v60  ;;  %v265_v26 = vld [vmem:[%s6645_s28 + $0x200] sm:$0xff]  ;;  %v260_v28 = vld [vmem:[%s6645_s28 + $0x1d8] sm:$0xff]  ;;  %v4441_v29 = vld [vmem:[%s6647_s29 + $0x94] ss:$24 sps:$4 sm:$0xff]  }
  0x9f   :  { %359 = vmatprep.subr.mxu0 %v202_v61  ;;  %520 = vmatprep.subr.mxu1 %v204_v62  ;;  %v4439_v30 = vld [vmem:[%s6647_s29 + $0x90] ss:$24 sps:$4 sm:$0xff]   ;;  %v4444_v34 = vld [vmem:[%s6647_s29 + $0x64] ss:$24 sps:$4 sm:$0xff]   ;;  %v4442_v35 = vld [vmem:[%s6647_s29 + $0x60] ss:$24 sps:$4 sm:$0xff]  }
  0xa0   :  { %360 = vmatpush1.msra.mxu0 %v201_v63  ;;  %521 = vmatpush1.msra.mxu1 %v203_v1  ;;  %v5430_v32 = vld [vmem:[%s6646_s26 + $0x30] sm:$0xff]  ;;  %v254_v33 = vld [vmem:[%s6645_s28 + $0x1a8] sm:$0xff]  ;;  %v253_v36 = vld [vmem:[%s6645_s28 + $0x1a0] sm:$0xff] }
  0xa1   :  { %394 = vmatmul.mubr.f32.vlgmr.msra.gmra.mxu0 %v5304_v2  ;;  %555 = vmatmul.mubr.f32.vlgmr.msra.gmra.mxu1 %v5304_v2  ;;  %v5451_v37 = vld [vmem:[%s6646_s26 + $0x38] sm:$0xff]  ;;  %v4447_v39 = vld [vmem:[%s6647_s29 + $0x34] ss:$24 sps:$4 sm:$0xff]   ;;  %v4445_v40 = vld [vmem:[%s6647_s29 + $0x30] ss:$24 sps:$4 sm:$0xff]  }
  0xa2   :  { %651 = vmatprep.subr.mxu0 %v296_v4  ;;  %1204 = vmatprep.subr.bf16.mxu1 %v4429_v3  ;;  %v248_v38 = vld [vmem:[%s6645_s28 + $0x178] sm:$0xff]  ;;  %v247_v41 = vld [vmem:[%s6645_s28 + $0x170] sm:$0xff]  ;;  %v5472_v42 = vld [vmem:[%s6646_s26 + $0x40] sm:$0xff] }
  0xa3   :  { %652 = vmatpush1.msra.mxu0 %v295_v6  ;;  %1205 = vmatpush1.bf16.msra.mxu1 %v4427_v5  ;;  %v242_v43 = vld [vmem:[%s6645_s28 + $0x148] sm:$0xff]  ;;  %v4450_v44 = vld [vmem:[%s6647_s29 + $0x4] ss:$24 sps:$4 sm:$0xff]   ;;  %v4448_v45 = vld [vmem:[%s6647_s29] ss:$24 sps:$4 sm:$0xff]   ;;  %v5593_v6 = vpack.c.bf16 %v5323_v7, %v5304_v2 }
  0xa4   :  { %399 = vmatprep.mubr.f32.mxu0 %v4948_v0  ;;  %560 = vmatprep.mubr.f32.mxu1 %v4948_v0  ;;  %v241_v46 = vld [vmem:[%s6645_s28 + $0x140] sm:$0xff]  ;;  %v5493_v47 = vld [vmem:[%s6646_s26 + $0x48] sm:$0xff]  ;;  %v236_v49 = vld [vmem:[%s6645_s28 + $0x118] sm:$0xff] }
  0xa5   :  { %400 = vmatmul.mubr.f32.gmra.mxu0 %v5323_v7  ;;  %561 = vmatmul.mubr.f32.gmra.mxu1 %v5323_v7  ;;  %v4456_v48 = vld [vmem:[%s6647_s29 + $0x164] ss:$24 sps:$4 sm:$0xff]   ;;  %v235_v50 = vld [vmem:[%s6645_s28 + $0x110] sm:$0xff]  ;;  %v230_v52 = vld [vmem:[%s6645_s28 + $0xe8] sm:$0xff] }
  0xa6   :  { %653 = vmatprep.subr.mxu0 %v290_v8  ;;  %405 = vmatprep.mubr.f32.mxu0 %v4948_v0  ;;  %v5511_v51 = vld [vmem:[%s6646_s26 + $0x50] sm:$0xff]  ;;  %v229_v53 = vld [vmem:[%s6645_s28 + $0xe0] sm:$0xff]  ;;  %v5526_v54 = vld [vmem:[%s6646_s26 + $0x58] sm:$0xff]  ;;  %v4949_v8 = vmov 0  }
  0xa7   :  { %654 = vmatpush1.msra.mxu0 %v289_v9  ;;  %566 = vmatprep.mubr.f32.mxu1 %v4948_v0  ;;  %v224_v55 = vld [vmem:[%s6645_s28 + $0xb8] sm:$0xff]  ;;  %v223_v56 = vld [vmem:[%s6645_s28 + $0xb0] sm:$0xff]  ;;  %v5541_v57 = vld [vmem:[%s6646_s26 + $0x60] sm:$0xff] }
  0xa8   :  { %655 = vmatprep.subr.mxu0 %v284_v11  ;;  %1206 = vmatprep.subr.bf16.mxu1 %v4432_v10  ;;  %v218_v58 = vld [vmem:[%s6645_s28 + $0x88] sm:$0xff]  ;;  %v217_v59 = vld [vmem:[%s6645_s28 + $0x80] sm:$0xff]  ;;  %v212_v61 = vld [vmem:[%s6645_s28 + $0x58] sm:$0xff] }
  0xa9   :  { %406 = vmatmul.mubr.f32.gmra.mxu0 %v5345_v12  ;;  %567 = vmatmul.mubr.f32.gmra.mxu1 %v5345_v12  ;;  %v5556_v60 = vld [vmem:[%s6646_s26 + $0x68] sm:$0xff]  ;;  %v211_v62 = vld [vmem:[%s6645_s28 + $0x50] sm:$0xff]  ;;  %v205_v3 = vld [vmem:[%s6645_s28 + $0x20] sm:$0xff] }
  0xaa   :  { %656 = vmatpush1.msra.mxu0 %v283_v14  ;;  %1207 = vmatpush1.bf16.msra.mxu1 %v4430_v13  ;;  %v5571_v63 = vld [vmem:[%s6646_s26 + $0x70] sm:$0xff]  ;;  %v206_v1 = vld [vmem:[%s6645_s28 + $0x28] sm:$0xff]  ;;  %v5586_v4 = vld [vmem:[%s6646_s26 + $0x78] sm:$0xff] }
  0xab   :  { %411 = vmatprep.mubr.f32.mxu0 %v4948_v0  ;;  %572 = vmatprep.mubr.f32.mxu1 %v4948_v0  ;;  %v4453_v5 = vld [vmem:[%s6647_s29 + $0x15c] ss:$24 sps:$4 sm:$0xff]   ;;  %v4451_v9 = vld [vmem:[%s6647_s29 + $0x158] ss:$24 sps:$4 sm:$0xff]   ;;  %v4459_v11 = vld [vmem:[%s6647_s29 + $0x12c] ss:$24 sps:$4 sm:$0xff]  }
  0xac   :  { %657 = vmatprep.subr.mxu0 %v278_v16  ;;  %1208 = vmatprep.subr.bf16.mxu1 %v4435_v15  ;;  %v4454_v10 = vld [vmem:[%s6647_s29 + $0x160] ss:$24 sps:$4 sm:$0xff]   ;;  %v4462_v13 = vld [vmem:[%s6647_s29 + $0x134] ss:$24 sps:$4 sm:$0xff]   ;;  %v4460_v15 = vld [vmem:[%s6647_s29 + $0x130] ss:$24 sps:$4 sm:$0xff]  }
  0xad   :  { %412 = vmatmul.mubr.f32.gmra.mxu0 %v5365_v17  ;;  %573 = vmatmul.mubr.f32.gmra.mxu1 %v5365_v17  ;;  %v4457_v14 = vld [vmem:[%s6647_s29 + $0x128] ss:$24 sps:$4 sm:$0xff]   ;;  %v4468_v16 = vld [vmem:[%s6647_s29 + $0x104] ss:$24 sps:$4 sm:$0xff]  }
  0xae   :  { %658 = vmatpush1.msra.mxu0 %v277_v18  ;;  %417 = vmatprep.mubr.f32.mxu0 %v4948_v0  ;;  %v5630_v18 = vpack.c.bf16 %v5365_v17, %v5345_v12 }
  0xaf   :  { %578 = vmatprep.mubr.f32.mxu1 %v4948_v0  ;;  %659 = vmatprep.subr.mxu0 %v272_v19  ;;  %v4463_v19 = vld [vmem:[%s6647_s29 + $0xf8] ss:$24 sps:$4 sm:$0xff]  }
  0xb0   :  { %660 = vmatpush1.msra.mxu0 %v271_v21  ;;  %1209 = vmatpush1.bf16.msra.mxu1 %v4433_v20  ;;  %v4466_v20 = vld [vmem:[%s6647_s29 + $0x100] ss:$24 sps:$4 sm:$0xff]   ;;  %v4474_v21 = vld [vmem:[%s6647_s29 + $0xd4] ss:$24 sps:$4 sm:$0xff]  }
  0xb1   :  { %418 = vmatmul.mubr.f32.gmra.mxu0 %v5387_v22  ;;  %579 = vmatmul.mubr.f32.gmra.mxu1 %v5387_v22 }
  0xb2   :  { %423 = vmatprep.mubr.f32.mxu0 %v4948_v0  ;;  %584 = vmatprep.mubr.f32.mxu1 %v4948_v0 }
  0xb3   :  { %661 = vmatprep.subr.mxu0 %v266_v23  ;;  %1210 = vmatprep.subr.bf16.mxu1 %v4438_v24  ;;  %v4469_v23 = vld [vmem:[%s6647_s29 + $0xc8] ss:$24 sps:$4 sm:$0xff]  }
  0xb4   :  { %662 = vmatpush1.msra.mxu0 %v265_v26  ;;  %1211 = vmatpush1.bf16.msra.mxu1 %v4436_v25  ;;  %v4472_v24 = vld [vmem:[%s6647_s29 + $0xd0] ss:$24 sps:$4 sm:$0xff]   ;;  %v4480_v25 = vld [vmem:[%s6647_s29 + $0xa4] ss:$24 sps:$4 sm:$0xff]   ;;  %v5664_v26 = vpack.c.bf16 %v5409_v27, %v5387_v22 }
  0xb5   :  { %424 = vmatmul.mubr.f32.gmra.mxu0 %v5409_v27  ;;  %585 = vmatmul.mubr.f32.gmra.mxu1 %v5409_v27 }
  0xb6   :  { %429 = vmatprep.mubr.f32.mxu0 %v4948_v0  ;;  %590 = vmatprep.mubr.f32.mxu1 %v4948_v0 }
  0xb7   :  { %663 = vmatprep.subr.mxu0 %v260_v28  ;;  %1212 = vmatprep.subr.bf16.mxu1 %v4441_v29  ;;  %v4475_v28 = vld [vmem:[%s6647_s29 + $0x98] ss:$24 sps:$4 sm:$0xff]  }
  0xb8   :  { %664 = vmatpush1.msra.mxu0 %v259_v31  ;;  %1213 = vmatpush1.bf16.msra.mxu1 %v4439_v30  ;;  %v4478_v29 = vld [vmem:[%s6647_s29 + $0xa0] ss:$24 sps:$4 sm:$0xff]   ;;  %v4486_v30 = vld [vmem:[%s6647_s29 + $0x74] ss:$24 sps:$4 sm:$0xff]  }
  0xb9   :  { %430 = vmatmul.mubr.f32.gmra.mxu0 %v5430_v32  ;;  %591 = vmatmul.mubr.f32.gmra.mxu1 %v5430_v32  ;;  %v4481_v31 = vld [vmem:[%s6647_s29 + $0x68] ss:$24 sps:$4 sm:$0xff]  }
  0xba   :  { %435 = vmatprep.mubr.f32.mxu0 %v4948_v0  ;;  %596 = vmatprep.mubr.f32.mxu1 %v4948_v0 }
  0xbb   :  { %665 = vmatprep.subr.mxu0 %v254_v33  ;;  %1214 = vmatprep.subr.bf16.mxu1 %v4444_v34  ;;  %v4484_v33 = vld [vmem:[%s6647_s29 + $0x70] ss:$24 sps:$4 sm:$0xff]   ;;  %v4492_v34 = vld [vmem:[%s6647_s29 + $0x44] ss:$24 sps:$4 sm:$0xff]  }
  0xbc   :  { %666 = vmatpush1.msra.mxu0 %v253_v36  ;;  %1215 = vmatpush1.bf16.msra.mxu1 %v4442_v35  ;;  %v5698_v35 = vpack.c.bf16 %v5451_v37, %v5430_v32  ;;  %v4487_v36 = vld [vmem:[%s6647_s29 + $0x38] ss:$24 sps:$4 sm:$0xff]  }
  0xbd   :  { %436 = vmatmul.mubr.f32.gmra.mxu0 %v5451_v37  ;;  %597 = vmatmul.mubr.f32.gmra.mxu1 %v5451_v37 }
  0xbe   :  { %441 = vmatprep.mubr.f32.mxu0 %v4948_v0  ;;  %602 = vmatprep.mubr.f32.mxu1 %v4948_v0 }
  0xbf   :  { %667 = vmatprep.subr.mxu0 %v248_v38  ;;  %1216 = vmatprep.subr.bf16.mxu1 %v4447_v39  ;;  %v4490_v38 = vld [vmem:[%s6647_s29 + $0x40] ss:$24 sps:$4 sm:$0xff]   ;;  %v4498_v39 = vld [vmem:[%s6647_s29 + $0x14] ss:$24 sps:$4 sm:$0xff]  }
  0xc0   :  { %668 = vmatpush1.msra.mxu0 %v247_v41  ;;  %1217 = vmatpush1.bf16.msra.mxu1 %v4445_v40  ;;  %v4493_v40 = vld [vmem:[%s6647_s29 + $0x8] ss:$24 sps:$4 sm:$0xff]  }
  0xc1   :  { %442 = vmatmul.mubr.f32.gmra.mxu0 %v5472_v42  ;;  %603 = vmatmul.mubr.f32.gmra.mxu1 %v5472_v42  ;;  %v4496_v41 = vld [vmem:[%s6647_s29 + $0x10] ss:$24 sps:$4 sm:$0xff]  }
  0xc2   :  { %447 = vmatprep.mubr.f32.mxu0 %v4948_v0  ;;  %608 = vmatprep.mubr.f32.mxu1 %v4948_v0 }
  0xc3   :  { %669 = vmatprep.subr.mxu0 %v242_v43  ;;  %1218 = vmatprep.subr.bf16.mxu1 %v4450_v44  ;;  %v913_v43 = vpack.c.bf16 %v5526_v54, %v5511_v51  ;;  %v299_v44 = vlaneseq }
  0xc4   :  { %670 = vmatpush1.msra.mxu0 %v241_v46  ;;  %1219 = vmatpush1.bf16.msra.mxu1 %v4448_v45 }
  0xc5   :  { %448 = vmatmul.mubr.f32.gmra.mxu0 %v5493_v47  ;;  %609 = vmatmul.mubr.f32.gmra.mxu1 %v5493_v47  ;;  %v5775_v45 = vshrl.u32 %v299_v44, 7 }
  0xc6   :  { %453 = vmatprep.mubr.f32.mxu0 %v4948_v0  ;;  %614 = vmatprep.mubr.f32.mxu1 %v4948_v0 }
  0xc7   :  { %671 = vmatprep.subr.mxu0 %v236_v49  ;;  %1430 = vmatprep.subr.bf16.mxu1 %v4456_v48  ;;  %v5778_v46 = vsub.s32 0, %v5775_v45  ;;  %v5786_v48 = vld [vmem:[%s6648_s6] sm:$0x3f]  ;;  %v5789_v49 = vsub.s32 1, %v5775_v45 }
  0xc8   :  { %672 = vmatpush1.msra.mxu0 %v235_v50  ;;  %v313_v50 = vsub.s32 3, %v5775_v45 }
  0xc9   :  { %454 = vmatmul.mubr.f32.gmra.mxu0 %v5511_v51  ;;  %615 = vmatmul.mubr.f32.gmra.mxu1 %v5511_v51 }
  0xca   :  { %459 = vmatprep.mubr.f32.mxu0 %v4948_v0  ;;  %620 = vmatprep.mubr.f32.mxu1 %v4948_v0 }
  0xcb   :  { %673 = vmatprep.subr.mxu0 %v230_v52 }
  0xcc   :  { %674 = vmatpush1.msra.mxu0 %v229_v53  ;;  %v5802_v53 = vrot.slane %v5786_v48, %v5789_v49 }
  0xcd   :  { %460 = vmatmul.mubr.f32.gmra.mxu0 %v5526_v54  ;;  %621 = vmatmul.mubr.f32.gmra.mxu1 %v5526_v54 }
  0xce   :  { %465 = vmatprep.mubr.f32.mxu0 %v4948_v0  ;;  %626 = vmatprep.mubr.f32.mxu1 %v4948_v0 }
  0xcf   :  { %675 = vmatprep.subr.mxu0 %v224_v55 }
  0xd0   :  { %676 = vmatpush1.msra.mxu0 %v223_v56 }
  0xd1   :  { %466 = vmatmul.mubr.f32.gmra.mxu0 %v5541_v57  ;;  %627 = vmatmul.mubr.f32.gmra.mxu1 %v5541_v57 }
  0xd2   :  { %471 = vmatprep.mubr.f32.mxu0 %v4948_v0  ;;  %632 = vmatprep.mubr.f32.mxu1 %v4948_v0 }
  0xd3   :  { %677 = vmatprep.subr.mxu0 %v218_v58 }
  0xd4   :  { %678 = vmatpush1.msra.mxu0 %v217_v59 }
  0xd5   :  { %472 = vmatmul.mubr.f32.gmra.mxu0 %v5556_v60  ;;  %633 = vmatmul.mubr.f32.gmra.mxu1 %v5556_v60 }
  0xd6   :  { %477 = vmatprep.mubr.f32.mxu0 %v4948_v0  ;;  %638 = vmatprep.mubr.f32.mxu1 %v4948_v0 }
  0xd7   :  { %679 = vmatprep.subr.mxu0 %v212_v61 }
  0xd8   :  { %680 = vmatpush1.msra.mxu0 %v211_v62 }
  0xd9   :  { %478 = vmatmul.mubr.f32.gmra.mxu0 %v5571_v63  ;;  %639 = vmatmul.mubr.f32.gmra.mxu1 %v5571_v63 }
  0xda   :  { %483 = vmatprep.mubr.f32.mxu0 %v4948_v0  ;;  %644 = vmatprep.mubr.f32.mxu1 %v4948_v0 }
  0xdb   :  { %681 = vmatprep.subr.mxu0 %v206_v1 }
  0xdc   :  { %682 = vmatpush1.msra.mxu0 %v205_v3 }
  0xdd   :  { %484 = vmatmul.mubr.f32.gmra.mxu0 %v5586_v4  ;;  %645 = vmatmul.mubr.f32.gmra.mxu1 %v5586_v4 }
  0xde   :  { %715 = vmatprep.mubr.f32.mxu0 %v4948_v0  ;;  %1236 = vmatprep.mubr.bf16.mxu1 %v4949_v8 }
  0xdf   :  { %1317 = vmatprep.subr.bf16.mxu0 %v4453_v5 }
  0xe1   :  { %716 = vmatmul.mubr.f32.vlgmr.msra.gmra.mxu0 %v5304_v2  ;;  %1237 = vmatmul.mubr.bf16.vlgmr.msra.gmra.mxu1 %v5593_v6  ;;  %v4465_v2 = vld [vmem:[%s6647_s29 + $0xfc] ss:$24 sps:$4 sm:$0xff]  }
  0xe2   :  { %1318 = vmatpush1.bf16.msra.mxu0 %v4451_v9  ;;  %1431 = vmatpush1.bf16.msra.mxu1 %v4454_v10 }
  0xe3   :  { %721 = vmatprep.mubr.f32.mxu0 %v4948_v0  ;;  %1246 = vmatprep.mubr.bf16.mxu1 %v4949_v8 }
  0xe4   :  { %1319 = vmatprep.subr.bf16.mxu0 %v4459_v11  ;;  %1432 = vmatprep.subr.bf16.mxu1 %v4462_v13 }
  0xe5   :  { %722 = vmatmul.mubr.f32.gmra.mxu0 %v5323_v7  ;;  %v4471_v7 = vld [vmem:[%s6647_s29 + $0xcc] ss:$24 sps:$4 sm:$0xff]  }
  0xe6   :  { %727 = vmatprep.mubr.f32.mxu0 %v4948_v0  ;;  %1320 = vmatpush1.bf16.msra.mxu0 %v4457_v14 }
  0xe7   :  { %1433 = vmatpush1.bf16.msra.mxu1 %v4460_v15  ;;  %1321 = vmatprep.subr.bf16.mxu0 %v4465_v2 }
  0xe8   :  { %1434 = vmatprep.subr.bf16.mxu1 %v4468_v16 }
  0xe9   :  { %728 = vmatmul.mubr.f32.gmra.mxu0 %v5345_v12  ;;  %1247 = vmatmul.mubr.bf16.gmra.mxu1 %v5630_v18  ;;  %v4477_v12 = vld [vmem:[%s6647_s29 + $0x9c] ss:$24 sps:$4 sm:$0xff]  }
  0xea   :  { %733 = vmatprep.mubr.f32.mxu0 %v4948_v0  ;;  %1256 = vmatprep.mubr.bf16.mxu1 %v4949_v8 }
  0xeb   :  { %1322 = vmatpush1.bf16.msra.mxu0 %v4463_v19  ;;  %1435 = vmatpush1.bf16.msra.mxu1 %v4466_v20 }
  0xec   :  { %1323 = vmatprep.subr.bf16.mxu0 %v4471_v7  ;;  %1436 = vmatprep.subr.bf16.mxu1 %v4474_v21 }
  0xed   :  { %734 = vmatmul.mubr.f32.gmra.mxu0 %v5365_v17  ;;  %v4483_v17 = vld [vmem:[%s6647_s29 + $0x6c] ss:$24 sps:$4 sm:$0xff]  }
  0xee   :  { %739 = vmatprep.mubr.f32.mxu0 %v4948_v0 }
  0xef   :  { %1324 = vmatpush1.bf16.msra.mxu0 %v4469_v23  ;;  %1437 = vmatpush1.bf16.msra.mxu1 %v4472_v24 }
  0xf0   :  { %1325 = vmatprep.subr.bf16.mxu0 %v4477_v12  ;;  %1438 = vmatprep.subr.bf16.mxu1 %v4480_v25 }
  0xf1   :  { %740 = vmatmul.mubr.f32.gmra.mxu0 %v5387_v22  ;;  %1257 = vmatmul.mubr.bf16.gmra.mxu1 %v5664_v26  ;;  %v4489_v22 = vld [vmem:[%s6647_s29 + $0x3c] ss:$24 sps:$4 sm:$0xff]  }
  0xf2   :  { %745 = vmatprep.mubr.f32.mxu0 %v4948_v0  ;;  %1266 = vmatprep.mubr.bf16.mxu1 %v4949_v8 }
  0xf3   :  { %1326 = vmatpush1.bf16.msra.mxu0 %v4475_v28  ;;  %1439 = vmatpush1.bf16.msra.mxu1 %v4478_v29 }
  0xf4   :  { %1327 = vmatprep.subr.bf16.mxu0 %v4483_v17  ;;  %1440 = vmatprep.subr.bf16.mxu1 %v4486_v30 }
  0xf5   :  { %746 = vmatmul.mubr.f32.gmra.mxu0 %v5409_v27  ;;  %v4495_v27 = vld [vmem:[%s6647_s29 + $0xc] ss:$24 sps:$4 sm:$0xff]  }
  0xf6   :  { %751 = vmatprep.mubr.f32.mxu0 %v4948_v0 }
  0xf7   :  { %1328 = vmatpush1.bf16.msra.mxu0 %v4481_v31  ;;  %1441 = vmatpush1.bf16.msra.mxu1 %v4484_v33 }
  0xf8   :  { %1329 = vmatprep.subr.bf16.mxu0 %v4489_v22  ;;  %1442 = vmatprep.subr.bf16.mxu1 %v4492_v34 }
  0xf9   :  { %752 = vmatmul.mubr.f32.gmra.mxu0 %v5430_v32  ;;  %1267 = vmatmul.mubr.bf16.gmra.mxu1 %v5698_v35  ;;  %v912_v32 = vpack.c.bf16 %v5493_v47, %v5472_v42 }
  0xfa   :  { %757 = vmatprep.mubr.f32.mxu0 %v4948_v0  ;;  %1276 = vmatprep.mubr.bf16.mxu1 %v4949_v8 }
  0xfb   :  { %1330 = vmatpush1.bf16.msra.mxu0 %v4487_v36  ;;  %1443 = vmatpush1.bf16.msra.mxu1 %v4490_v38 }
  0xfc   :  { %1331 = vmatprep.subr.bf16.mxu0 %v4495_v27  ;;  %1444 = vmatprep.subr.bf16.mxu1 %v4498_v39 }
  0xfd   :  { %758 = vmatmul.mubr.f32.gmra.mxu0 %v5451_v37  ;;  %v914_v37 = vpack.c.bf16 %v5556_v60, %v5541_v57 }
  0xfe   :  { %763 = vmatprep.mubr.f32.mxu0 %v4948_v0 }
  0xff   :  { %1332 = vmatpush1.bf16.msra.mxu0 %v4493_v40  ;;  %1445 = vmatpush1.bf16.msra.mxu1 %v4496_v41 }
 0x101   :  { %764 = vmatmul.mubr.f32.gmra.mxu0 %v5472_v42  ;;  %1277 = vmatmul.mubr.bf16.gmra.mxu1 %v912_v32  ;;  %v915_v42 = vpack.c.bf16 %v5586_v4, %v5571_v63 }
 0x102   :  { %769 = vmatprep.mubr.f32.mxu0 %v4948_v0  ;;  %1286 = vmatprep.mubr.bf16.mxu1 %v4949_v8 }
 0x105   :  { %770 = vmatmul.mubr.f32.gmra.mxu0 %v5493_v47  ;;  %v5781_v47 = vsub.s32 2, %v5775_v45 }
 0x106   :  { %775 = vmatprep.mubr.f32.mxu0 %v4948_v0 }
 0x107   :  { %v5798_v52 = vrot.slane %v5786_v48, %v5781_v47 }
 0x109   :  { %776 = vmatmul.mubr.f32.gmra.mxu0 %v5511_v51  ;;  %1287 = vmatmul.mubr.bf16.gmra.mxu1 %v913_v43  ;;  %v5794_v51 = vrot.slane %v5786_v48, %v5778_v46 }
 0x10a   :  { %781 = vmatprep.mubr.f32.mxu0 %v4948_v0  ;;  %1296 = vmatprep.mubr.bf16.mxu1 %v4949_v8 }
 0x10d   :  { %782 = vmatmul.mubr.f32.gmra.mxu0 %v5526_v54  ;;  %v5805_v54 = vrot.slane %v5786_v48, %v313_v50 }
 0x10e   :  { %787 = vmatprep.mubr.f32.mxu0 %v4948_v0 }
 0x111   :  { %788 = vmatmul.mubr.f32.gmra.mxu0 %v5541_v57  ;;  %1297 = vmatmul.mubr.bf16.gmra.mxu1 %v914_v37 }
 0x112   :  { %793 = vmatprep.mubr.f32.mxu0 %v4948_v0  ;;  %1306 = vmatprep.mubr.bf16.mxu1 %v4949_v8 }
 0x115   :  { %794 = vmatmul.mubr.f32.gmra.mxu0 %v5556_v60 }
 0x116   :  { %799 = vmatprep.mubr.f32.mxu0 %v4948_v0 }
 0x119   :  { %800 = vmatmul.mubr.f32.gmra.mxu0 %v5571_v63  ;;  %1307 = vmatmul.mubr.bf16.gmra.mxu1 %v915_v42 }
 0x11a   :  { %805 = vmatprep.mubr.f32.mxu0 %v4948_v0  ;;  %1462 = vmatprep.mubr.bf16.mxu1 %v4949_v8 }
 0x11d   :  { %806 = vmatmul.mubr.f32.gmra.mxu0 %v5586_v4 }
 0x11e   :  { %1349 = vmatprep.mubr.bf16.mxu0 %v4949_v8 }
 0x121   :  { %1350 = vmatmul.mubr.bf16.vlgmr.msra.gmra.mxu0 %v5593_v6  ;;  %1463 = vmatmul.mubr.bf16.vlgmr.msra.gmra.mxu1 %v5593_v6 }
 0x122   :  { %1359 = vmatprep.mubr.bf16.mxu0 %v4949_v8  ;;  %1472 = vmatprep.mubr.bf16.mxu1 %v4949_v8 }
 0x129   :  { %1360 = vmatmul.mubr.bf16.gmra.mxu0 %v5630_v18  ;;  %1473 = vmatmul.mubr.bf16.gmra.mxu1 %v5630_v18 }
 0x12a   :  { %1369 = vmatprep.mubr.bf16.mxu0 %v4949_v8  ;;  %1482 = vmatprep.mubr.bf16.mxu1 %v4949_v8 }
 0x131   :  { %1370 = vmatmul.mubr.bf16.gmra.mxu0 %v5664_v26  ;;  %1483 = vmatmul.mubr.bf16.gmra.mxu1 %v5664_v26 }
 0x132   :  { %1379 = vmatprep.mubr.bf16.mxu0 %v4949_v8  ;;  %1492 = vmatprep.mubr.bf16.mxu1 %v4949_v8 }
 0x139   :  { %1380 = vmatmul.mubr.bf16.gmra.mxu0 %v5698_v35  ;;  %1493 = vmatmul.mubr.bf16.gmra.mxu1 %v5698_v35 }
 0x13a   :  { %1389 = vmatprep.mubr.bf16.mxu0 %v4949_v8  ;;  %1502 = vmatprep.mubr.bf16.mxu1 %v4949_v8 }
 0x141   :  { %1390 = vmatmul.mubr.bf16.gmra.mxu0 %v912_v32  ;;  %1503 = vmatmul.mubr.bf16.gmra.mxu1 %v912_v32 }
 0x142   :  { %1399 = vmatprep.mubr.bf16.mxu0 %v4949_v8  ;;  %1512 = vmatprep.mubr.bf16.mxu1 %v4949_v8 }
 0x149   :  { %1400 = vmatmul.mubr.bf16.gmra.mxu0 %v913_v43  ;;  %1513 = vmatmul.mubr.bf16.gmra.mxu1 %v913_v43 }
 0x14a   :  { %1409 = vmatprep.mubr.bf16.mxu0 %v4949_v8  ;;  %1522 = vmatprep.mubr.bf16.mxu1 %v4949_v8 }
 0x151   :  { %1410 = vmatmul.mubr.bf16.gmra.mxu0 %v914_v37  ;;  %1523 = vmatmul.mubr.bf16.gmra.mxu1 %v914_v37 }
 0x152   :  { %1419 = vmatprep.mubr.bf16.mxu0 %v4949_v8  ;;  %1532 = vmatprep.mubr.bf16.mxu1 %v4949_v8 }
 0x159   :  { %1420 = vmatmul.mubr.bf16.gmra.mxu0 %v915_v42  ;;  %1533 = vmatmul.mubr.bf16.gmra.mxu1 %v915_v42 }
 0x161   :  { %v395_v55 = vpop.f32.mrf.mxu0  ;;  %v556_v56 = vpop.f32.mrf.mxu1 }
 0x162   :  { %v396_v57 = vadd.f32 %v395_v55, %v5794_v51  ;;  %v557_v58 = vadd.f32 %v556_v56, %v5798_v52 }
 0x163   :  { %v397_v59 = vpop.f32.mrf.mxu0  ;;  %v558_v60 = vpop.f32.mrf.mxu1 }
 0x164   :  { %812 = vst [vmem:[#allocation2] sm:$0xff] %v396_v57  ;;  %814 = vst [vmem:[#allocation2 + $0x10] sm:$0xff] %v557_v58  ;;  %v398_v61 = vadd.f32 %v397_v59, %v5802_v53  ;;  %v559_v62 = vadd.f32 %v558_v60, %v5805_v54 }
 0x165   :  { %v401_v63 = vpop.f32.mrf.mxu0  ;;  %v562_v1 = vpop.f32.mrf.mxu1 }
 0x166   :  { %813 = vst [vmem:[#allocation2 + $0x8] sm:$0xff] %v398_v61  ;;  %815 = vst [vmem:[#allocation2 + $0x18] sm:$0xff] %v559_v62  ;;  %v402_v3 = vadd.f32 %v401_v63, %v5794_v51  ;;  %v563_v4 = vadd.f32 %v562_v1, %v5798_v52 }
 0x167   :  { %v403_v5 = vpop.f32.mrf.mxu0  ;;  %v564_v6 = vpop.f32.mrf.mxu1 }
 0x168   :  { %818 = vst [vmem:[#allocation2 + $0x30] sm:$0xff] %v402_v3  ;;  %820 = vst [vmem:[#allocation2 + $0x40] sm:$0xff] %v563_v4  ;;  %v404_v8 = vadd.f32 %v403_v5, %v5802_v53  ;;  %v565_v9 = vadd.f32 %v564_v6, %v5805_v54 }
 0x169   :  { %v407_v10 = vpop.f32.mrf.mxu0  ;;  %v568_v11 = vpop.f32.mrf.mxu1 }
 0x16a   :  { %819 = vst [vmem:[#allocation2 + $0x38] sm:$0xff] %v404_v8  ;;  %821 = vst [vmem:[#allocation2 + $0x48] sm:$0xff] %v565_v9  ;;  %v408_v13 = vadd.f32 %v407_v10, %v5794_v51  ;;  %v569_v14 = vadd.f32 %v568_v11, %v5798_v52 }
 0x16b   :  { %v409_v15 = vpop.f32.mrf.mxu0  ;;  %v570_v2 = vpop.f32.mrf.mxu1 }
 0x16c   :  { %824 = vst [vmem:[#allocation2 + $0x60] sm:$0xff] %v408_v13  ;;  %826 = vst [vmem:[#allocation2 + $0x70] sm:$0xff] %v569_v14  ;;  %v410_v16 = vadd.f32 %v409_v15, %v5802_v53  ;;  %v571_v18 = vadd.f32 %v570_v2, %v5805_v54 }
 0x16d   :  { %v413_v19 = vpop.f32.mrf.mxu0  ;;  %v574_v20 = vpop.f32.mrf.mxu1 }
 0x16e   :  { %825 = vst [vmem:[#allocation2 + $0x68] sm:$0xff] %v410_v16  ;;  %827 = vst [vmem:[#allocation2 + $0x78] sm:$0xff] %v571_v18  ;;  %v414_v7 = vadd.f32 %v413_v19, %v5794_v51  ;;  %v575_v21 = vadd.f32 %v574_v20, %v5798_v52 }
 0x16f   :  { %v415_v23 = vpop.f32.mrf.mxu0  ;;  %v576_v24 = vpop.f32.mrf.mxu1 }
 0x170   :  { %830 = vst [vmem:[#allocation2 + $0x90] sm:$0xff] %v414_v7  ;;  %832 = vst [vmem:[#allocation2 + $0xa0] sm:$0xff] %v575_v21  ;;  %v416_v12 = vadd.f32 %v415_v23, %v5802_v53  ;;  %v577_v25 = vadd.f32 %v576_v24, %v5805_v54 }
 0x171   :  { %v419_v26 = vpop.f32.mrf.mxu0  ;;  %v580_v28 = vpop.f32.mrf.mxu1 }
 0x172   :  { %831 = vst [vmem:[#allocation2 + $0x98] sm:$0xff] %v416_v12  ;;  %833 = vst [vmem:[#allocation2 + $0xa8] sm:$0xff] %v577_v25  ;;  %v420_v29 = vadd.f32 %v419_v26, %v5794_v51  ;;  %v581_v17 = vadd.f32 %v580_v28, %v5798_v52 }
 0x173   :  { %v421_v30 = vpop.f32.mrf.mxu0  ;;  %v582_v31 = vpop.f32.mrf.mxu1 }
 0x174   :  { %836 = vst [vmem:[#allocation2 + $0xc0] sm:$0xff] %v420_v29  ;;  %838 = vst [vmem:[#allocation2 + $0xd0] sm:$0xff] %v581_v17  ;;  %v422_v33 = vadd.f32 %v421_v30, %v5802_v53  ;;  %v583_v22 = vadd.f32 %v582_v31, %v5805_v54 }
 0x175   :  { %v425_v34 = vpop.f32.mrf.mxu0  ;;  %v586_v35 = vpop.f32.mrf.mxu1 }
 0x176   :  { %837 = vst [vmem:[#allocation2 + $0xc8] sm:$0xff] %v422_v33  ;;  %839 = vst [vmem:[#allocation2 + $0xd8] sm:$0xff] %v583_v22  ;;  %v426_v36 = vadd.f32 %v425_v34, %v5794_v51  ;;  %v587_v38 = vadd.f32 %v586_v35, %v5798_v52 }
 0x177   :  { %v427_v27 = vpop.f32.mrf.mxu0  ;;  %v588_v39 = vpop.f32.mrf.mxu1 }
 0x178   :  { %842 = vst [vmem:[#allocation2 + $0xf0] sm:$0xff] %v426_v36  ;;  %844 = vst [vmem:[#allocation2 + $0x100] sm:$0xff] %v587_v38  ;;  %v428_v40 = vadd.f32 %v427_v27, %v5802_v53  ;;  %v589_v41 = vadd.f32 %v588_v39, %v5805_v54 }
 0x179   :  { %v431_v32 = vpop.f32.mrf.mxu0  ;;  %v592_v43 = vpop.f32.mrf.mxu1 }
 0x17a   :  { %843 = vst [vmem:[#allocation2 + $0xf8] sm:$0xff] %v428_v40  ;;  %845 = vst [vmem:[#allocation2 + $0x108] sm:$0xff] %v589_v41  ;;  %v432_v37 = vadd.f32 %v431_v32, %v5794_v51  ;;  %v593_v42 = vadd.f32 %v592_v43, %v5798_v52 }
 0x17b   :  { %v433_v44 = vpop.f32.mrf.mxu0  ;;  %v594_v50 = vpop.f32.mrf.mxu1 }
 0x17c   :  { %848 = vst [vmem:[#allocation2 + $0x120] sm:$0xff] %v432_v37  ;;  %850 = vst [vmem:[#allocation2 + $0x130] sm:$0xff] %v593_v42  ;;  %v434_v55 = vadd.f32 %v433_v44, %v5802_v53  ;;  %v595_v56 = vadd.f32 %v594_v50, %v5805_v54 }
 0x17d   :  { %v437_v57 = vpop.f32.mrf.mxu0  ;;  %v598_v58 = vpop.f32.mrf.mxu1 }
 0x17e   :  { %849 = vst [vmem:[#allocation2 + $0x128] sm:$0xff] %v434_v55  ;;  %851 = vst [vmem:[#allocation2 + $0x138] sm:$0xff] %v595_v56  ;;  %v438_v59 = vadd.f32 %v437_v57, %v5794_v51  ;;  %v599_v60 = vadd.f32 %v598_v58, %v5798_v52 }
 0x17f   :  { %v439_v61 = vpop.f32.mrf.mxu0  ;;  %v600_v62 = vpop.f32.mrf.mxu1 }
 0x180   :  { %854 = vst [vmem:[#allocation2 + $0x150] sm:$0xff] %v438_v59  ;;  %856 = vst [vmem:[#allocation2 + $0x160] sm:$0xff] %v599_v60  ;;  %v440_v63 = vadd.f32 %v439_v61, %v5802_v53  ;;  %v601_v1 = vadd.f32 %v600_v62, %v5805_v54 }
 0x181   :  { %v443_v3 = vpop.f32.mrf.mxu0  ;;  %v604_v4 = vpop.f32.mrf.mxu1 }
 0x182   :  { %855 = vst [vmem:[#allocation2 + $0x158] sm:$0xff] %v440_v63  ;;  %857 = vst [vmem:[#allocation2 + $0x168] sm:$0xff] %v601_v1  ;;  %v444_v5 = vadd.f32 %v443_v3, %v5794_v51  ;;  %v605_v6 = vadd.f32 %v604_v4, %v5798_v52  ;;  %v317_v63 = vsub.s32 4, %v5775_v45 }
 0x183   :  { %v445_v8 = vpop.f32.mrf.mxu0  ;;  %v606_v9 = vpop.f32.mrf.mxu1 }
 0x184   :  { %860 = vst [vmem:[#allocation2 + $0x180] sm:$0xff] %v444_v5  ;;  %862 = vst [vmem:[#allocation2 + $0x190] sm:$0xff] %v605_v6  ;;  %v446_v10 = vadd.f32 %v445_v8, %v5802_v53  ;;  %v607_v11 = vadd.f32 %v606_v9, %v5805_v54  ;;  %v321_v6 = vsub.s32 5, %v5775_v45 }
 0x185   :  { %v449_v13 = vpop.f32.mrf.mxu0  ;;  %v610_v14 = vpop.f32.mrf.mxu1 }
 0x186   :  { %861 = vst [vmem:[#allocation2 + $0x188] sm:$0xff] %v446_v10  ;;  %863 = vst [vmem:[#allocation2 + $0x198] sm:$0xff] %v607_v11  ;;  %v450_v15 = vadd.f32 %v449_v13, %v5794_v51  ;;  %v611_v2 = vadd.f32 %v610_v14, %v5798_v52  ;;  %v5872_v13 = vrot.slane %v5786_v48, %v317_v63 }
 0x187   :  { %v451_v16 = vpop.f32.mrf.mxu0  ;;  %v612_v18 = vpop.f32.mrf.mxu1  ;;  %v5877_v45 = vrot.slane %v5786_v48, %v321_v6 }
 0x188   :  { %866 = vst [vmem:[#allocation2 + $0x1b0] sm:$0xff] %v450_v15  ;;  %868 = vst [vmem:[#allocation2 + $0x1c0] sm:$0xff] %v611_v2  ;;  %v452_v19 = vadd.f32 %v451_v16, %v5802_v53  ;;  %v613_v20 = vadd.f32 %v612_v18, %v5805_v54 }
 0x189   :  { %v455_v7 = vpop.f32.mrf.mxu0  ;;  %v616_v21 = vpop.f32.mrf.mxu1 }
 0x18a   :  { %867 = vst [vmem:[#allocation2 + $0x1b8] sm:$0xff] %v452_v19  ;;  %869 = vst [vmem:[#allocation2 + $0x1c8] sm:$0xff] %v613_v20  ;;  %v456_v23 = vadd.f32 %v455_v7, %v5794_v51  ;;  %v617_v24 = vadd.f32 %v616_v21, %v5798_v52 }
 0x18b   :  { %v457_v12 = vpop.f32.mrf.mxu0  ;;  %v618_v25 = vpop.f32.mrf.mxu1 }
 0x18c   :  { %872 = vst [vmem:[#allocation2 + $0x1e0] sm:$0xff] %v456_v23  ;;  %874 = vst [vmem:[#allocation2 + $0x1f0] sm:$0xff] %v617_v24  ;;  %v458_v26 = vadd.f32 %v457_v12, %v5802_v53  ;;  %v619_v28 = vadd.f32 %v618_v25, %v5805_v54 }
 0x18d   :  { %v461_v29 = vpop.f32.mrf.mxu0  ;;  %v622_v17 = vpop.f32.mrf.mxu1 }
 0x18e   :  { %873 = vst [vmem:[#allocation2 + $0x1e8] sm:$0xff] %v458_v26  ;;  %875 = vst [vmem:[#allocation2 + $0x1f8] sm:$0xff] %v619_v28  ;;  %v462_v30 = vadd.f32 %v461_v29, %v5794_v51  ;;  %v623_v31 = vadd.f32 %v622_v17, %v5798_v52 }
 0x18f   :  { %v463_v33 = vpop.f32.mrf.mxu0  ;;  %v624_v22 = vpop.f32.mrf.mxu1 }
 0x190   :  { %878 = vst [vmem:[#allocation2 + $0x210] sm:$0xff] %v462_v30  ;;  %880 = vst [vmem:[#allocation2 + $0x220] sm:$0xff] %v623_v31  ;;  %v464_v34 = vadd.f32 %v463_v33, %v5802_v53  ;;  %v625_v35 = vadd.f32 %v624_v22, %v5805_v54 }
 0x191   :  { %v467_v36 = vpop.f32.mrf.mxu0  ;;  %v628_v38 = vpop.f32.mrf.mxu1 }
 0x192   :  { %879 = vst [vmem:[#allocation2 + $0x218] sm:$0xff] %v464_v34  ;;  %881 = vst [vmem:[#allocation2 + $0x228] sm:$0xff] %v625_v35  ;;  %v468_v27 = vadd.f32 %v467_v36, %v5794_v51  ;;  %v629_v39 = vadd.f32 %v628_v38, %v5798_v52 }
 0x193   :  { %v469_v40 = vpop.f32.mrf.mxu0  ;;  %v630_v41 = vpop.f32.mrf.mxu1 }
 0x194   :  { %884 = vst [vmem:[#allocation2 + $0x240] sm:$0xff] %v468_v27  ;;  %886 = vst [vmem:[#allocation2 + $0x250] sm:$0xff] %v629_v39  ;;  %v470_v32 = vadd.f32 %v469_v40, %v5802_v53  ;;  %v631_v43 = vadd.f32 %v630_v41, %v5805_v54 }
 0x195   :  { %v473_v37 = vpop.f32.mrf.mxu0  ;;  %v634_v42 = vpop.f32.mrf.mxu1 }
 0x196   :  { %885 = vst [vmem:[#allocation2 + $0x248] sm:$0xff] %v470_v32  ;;  %887 = vst [vmem:[#allocation2 + $0x258] sm:$0xff] %v631_v43  ;;  %v474_v44 = vadd.f32 %v473_v37, %v5794_v51  ;;  %v635_v50 = vadd.f32 %v634_v42, %v5798_v52 }
 0x197   :  { %v475_v55 = vpop.f32.mrf.mxu0  ;;  %v636_v56 = vpop.f32.mrf.mxu1 }
 0x198   :  { %890 = vst [vmem:[#allocation2 + $0x270] sm:$0xff] %v474_v44  ;;  %892 = vst [vmem:[#allocation2 + $0x280] sm:$0xff] %v635_v50  ;;  %v476_v57 = vadd.f32 %v475_v55, %v5802_v53  ;;  %v637_v58 = vadd.f32 %v636_v56, %v5805_v54 }
 0x199   :  { %v479_v59 = vpop.f32.mrf.mxu0  ;;  %v640_v60 = vpop.f32.mrf.mxu1 }
 0x19a   :  { %891 = vst [vmem:[#allocation2 + $0x278] sm:$0xff] %v476_v57  ;;  %893 = vst [vmem:[#allocation2 + $0x288] sm:$0xff] %v637_v58  ;;  %v480_v61 = vadd.f32 %v479_v59, %v5794_v51  ;;  %v641_v62 = vadd.f32 %v640_v60, %v5798_v52 }
 0x19b   :  { %v481_v1 = vpop.f32.mrf.mxu0  ;;  %v642_v3 = vpop.f32.mrf.mxu1 }
 0x19c   :  { %896 = vst [vmem:[#allocation2 + $0x2a0] sm:$0xff] %v480_v61  ;;  %898 = vst [vmem:[#allocation2 + $0x2b0] sm:$0xff] %v641_v62  ;;  %v482_v4 = vadd.f32 %v481_v1, %v5802_v53  ;;  %v643_v5 = vadd.f32 %v642_v3, %v5805_v54 }
 0x19d   :  { %v485_v8 = vpop.f32.mrf.mxu0  ;;  %v646_v9 = vpop.f32.mrf.mxu1 }
 0x19e   :  { %897 = vst [vmem:[#allocation2 + $0x2a8] sm:$0xff] %v482_v4  ;;  %899 = vst [vmem:[#allocation2 + $0x2b8] sm:$0xff] %v643_v5  ;;  %v486_v10 = vadd.f32 %v485_v8, %v5794_v51  ;;  %v647_v11 = vadd.f32 %v646_v9, %v5798_v52 }
 0x19f   :  { %v487_v14 = vpop.f32.mrf.mxu0  ;;  %v648_v15 = vpop.f32.mrf.mxu1 }
 0x1a0   :  { %902 = vst [vmem:[#allocation2 + $0x2d0] sm:$0xff] %v486_v10  ;;  %904 = vst [vmem:[#allocation2 + $0x2e0] sm:$0xff] %v647_v11  ;;  %v488_v2 = vadd.f32 %v487_v14, %v5802_v53  ;;  %v649_v16 = vadd.f32 %v648_v15, %v5805_v54 }
 0x1a1   :  { %v717_v18 = vpop.f32.mrf.mxu0  ;;  %v1238_v19 = vpop.f32.mrf.mxu1 }
 0x1a2   :  { %903 = vst [vmem:[#allocation2 + $0x2d8] sm:$0xff] %v488_v2  ;;  %905 = vst [vmem:[#allocation2 + $0x2e8] sm:$0xff] %v649_v16  ;;  %v718_v51 = vadd.f32 %v717_v18, %v5872_v13 }
 0x1a3   :  { %1543 = vst [vmem:[#allocation3] sm:$0xff] %v1238_v19  ;;  %v719_v52 = vpop.f32.mrf.mxu0  ;;  %v1240_v20 = vpop.f32.mrf.mxu1 }
 0x1a4   :  { %816 = vst [vmem:[#allocation2 + $0x20] sm:$0xff] %v718_v51  ;;  %v720_v7 = vadd.f32 %v719_v52, %v5877_v45  ;;  %1544 = vst [vmem:[#allocation3 + $0x8] sm:$0xff] %v1240_v20 }
 0x1a5   :  { %v723_v21 = vpop.f32.mrf.mxu0  ;;  %v1242_v53 = vpop.f32.mrf.mxu1 }
 0x1a6   :  { %817 = vst [vmem:[#allocation2 + $0x28] sm:$0xff] %v720_v7  ;;  %v724_v54 = vadd.f32 %v723_v21, %v5872_v13  ;;  %1549 = vst [vmem:[#allocation3 + $0x30] sm:$0xff] %v1242_v53 }
 0x1a7   :  { %v725_v48 = vpop.f32.mrf.mxu0  ;;  %v1244_v23 = vpop.f32.mrf.mxu1 }
 0x1a8   :  { %822 = vst [vmem:[#allocation2 + $0x50] sm:$0xff] %v724_v54  ;;  %v726_v24 = vadd.f32 %v725_v48, %v5877_v45  ;;  %1550 = vst [vmem:[#allocation3 + $0x38] sm:$0xff] %v1244_v23 }
 0x1a9   :  { %v729_v12 = vpop.f32.mrf.mxu0  ;;  %v1248_v25 = vpop.f32.mrf.mxu1 }
 0x1aa   :  { %823 = vst [vmem:[#allocation2 + $0x58] sm:$0xff] %v726_v24  ;;  %v730_v26 = vadd.f32 %v729_v12, %v5872_v13  ;;  %1555 = vst [vmem:[#allocation3 + $0x60] sm:$0xff] %v1248_v25 }
 0x1ab   :  { %v731_v28 = vpop.f32.mrf.mxu0  ;;  %v1250_v29 = vpop.f32.mrf.mxu1 }
 0x1ac   :  { %828 = vst [vmem:[#allocation2 + $0x80] sm:$0xff] %v730_v26  ;;  %v732_v17 = vadd.f32 %v731_v28, %v5877_v45  ;;  %1556 = vst [vmem:[#allocation3 + $0x68] sm:$0xff] %v1250_v29 }
 0x1ad   :  { %v735_v30 = vpop.f32.mrf.mxu0  ;;  %v1252_v31 = vpop.f32.mrf.mxu1 }
 0x1ae   :  { %829 = vst [vmem:[#allocation2 + $0x88] sm:$0xff] %v732_v17  ;;  %v736_v33 = vadd.f32 %v735_v30, %v5872_v13  ;;  %1561 = vst [vmem:[#allocation3 + $0x90] sm:$0xff] %v1252_v31 }
 0x1af   :  { %v737_v22 = vpop.f32.mrf.mxu0  ;;  %v1254_v34 = vpop.f32.mrf.mxu1 }
 0x1b0   :  { %834 = vst [vmem:[#allocation2 + $0xb0] sm:$0xff] %v736_v33  ;;  %v738_v35 = vadd.f32 %v737_v22, %v5877_v45  ;;  %1562 = vst [vmem:[#allocation3 + $0x98] sm:$0xff] %v1254_v34 }
 0x1b1   :  { %v741_v36 = vpop.f32.mrf.mxu0  ;;  %v1258_v38 = vpop.f32.mrf.mxu1 }
 0x1b2   :  { %835 = vst [vmem:[#allocation2 + $0xb8] sm:$0xff] %v738_v35  ;;  %v742_v27 = vadd.f32 %v741_v36, %v5872_v13  ;;  %1567 = vst [vmem:[#allocation3 + $0xc0] sm:$0xff] %v1258_v38 }
 0x1b3   :  { %v743_v39 = vpop.f32.mrf.mxu0  ;;  %v1260_v40 = vpop.f32.mrf.mxu1 }
 0x1b4   :  { %840 = vst [vmem:[#allocation2 + $0xe0] sm:$0xff] %v742_v27  ;;  %v744_v41 = vadd.f32 %v743_v39, %v5877_v45  ;;  %1568 = vst [vmem:[#allocation3 + $0xc8] sm:$0xff] %v1260_v40 }
 0x1b5   :  { %v747_v32 = vpop.f32.mrf.mxu0  ;;  %v1262_v43 = vpop.f32.mrf.mxu1 }
 0x1b6   :  { %841 = vst [vmem:[#allocation2 + $0xe8] sm:$0xff] %v744_v41  ;;  %v748_v37 = vadd.f32 %v747_v32, %v5872_v13  ;;  %1573 = vst [vmem:[#allocation3 + $0xf0] sm:$0xff] %v1262_v43 }
 0x1b7   :  { %v749_v42 = vpop.f32.mrf.mxu0  ;;  %v1264_v44 = vpop.f32.mrf.mxu1 }
 0x1b8   :  { %846 = vst [vmem:[#allocation2 + $0x110] sm:$0xff] %v748_v37  ;;  %v750_v50 = vadd.f32 %v749_v42, %v5877_v45  ;;  %1574 = vst [vmem:[#allocation3 + $0xf8] sm:$0xff] %v1264_v44 }
 0x1b9   :  { %v753_v55 = vpop.f32.mrf.mxu0  ;;  %v1268_v56 = vpop.f32.mrf.mxu1 }
 0x1ba   :  { %847 = vst [vmem:[#allocation2 + $0x118] sm:$0xff] %v750_v50  ;;  %v754_v57 = vadd.f32 %v753_v55, %v5872_v13  ;;  %1579 = vst [vmem:[#allocation3 + $0x120] sm:$0xff] %v1268_v56 }
 0x1bb   :  { %v755_v58 = vpop.f32.mrf.mxu0  ;;  %v1270_v59 = vpop.f32.mrf.mxu1 }
 0x1bc   :  { %852 = vst [vmem:[#allocation2 + $0x140] sm:$0xff] %v754_v57  ;;  %v756_v60 = vadd.f32 %v755_v58, %v5877_v45  ;;  %1580 = vst [vmem:[#allocation3 + $0x128] sm:$0xff] %v1270_v59 }
 0x1bd   :  { %v759_v61 = vpop.f32.mrf.mxu0  ;;  %v1272_v62 = vpop.f32.mrf.mxu1 }
 0x1be   :  { %853 = vst [vmem:[#allocation2 + $0x148] sm:$0xff] %v756_v60  ;;  %v760_v63 = vadd.f32 %v759_v61, %v5872_v13  ;;  %1585 = vst [vmem:[#allocation3 + $0x150] sm:$0xff] %v1272_v62 }
 0x1bf   :  { %v761_v1 = vpop.f32.mrf.mxu0  ;;  %v1274_v3 = vpop.f32.mrf.mxu1 }
 0x1c0   :  { %858 = vst [vmem:[#allocation2 + $0x170] sm:$0xff] %v760_v63  ;;  %v762_v4 = vadd.f32 %v761_v1, %v5877_v45  ;;  %1586 = vst [vmem:[#allocation3 + $0x158] sm:$0xff] %v1274_v3 }
 0x1c1   :  { %v765_v5 = vpop.f32.mrf.mxu0  ;;  %v1278_v6 = vpop.f32.mrf.mxu1 }
 0x1c2   :  { %859 = vst [vmem:[#allocation2 + $0x178] sm:$0xff] %v762_v4  ;;  %v766_v8 = vadd.f32 %v765_v5, %v5872_v13  ;;  %1591 = vst [vmem:[#allocation3 + $0x180] sm:$0xff] %v1278_v6 }
 0x1c3   :  { %v767_v9 = vpop.f32.mrf.mxu0  ;;  %v1280_v10 = vpop.f32.mrf.mxu1 }
 0x1c4   :  { %864 = vst [vmem:[#allocation2 + $0x1a0] sm:$0xff] %v766_v8  ;;  %v768_v11 = vadd.f32 %v767_v9, %v5877_v45  ;;  %1592 = vst [vmem:[#allocation3 + $0x188] sm:$0xff] %v1280_v10 }
 0x1c5   :  { %v771_v14 = vpop.f32.mrf.mxu0  ;;  %v1282_v15 = vpop.f32.mrf.mxu1 }
 0x1c6   :  { %865 = vst [vmem:[#allocation2 + $0x1a8] sm:$0xff] %v768_v11  ;;  %v772_v2 = vadd.f32 %v771_v14, %v5872_v13  ;;  %1597 = vst [vmem:[#allocation3 + $0x1b0] sm:$0xff] %v1282_v15 }
 0x1c7   :  { %v773_v16 = vpop.f32.mrf.mxu0  ;;  %v1284_v18 = vpop.f32.mrf.mxu1 }
 0x1c8   :  { %870 = vst [vmem:[#allocation2 + $0x1d0] sm:$0xff] %v772_v2  ;;  %v774_v19 = vadd.f32 %v773_v16, %v5877_v45  ;;  %1598 = vst [vmem:[#allocation3 + $0x1b8] sm:$0xff] %v1284_v18 }
 0x1c9   :  { %v777_v51 = vpop.f32.mrf.mxu0  ;;  %v1288_v52 = vpop.f32.mrf.mxu1 }
 0x1ca   :  { %871 = vst [vmem:[#allocation2 + $0x1d8] sm:$0xff] %v774_v19  ;;  %v778_v20 = vadd.f32 %v777_v51, %v5872_v13  ;;  %1603 = vst [vmem:[#allocation3 + $0x1e0] sm:$0xff] %v1288_v52 }
 0x1cb   :  { %v779_v7 = vpop.f32.mrf.mxu0  ;;  %v1290_v21 = vpop.f32.mrf.mxu1 }
 0x1cc   :  { %876 = vst [vmem:[#allocation2 + $0x200] sm:$0xff] %v778_v20  ;;  %v780_v53 = vadd.f32 %v779_v7, %v5877_v45  ;;  %1604 = vst [vmem:[#allocation3 + $0x1e8] sm:$0xff] %v1290_v21 }
 0x1cd   :  { %v783_v54 = vpop.f32.mrf.mxu0  ;;  %v1292_v48 = vpop.f32.mrf.mxu1 }
 0x1ce   :  { %877 = vst [vmem:[#allocation2 + $0x208] sm:$0xff] %v780_v53  ;;  %v784_v23 = vadd.f32 %v783_v54, %v5872_v13  ;;  %1609 = vst [vmem:[#allocation3 + $0x210] sm:$0xff] %v1292_v48 }
 0x1cf   :  { %v785_v24 = vpop.f32.mrf.mxu0  ;;  %v1294_v12 = vpop.f32.mrf.mxu1 }
 0x1d0   :  { %882 = vst [vmem:[#allocation2 + $0x230] sm:$0xff] %v784_v23  ;;  %v786_v25 = vadd.f32 %v785_v24, %v5877_v45  ;;  %1610 = vst [vmem:[#allocation3 + $0x218] sm:$0xff] %v1294_v12 }
 0x1d1   :  { %v789_v26 = vpop.f32.mrf.mxu0  ;;  %v1298_v28 = vpop.f32.mrf.mxu1 }
 0x1d2   :  { %883 = vst [vmem:[#allocation2 + $0x238] sm:$0xff] %v786_v25  ;;  %v790_v29 = vadd.f32 %v789_v26, %v5872_v13  ;;  %1615 = vst [vmem:[#allocation3 + $0x240] sm:$0xff] %v1298_v28 }
 0x1d3   :  { %v791_v17 = vpop.f32.mrf.mxu0  ;;  %v1300_v30 = vpop.f32.mrf.mxu1 }
 0x1d4   :  { %888 = vst [vmem:[#allocation2 + $0x260] sm:$0xff] %v790_v29  ;;  %v792_v31 = vadd.f32 %v791_v17, %v5877_v45  ;;  %1616 = vst [vmem:[#allocation3 + $0x248] sm:$0xff] %v1300_v30 }
 0x1d5   :  { %v795_v33 = vpop.f32.mrf.mxu0  ;;  %v1302_v22 = vpop.f32.mrf.mxu1 }
 0x1d6   :  { %889 = vst [vmem:[#allocation2 + $0x268] sm:$0xff] %v792_v31  ;;  %v796_v34 = vadd.f32 %v795_v33, %v5872_v13  ;;  %1621 = vst [vmem:[#allocation3 + $0x270] sm:$0xff] %v1302_v22 }
 0x1d7   :  { %v797_v35 = vpop.f32.mrf.mxu0  ;;  %v1304_v36 = vpop.f32.mrf.mxu1 }
 0x1d8   :  { %894 = vst [vmem:[#allocation2 + $0x290] sm:$0xff] %v796_v34  ;;  %v798_v38 = vadd.f32 %v797_v35, %v5877_v45  ;;  %1622 = vst [vmem:[#allocation3 + $0x278] sm:$0xff] %v1304_v36 }
 0x1d9   :  { %v801_v27 = vpop.f32.mrf.mxu0  ;;  %v1308_v39 = vpop.f32.mrf.mxu1 }
 0x1da   :  { %895 = vst [vmem:[#allocation2 + $0x298] sm:$0xff] %v798_v38  ;;  %v802_v40 = vadd.f32 %v801_v27, %v5872_v13  ;;  %1627 = vst [vmem:[#allocation3 + $0x2a0] sm:$0xff] %v1308_v39 }
 0x1db   :  { %v803_v41 = vpop.f32.mrf.mxu0  ;;  %v1310_v32 = vpop.f32.mrf.mxu1 }
 0x1dc   :  { %900 = vst [vmem:[#allocation2 + $0x2c0] sm:$0xff] %v802_v40  ;;  %v804_v43 = vadd.f32 %v803_v41, %v5877_v45  ;;  %1628 = vst [vmem:[#allocation3 + $0x2a8] sm:$0xff] %v1310_v32 }
 0x1dd   :  { %v807_v37 = vpop.f32.mrf.mxu0  ;;  %v1312_v42 = vpop.f32.mrf.mxu1 }
 0x1de   :  { %901 = vst [vmem:[#allocation2 + $0x2c8] sm:$0xff] %v804_v43  ;;  %v808_v44 = vadd.f32 %v807_v37, %v5872_v13  ;;  %1633 = vst [vmem:[#allocation3 + $0x2d0] sm:$0xff] %v1312_v42 }
 0x1df   :  { %v809_v50 = vpop.f32.mrf.mxu0  ;;  %v1314_v55 = vpop.f32.mrf.mxu1 }
 0x1e0   :  { %906 = vst [vmem:[#allocation2 + $0x2f0] sm:$0xff] %v808_v44  ;;  %v810_v56 = vadd.f32 %v809_v50, %v5877_v45  ;;  %1634 = vst [vmem:[#allocation3 + $0x2d8] sm:$0xff] %v1314_v55 }
 0x1e1   :  { %v1351_v57 = vpop.f32.mrf.mxu0  ;;  %v1464_v58 = vpop.f32.mrf.mxu1 }
 0x1e2   :  { %907 = vst [vmem:[#allocation2 + $0x2f8] sm:$0xff] %v810_v56  ;;  %1545 = vst [vmem:[#allocation3 + $0x10] sm:$0xff] %v1351_v57 }
 0x1e3   :  { %1547 = vst [vmem:[#allocation3 + $0x20] sm:$0xff] %v1464_v58  ;;  %v1353_v59 = vpop.f32.mrf.mxu0  ;;  %v1466_v60 = vpop.f32.mrf.mxu1 }
 0x1e4   :  { %1546 = vst [vmem:[#allocation3 + $0x18] sm:$0xff] %v1353_v59  ;;  %1548 = vst [vmem:[#allocation3 + $0x28] sm:$0xff] %v1466_v60 }
 0x1e5   :  { %v1355_v61 = vpop.f32.mrf.mxu0  ;;  %v1468_v62 = vpop.f32.mrf.mxu1 }
 0x1e6   :  { %1551 = vst [vmem:[#allocation3 + $0x40] sm:$0xff] %v1355_v61  ;;  %1553 = vst [vmem:[#allocation3 + $0x50] sm:$0xff] %v1468_v62 }
 0x1e7   :  { %v1357_v13 = vpop.f32.mrf.mxu0  ;;  %v1470_v63 = vpop.f32.mrf.mxu1 }
 0x1e8   :  { %1552 = vst [vmem:[#allocation3 + $0x48] sm:$0xff] %v1357_v13  ;;  %1554 = vst [vmem:[#allocation3 + $0x58] sm:$0xff] %v1470_v63 }
 0x1e9   :  { %v1361_v1 = vpop.f32.mrf.mxu0  ;;  %v1474_v45 = vpop.f32.mrf.mxu1 }
 0x1ea   :  { %1557 = vst [vmem:[#allocation3 + $0x70] sm:$0xff] %v1361_v1  ;;  %1559 = vst [vmem:[#allocation3 + $0x80] sm:$0xff] %v1474_v45 }
 0x1eb   :  { %v1363_v3 = vpop.f32.mrf.mxu0  ;;  %v1476_v4 = vpop.f32.mrf.mxu1 }
 0x1ec   :  { %1558 = vst [vmem:[#allocation3 + $0x78] sm:$0xff] %v1363_v3  ;;  %1560 = vst [vmem:[#allocation3 + $0x88] sm:$0xff] %v1476_v4 }
 0x1ed   :  { %v1365_v5 = vpop.f32.mrf.mxu0  ;;  %v1478_v6 = vpop.f32.mrf.mxu1 }
 0x1ee   :  { %1563 = vst [vmem:[#allocation3 + $0xa0] sm:$0xff] %v1365_v5  ;;  %1565 = vst [vmem:[#allocation3 + $0xb0] sm:$0xff] %v1478_v6 }
 0x1ef   :  { %v1367_v8 = vpop.f32.mrf.mxu0  ;;  %v1480_v9 = vpop.f32.mrf.mxu1 }
 0x1f0   :  { %1564 = vst [vmem:[#allocation3 + $0xa8] sm:$0xff] %v1367_v8  ;;  %1566 = vst [vmem:[#allocation3 + $0xb8] sm:$0xff] %v1480_v9 }
 0x1f1   :  { %v1371_v10 = vpop.f32.mrf.mxu0  ;;  %v1484_v11 = vpop.f32.mrf.mxu1 }
 0x1f2   :  { %1569 = vst [vmem:[#allocation3 + $0xd0] sm:$0xff] %v1371_v10  ;;  %1571 = vst [vmem:[#allocation3 + $0xe0] sm:$0xff] %v1484_v11 }
 0x1f3   :  { %v1373_v14 = vpop.f32.mrf.mxu0  ;;  %v1486_v15 = vpop.f32.mrf.mxu1 }
 0x1f4   :  { %1570 = vst [vmem:[#allocation3 + $0xd8] sm:$0xff] %v1373_v14  ;;  %1572 = vst [vmem:[#allocation3 + $0xe8] sm:$0xff] %v1486_v15 }
 0x1f5   :  { %v1375_v2 = vpop.f32.mrf.mxu0  ;;  %v1488_v16 = vpop.f32.mrf.mxu1 }
 0x1f6   :  { %1575 = vst [vmem:[#allocation3 + $0x100] sm:$0xff] %v1375_v2  ;;  %1577 = vst [vmem:[#allocation3 + $0x110] sm:$0xff] %v1488_v16 }
 0x1f7   :  { %v1377_v18 = vpop.f32.mrf.mxu0  ;;  %v1490_v19 = vpop.f32.mrf.mxu1 }
 0x1f8   :  { %1576 = vst [vmem:[#allocation3 + $0x108] sm:$0xff] %v1377_v18  ;;  %1578 = vst [vmem:[#allocation3 + $0x118] sm:$0xff] %v1490_v19 }
 0x1f9   :  { %v1381_v51 = vpop.f32.mrf.mxu0  ;;  %v1494_v52 = vpop.f32.mrf.mxu1 }
 0x1fa   :  { %1581 = vst [vmem:[#allocation3 + $0x130] sm:$0xff] %v1381_v51  ;;  %1583 = vst [vmem:[#allocation3 + $0x140] sm:$0xff] %v1494_v52 }
 0x1fb   :  { %v1383_v20 = vpop.f32.mrf.mxu0  ;;  %v1496_v7 = vpop.f32.mrf.mxu1 }
 0x1fc   :  { %1582 = vst [vmem:[#allocation3 + $0x138] sm:$0xff] %v1383_v20  ;;  %1584 = vst [vmem:[#allocation3 + $0x148] sm:$0xff] %v1496_v7 }
 0x1fd   :  { %v1385_v21 = vpop.f32.mrf.mxu0  ;;  %v1498_v53 = vpop.f32.mrf.mxu1 }
 0x1fe   :  { %1587 = vst [vmem:[#allocation3 + $0x160] sm:$0xff] %v1385_v21  ;;  %1589 = vst [vmem:[#allocation3 + $0x170] sm:$0xff] %v1498_v53 }
 0x1ff   :  { %v1387_v54 = vpop.f32.mrf.mxu0  ;;  %v1500_v48 = vpop.f32.mrf.mxu1 }
 0x200   :  { %1588 = vst [vmem:[#allocation3 + $0x168] sm:$0xff] %v1387_v54  ;;  %1590 = vst [vmem:[#allocation3 + $0x178] sm:$0xff] %v1500_v48 }
 0x201   :  { %v1391_v23 = vpop.f32.mrf.mxu0  ;;  %v1504_v24 = vpop.f32.mrf.mxu1 }
 0x202   :  { %1593 = vst [vmem:[#allocation3 + $0x190] sm:$0xff] %v1391_v23  ;;  %1595 = vst [vmem:[#allocation3 + $0x1a0] sm:$0xff] %v1504_v24 }
 0x203   :  { %v1393_v12 = vpop.f32.mrf.mxu0  ;;  %v1506_v25 = vpop.f32.mrf.mxu1 }
 0x204   :  { %1594 = vst [vmem:[#allocation3 + $0x198] sm:$0xff] %v1393_v12  ;;  %1596 = vst [vmem:[#allocation3 + $0x1a8] sm:$0xff] %v1506_v25 }
 0x205   :  { %v1395_v26 = vpop.f32.mrf.mxu0  ;;  %v1508_v28 = vpop.f32.mrf.mxu1 }
 0x206   :  { %1599 = vst [vmem:[#allocation3 + $0x1c0] sm:$0xff] %v1395_v26  ;;  %1601 = vst [vmem:[#allocation3 + $0x1d0] sm:$0xff] %v1508_v28 }
 0x207   :  { %v1397_v29 = vpop.f32.mrf.mxu0  ;;  %v1510_v17 = vpop.f32.mrf.mxu1 }
 0x208   :  { %1600 = vst [vmem:[#allocation3 + $0x1c8] sm:$0xff] %v1397_v29  ;;  %1602 = vst [vmem:[#allocation3 + $0x1d8] sm:$0xff] %v1510_v17 }
 0x209   :  { %v1401_v30 = vpop.f32.mrf.mxu0  ;;  %v1514_v31 = vpop.f32.mrf.mxu1 }
 0x20a   :  { %1605 = vst [vmem:[#allocation3 + $0x1f0] sm:$0xff] %v1401_v30  ;;  %1607 = vst [vmem:[#allocation3 + $0x200] sm:$0xff] %v1514_v31 }
 0x20b   :  { %v1403_v33 = vpop.f32.mrf.mxu0  ;;  %v1516_v22 = vpop.f32.mrf.mxu1 }
 0x20c   :  { %1606 = vst [vmem:[#allocation3 + $0x1f8] sm:$0xff] %v1403_v33  ;;  %1608 = vst [vmem:[#allocation3 + $0x208] sm:$0xff] %v1516_v22 }
 0x20d   :  { %v1405_v34 = vpop.f32.mrf.mxu0  ;;  %v1518_v35 = vpop.f32.mrf.mxu1 }
 0x20e   :  { %1611 = vst [vmem:[#allocation3 + $0x220] sm:$0xff] %v1405_v34  ;;  %1613 = vst [vmem:[#allocation3 + $0x230] sm:$0xff] %v1518_v35 }
 0x20f   :  { %v1407_v36 = vpop.f32.mrf.mxu0  ;;  %v1520_v38 = vpop.f32.mrf.mxu1 }
 0x210   :  { %1612 = vst [vmem:[#allocation3 + $0x228] sm:$0xff] %v1407_v36  ;;  %1614 = vst [vmem:[#allocation3 + $0x238] sm:$0xff] %v1520_v38 }
 0x211   :  { %v1411_v27 = vpop.f32.mrf.mxu0  ;;  %v1524_v39 = vpop.f32.mrf.mxu1 }
 0x212   :  { %1617 = vst [vmem:[#allocation3 + $0x250] sm:$0xff] %v1411_v27  ;;  %1619 = vst [vmem:[#allocation3 + $0x260] sm:$0xff] %v1524_v39 }
 0x213   :  { %v1413_v40 = vpop.f32.mrf.mxu0  ;;  %v1526_v41 = vpop.f32.mrf.mxu1 }
 0x214   :  { %1618 = vst [vmem:[#allocation3 + $0x258] sm:$0xff] %v1413_v40  ;;  %1620 = vst [vmem:[#allocation3 + $0x268] sm:$0xff] %v1526_v41 }
 0x215   :  { %v1415_v32 = vpop.f32.mrf.mxu0  ;;  %v1528_v43 = vpop.f32.mrf.mxu1 }
 0x216   :  { %1623 = vst [vmem:[#allocation3 + $0x280] sm:$0xff] %v1415_v32  ;;  %1625 = vst [vmem:[#allocation3 + $0x290] sm:$0xff] %v1528_v43 }
 0x217   :  { %v1417_v37 = vpop.f32.mrf.mxu0  ;;  %v1530_v42 = vpop.f32.mrf.mxu1 }
 0x218   :  { %1624 = vst [vmem:[#allocation3 + $0x288] sm:$0xff] %v1417_v37  ;;  %1626 = vst [vmem:[#allocation3 + $0x298] sm:$0xff] %v1530_v42 }
 0x219   :  { %v1421_v44 = vpop.f32.mrf.mxu0  ;;  %v1534_v50 = vpop.f32.mrf.mxu1 }
 0x21a   :  { %1629 = vst [vmem:[#allocation3 + $0x2b0] sm:$0xff] %v1421_v44  ;;  %1631 = vst [vmem:[#allocation3 + $0x2c0] sm:$0xff] %v1534_v50 }
 0x21b   :  { %v1423_v55 = vpop.f32.mrf.mxu0  ;;  %v1536_v56 = vpop.f32.mrf.mxu1 }
 0x21c   :  { %1630 = vst [vmem:[#allocation3 + $0x2b8] sm:$0xff] %v1423_v55  ;;  %1632 = vst [vmem:[#allocation3 + $0x2c8] sm:$0xff] %v1536_v56 }
 0x21d   :  { %v1425_v57 = vpop.f32.mrf.mxu0  ;;  %v1538_v58 = vpop.f32.mrf.mxu1 }
 0x21e   :  { %1635 = vst [vmem:[#allocation3 + $0x2e0] sm:$0xff] %v1425_v57  ;;  %1637 = vst [vmem:[#allocation3 + $0x2f0] sm:$0xff] %v1538_v58 }
 0x21f   :  { %v1427_v59 = vpop.f32.mrf.mxu0  ;;  %v1540_v60 = vpop.f32.mrf.mxu1 }
 0x220   :  { %1636 = vst [vmem:[#allocation3 + $0x2e8] sm:$0xff] %v1427_v59  ;;  %1638 = vst [vmem:[#allocation3 + $0x2f8] sm:$0xff] %v1540_v60 }
 0x221 LB: > { %v1724_v61 = vld [vmem:[%s6616_s7 + $0x170] sm:$0xff]  ;;  %v1723_v62 = vld [vmem:[%s6616_s7 + $0x168] sm:$0xff]  ;;  %v1721_v13 = vld [vmem:[%s6616_s7 + $0x158] sm:$0xff]  ;;  %v4950_v1 = vmov 0.0   ;;  %s3815_s4 = sshll.u32 %s4893_s25, 4  ;;  %s1649_s17 = ssub.s32 7, %s4893_s25  ;;  %s4893_s25 = sphi %s5911_s25, %s1648_s25  }
 0x222   : > { %1743 = vmatprep.subr.mxu0 %v1724_v61  ;;  %v1720_v63 = vld [vmem:[%s6616_s7 + $0x150] sm:$0xff]  ;;  %1807 = vmatprep.mubr.f32.mxu0 %v4950_v1  ;;  %v1718_v45 = vld [vmem:[%s6616_s7 + $0x140] sm:$0xff]  ;;  %v1717_v3 = vld [vmem:[%s6616_s7 + $0x138] sm:$0xff]  ;;  %s1652_s19 = sshra.s32 %s3815_s4, 3  ;;  %s6095_s20 = sshll.u32 %s1649_s17, 4 }
 0x223   : > { %1744 = vmatpush1.msra.mxu0 %v1723_v62  ;;  %v1715_v4 = vld [vmem:[%s6616_s7 + $0x128] sm:$0xff]  ;;  %v1714_v5 = vld [vmem:[%s6616_s7 + $0x120] sm:$0xff]  ;;  %v1712_v6 = vld [vmem:[%s6616_s7 + $0x110] sm:$0xff]  ;;  %s3921_s28 = smul.u32 48, %s1652_s19  ;;  %s1663_s3 = sshra.s32 %s6095_s20, 3 }
 0x224   : > { %1745 = vmatprep.subr.mxu0 %v1721_v13  ;;  %v1711_v8 = vld [vmem:[%s6616_s7 + $0x108] sm:$0xff]  ;;  %v1709_v9 = vld [vmem:[%s6616_s7 + $0xf8] sm:$0xff]  ;;  %v1708_v10 = vld [vmem:[%s6616_s7 + $0xf0] sm:$0xff]  ;;  %s3922_s14 = smul.u32 48, %s1663_s3  ;;  %s2200_s1 = scalar_lea.vmem [#allocation4], %s3815_s4 }
 0x225   : > { %1746 = vmatpush1.msra.mxu0 %v1720_v63  ;;  %v1706_v11 = vld [vmem:[%s6616_s7 + $0xe0] sm:$0xff]  ;;  %v1705_v15 = vld [vmem:[%s6616_s7 + $0xd8] sm:$0xff]  ;;  %v1703_v16 = vld [vmem:[%s6616_s7 + $0xc8] sm:$0xff]  ;;  %s6087_s12 = scalar_lea.vmem [#allocation2], %s3921_s28  ;;  %s2203_s5 = scalar_lea.vmem [#allocation5], %s6095_s20 }
 0x226   : > { %1747 = vmatprep.subr.mxu0 %v1718_v45  ;;  %v5956_v14 = vld [vmem:[#allocation6] sm:$0xff]  ;;  %v1725_v2 = vld [vmem:[%s6616_s7 + $0x178] sm:$0xff]  ;;  %v1719_v51 = vld [vmem:[%s6616_s7 + $0x148] sm:$0xff]  ;;  %s6106_s23 = scalar_lea.vmem [#allocation2], %s3922_s14  ;;  %s1648_s25 = sadd.s32 1, %s4893_s25  }
 0x227   : > { %1748 = vmatpush1.msra.mxu0 %v1717_v3  ;;  %4093 = vmatprep.mubr.f32.mxu1 %v5956_v14  ;;  %v1722_v18 = vld [vmem:[%s6616_s7 + $0x160] sm:$0xff]  ;;  %v1700_v52 = vld [vmem:[%s6616_s7 + $0xb0] sm:$0xff]  ;;  %v1699_v20 = vld [vmem:[%s6616_s7 + $0xa8] sm:$0xff]  ;;  %p1645_p3 = scmp.ge.s32.totalorder %s1648_s25, 8  }
 0x228   : > { %1749 = vmatprep.subr.mxu0 %v1715_v4  ;;  %4061 = vmatprep.subr.mxu1 %v1725_v2  ;;  %v1702_v19 = vld [vmem:[%s6616_s7 + $0xc0] sm:$0xff]  ;;  %v1716_v7 = vld [vmem:[%s6616_s7 + $0x130] sm:$0xff]  ;;  %v1697_v21 = vld [vmem:[%s6616_s7 + $0x98] sm:$0xff]  ;;  %s6650_s6 = sld [smem:[#allocation29_spill]] (%p1645_p3)  ;;  %vm2663_vm0 = vcmask (%p1645_p3), 7168  }
 0x229   : > { %1750 = vmatpush1.msra.mxu0 %v1714_v5  ;;  %4062 = vmatpush3.msra.mxu1 %v1725_v2  ;;  %v1696_v53 = vld [vmem:[%s6616_s7 + $0x90] sm:$0xff]  ;;  %v1713_v54 = vld [vmem:[%s6616_s7 + $0x118] sm:$0xff]  ;;  %v1694_v48 = vld [vmem:[%s6616_s7 + $0x80] sm:$0xff] }
 0x22a   : > { %1751 = vmatprep.subr.mxu0 %v1712_v6  ;;  %4063 = vmatprep.subr.mxu1 %v1722_v18  ;;  %v1693_v23 = vld [vmem:[%s6616_s7 + $0x78] sm:$0xff]  ;;  %v1710_v24 = vld [vmem:[%s6616_s7 + $0x100] sm:$0xff]  ;;  %v1691_v12 = vld [vmem:[%s6616_s7 + $0x68] sm:$0xff] }
 0x22b   : > { %1752 = vmatpush1.msra.mxu0 %v1711_v8  ;;  %4064 = vmatpush3.msra.mxu1 %v1722_v18  ;;  %v1690_v25 = vld [vmem:[%s6616_s7 + $0x60] sm:$0xff]  ;;  %v1707_v26 = vld [vmem:[%s6616_s7 + $0xe8] sm:$0xff]  ;;  %v1688_v28 = vld [vmem:[%s6616_s7 + $0x50] sm:$0xff] }
 0x22c   : > { %1753 = vmatprep.subr.mxu0 %v1709_v9  ;;  %4065 = vmatprep.subr.mxu1 %v1719_v51  ;;  %v1687_v29 = vld [vmem:[%s6616_s7 + $0x48] sm:$0xff]  ;;  %v1704_v17 = vld [vmem:[%s6616_s7 + $0xd0] sm:$0xff]  ;;  %v1685_v30 = vld [vmem:[%s6616_s7 + $0x38] sm:$0xff] }
 0x22d   : > { %1754 = vmatpush1.msra.mxu0 %v1708_v10  ;;  %4066 = vmatpush3.msra.mxu1 %v1719_v51  ;;  %v1684_v31 = vld [vmem:[%s6616_s7 + $0x30] sm:$0xff]  ;;  %v1701_v33 = vld [vmem:[%s6616_s7 + $0xb8] sm:$0xff]  ;;  %v1682_v22 = vld [vmem:[%s6616_s7 + $0x20] sm:$0xff] }
 0x22e   : > { %1755 = vmatprep.subr.mxu0 %v1706_v11  ;;  %4067 = vmatprep.subr.mxu1 %v1716_v7  ;;  %v1681_v34 = vld [vmem:[%s6616_s7 + $0x18] sm:$0xff]  ;;  %v1698_v35 = vld [vmem:[%s6616_s7 + $0xa0] sm:$0xff]  ;;  %v1679_v36 = vld [vmem:[%s6616_s7 + $0x8] sm:$0xff] }
 0x22f   : > { %1756 = vmatpush1.msra.mxu0 %v1705_v15  ;;  %4068 = vmatpush3.msra.mxu1 %v1716_v7  ;;  %v1678_v38 = vld [vmem:[%s6616_s7] sm:$0xff]  ;;  %v1695_v27 = vld [vmem:[%s6616_s7 + $0x88] sm:$0xff]  ;;  %v1941_v39 = vld [vmem:[#allocation8 + $0x170] sm:$0xff] }
 0x230   : > { %1757 = vmatprep.subr.mxu0 %v1703_v16  ;;  %4069 = vmatprep.subr.mxu1 %v1713_v54  ;;  %v1940_v40 = vld [vmem:[#allocation8 + $0x168] sm:$0xff]  ;;  %v1938_v41 = vld [vmem:[#allocation8 + $0x158] sm:$0xff]  ;;  %v1937_v32 = vld [vmem:[#allocation8 + $0x150] sm:$0xff] }
 0x231   : > { %1758 = vmatpush1.msra.mxu0 %v1702_v19  ;;  %4070 = vmatpush3.msra.mxu1 %v1713_v54  ;;  %v1692_v43 = vld [vmem:[%s6616_s7 + $0x70] sm:$0xff]  ;;  %v6054_v37 = vld [vmem:[#allocation6 + $0x8] sm:$0xff]  ;;  %v1935_v42 = vld [vmem:[#allocation8 + $0x140] sm:$0xff] }
 0x232   : > { %1759 = vmatprep.subr.mxu0 %v1700_v52  ;;  %4071 = vmatprep.subr.mxu1 %v1710_v24  ;;  %v1934_v44 = vld [vmem:[#allocation8 + $0x138] sm:$0xff]  ;;  %v1932_v50 = vld [vmem:[#allocation8 + $0x128] sm:$0xff]  ;;  %v1931_v56 = vld [vmem:[#allocation8 + $0x120] sm:$0xff] }
 0x233   : > { %1760 = vmatpush1.msra.mxu0 %v1699_v20  ;;  %4072 = vmatpush3.msra.mxu1 %v1710_v24  ;;  %v1689_v55 = vld [vmem:[%s6616_s7 + $0x58] sm:$0xff]  ;;  %v1929_v57 = vld [vmem:[#allocation8 + $0x110] sm:$0xff]  ;;  %v1686_v58 = vld [vmem:[%s6616_s7 + $0x40] sm:$0xff] }
 0x234   : > { %1761 = vmatprep.subr.mxu0 %v1697_v21  ;;  %4073 = vmatprep.subr.mxu1 %v1707_v26  ;;  %v1928_v59 = vld [vmem:[#allocation8 + $0x108] sm:$0xff]  ;;  %v1926_v60 = vld [vmem:[#allocation8 + $0xf8] sm:$0xff]  ;;  %v1925_v62 = vld [vmem:[#allocation8 + $0xf0] sm:$0xff] }
 0x235   : > { %1762 = vmatpush1.msra.mxu0 %v1696_v53  ;;  %4074 = vmatpush3.msra.mxu1 %v1707_v26  ;;  %v1683_v61 = vld [vmem:[%s6616_s7 + $0x28] sm:$0xff]  ;;  %v1923_v13 = vld [vmem:[#allocation8 + $0xe0] sm:$0xff]  ;;  %v1680_v63 = vld [vmem:[%s6616_s7 + $0x10] sm:$0xff] }
 0x236   : > { %1763 = vmatprep.subr.mxu0 %v1694_v48  ;;  %4075 = vmatprep.subr.mxu1 %v1704_v17  ;;  %v1922_v45 = vld [vmem:[#allocation8 + $0xd8] sm:$0xff]  ;;  %v1920_v3 = vld [vmem:[#allocation8 + $0xc8] sm:$0xff]  ;;  %v1919_v4 = vld [vmem:[#allocation8 + $0xc0] sm:$0xff] }
 0x237   : > { %1764 = vmatpush1.msra.mxu0 %v1693_v23  ;;  %4076 = vmatpush3.msra.mxu1 %v1704_v17  ;;  %v1917_v5 = vld [vmem:[#allocation8 + $0xb0] sm:$0xff]  ;;  %v1942_v6 = vld [vmem:[#allocation8 + $0x178] sm:$0xff]  ;;  %v1916_v8 = vld [vmem:[#allocation8 + $0xa8] sm:$0xff] }
 0x238   : > { %1765 = vmatprep.subr.mxu0 %v1691_v12  ;;  %4077 = vmatprep.subr.mxu1 %v1701_v33  ;;  %v1914_v9 = vld [vmem:[#allocation8 + $0x98] sm:$0xff]  ;;  %v1939_v10 = vld [vmem:[#allocation8 + $0x160] sm:$0xff]  ;;  %v1913_v11 = vld [vmem:[#allocation8 + $0x90] sm:$0xff] }
 0x239   : > { %1766 = vmatpush1.msra.mxu0 %v1690_v25  ;;  %4078 = vmatpush3.msra.mxu1 %v1701_v33  ;;  %v1911_v15 = vld [vmem:[#allocation8 + $0x80] sm:$0xff]  ;;  %v1936_v2 = vld [vmem:[#allocation8 + $0x148] sm:$0xff]  ;;  %v1910_v16 = vld [vmem:[#allocation8 + $0x78] sm:$0xff] }
 0x23a   : > { %1767 = vmatprep.subr.mxu0 %v1688_v28  ;;  %4079 = vmatprep.subr.mxu1 %v1698_v35  ;;  %v1908_v18 = vld [vmem:[#allocation8 + $0x68] sm:$0xff]  ;;  %v1933_v19 = vld [vmem:[#allocation8 + $0x130] sm:$0xff]  ;;  %v1907_v51 = vld [vmem:[#allocation8 + $0x60] sm:$0xff] }
 0x23b   : > { %1768 = vmatpush1.msra.mxu0 %v1687_v29  ;;  %4080 = vmatpush3.msra.mxu1 %v1698_v35  ;;  %v1905_v52 = vld [vmem:[#allocation8 + $0x50] sm:$0xff]  ;;  %v1930_v20 = vld [vmem:[#allocation8 + $0x118] sm:$0xff]  ;;  %v1904_v7 = vld [vmem:[#allocation8 + $0x48] sm:$0xff] }
 0x23c   : > { %1769 = vmatprep.subr.mxu0 %v1685_v30  ;;  %4081 = vmatprep.subr.mxu1 %v1695_v27  ;;  %v1902_v21 = vld [vmem:[#allocation8 + $0x38] sm:$0xff]  ;;  %v1927_v53 = vld [vmem:[#allocation8 + $0x100] sm:$0xff]  ;;  %v1901_v54 = vld [vmem:[#allocation8 + $0x30] sm:$0xff] }
 0x23d   : > { %1770 = vmatpush1.msra.mxu0 %v1684_v31  ;;  %4082 = vmatpush3.msra.mxu1 %v1695_v27  ;;  %v1899_v48 = vld [vmem:[#allocation8 + $0x20] sm:$0xff]  ;;  %v1924_v23 = vld [vmem:[#allocation8 + $0xe8] sm:$0xff]  ;;  %v1898_v24 = vld [vmem:[#allocation8 + $0x18] sm:$0xff] }
 0x23e   : > { %1771 = vmatprep.subr.mxu0 %v1682_v22  ;;  %4083 = vmatprep.subr.mxu1 %v1692_v43  ;;  %v1896_v12 = vld [vmem:[#allocation8 + $0x8] sm:$0xff]  ;;  %v1921_v25 = vld [vmem:[#allocation8 + $0xd0] sm:$0xff]  ;;  %v1895_v26 = vld [vmem:[#allocation8] sm:$0xff] }
 0x23f   : > { %1772 = vmatpush1.msra.mxu0 %v1681_v34  ;;  %4084 = vmatpush3.msra.mxu1 %v1692_v43  ;;  %v6071_v28 = vld [vmem:[#allocation7 + $0x8] sm:$0xff]  ;;  %v1915_v17 = vld [vmem:[#allocation8 + $0xa0] sm:$0xff]  ;;  %v6075_v30 = vld [vmem:[#allocation7] sm:$0xff] }
 0x240   : > { %1773 = vmatprep.subr.mxu0 %v1679_v36  ;;  %4085 = vmatprep.subr.mxu1 %v1689_v55  ;;  %v1918_v29 = vld [vmem:[#allocation8 + $0xb8] sm:$0xff]  ;;  %v1912_v31 = vld [vmem:[#allocation8 + $0x88] sm:$0xff]  ;;  %v1909_v33 = vld [vmem:[#allocation8 + $0x70] sm:$0xff] }
 0x241   : > { %1774 = vmatpush1.msra.mxu0 %v1678_v38  ;;  %4086 = vmatpush3.msra.mxu1 %v1689_v55  ;;  %v1906_v22 = vld [vmem:[#allocation8 + $0x58] sm:$0xff]  ;;  %v1903_v34 = vld [vmem:[#allocation8 + $0x40] sm:$0xff]  ;;  %v1897_v35 = vld [vmem:[#allocation8 + $0x10] sm:$0xff] }
 0x242   : > { %1808 = vmatmul.mubr.f32.vlgmr.msra.gmra.mxu0 %v5956_v14  ;;  %1960 = vmatprep.subr.mxu0 %v1941_v39  ;;  %v1726_v36 = vld [vmem:[%s6617_s8] sm:$0x7] }
 0x243   : > { %1961 = vmatpush1.msra.mxu0 %v1940_v40  ;;  %1813 = vmatprep.mubr.f32.mxu0 %v4950_v1  ;;  %v1731_v38 = vrot.slane %v1726_v36, %v5778_v46  ;;  %v1657_v27 = vld [vmem:[%s6087_s12] sm:$0xff]  ;;  %v1735_v40 = vrot.slane %v1726_v36, %v5789_v49 }
 0x244   : > { %1962 = vmatprep.subr.mxu0 %v1938_v41  ;;  %4087 = vmatprep.subr.mxu1 %v1686_v58 }
 0x245   : > { %1963 = vmatpush1.msra.mxu0 %v1937_v32  ;;  %4088 = vmatpush3.msra.mxu1 %v1686_v58 }
 0x246   : > { %1814 = vmatmul.mubr.f32.gmra.mxu0 %v6054_v37  ;;  %1964 = vmatprep.subr.mxu0 %v1935_v42 }
 0x247   : > { %1965 = vmatpush1.msra.mxu0 %v1934_v44  ;;  %4089 = vmatprep.subr.mxu1 %v1683_v61  ;;  %v1660_v44 = vld [vmem:[%s6087_s12 + $0x30] sm:$0xff] }
 0x248   : > { %1966 = vmatprep.subr.mxu0 %v1932_v50  ;;  %4090 = vmatpush3.msra.mxu1 %v1683_v61 }
 0x249   : > { %1967 = vmatpush1.msra.mxu0 %v1931_v56  ;;  %4091 = vmatprep.subr.mxu1 %v1680_v63  ;;  %v1658_v56 = vld [vmem:[%s6087_s12 + $0x8] sm:$0xff] }
 0x24a   : > { %1968 = vmatprep.subr.mxu0 %v1929_v57  ;;  %4092 = vmatpush3.msra.mxu1 %v1680_v63 }
 0x24b   : > { %1969 = vmatpush1.msra.mxu0 %v1928_v59  ;;  %2024 = vmatprep.mubr.f32.mxu0 %v4950_v1 }
 0x24c   : > { %1970 = vmatprep.subr.mxu0 %v1926_v60  ;;  %4094 = vmatmul.mubr.f32.vlgmr.msra.gmra.mxu1 %v6054_v37  ;;  %v1661_v60 = vld [vmem:[%s6087_s12 + $0x38] sm:$0xff] }
 0x24d   : > { %1971 = vmatpush1.msra.mxu0 %v1925_v62  ;;  %4096 = vmatprep.subr.mxu1 %v1942_v6 }
 0x24e   : > { %1972 = vmatprep.subr.mxu0 %v1923_v13  ;;  %4097 = vmatpush3.msra.mxu1 %v1942_v6 }
 0x24f   : > { %1973 = vmatpush1.msra.mxu0 %v1922_v45  ;;  %4098 = vmatprep.subr.mxu1 %v1939_v10 }
 0x250   : > { %1974 = vmatprep.subr.mxu0 %v1920_v3  ;;  %4099 = vmatpush3.msra.mxu1 %v1939_v10  ;;  %v6101_v10 = vld [vmem:[%s6619_s10] sm:$0x7]  ;;  %s6649_s10 = sld [smem:[#allocation33_spill]] (%p1645_p3) }
 0x251   : > { %1975 = vmatpush1.msra.mxu0 %v1919_v4  ;;  %4100 = vmatprep.subr.mxu1 %v1936_v2 }
 0x252   : > { %1976 = vmatprep.subr.mxu0 %v1917_v5  ;;  %4101 = vmatpush3.msra.mxu1 %v1936_v2  ;;  %v1948_v2 = vrot.slane %v6101_v10, %v5778_v46 }
 0x253   : > { %1977 = vmatpush1.msra.mxu0 %v1916_v8  ;;  %4102 = vmatprep.subr.mxu1 %v1933_v19 }
 0x254   : > { %1978 = vmatprep.subr.mxu0 %v1914_v9  ;;  %4103 = vmatpush3.msra.mxu1 %v1933_v19 }
 0x255   : > { %1979 = vmatpush1.msra.mxu0 %v1913_v11  ;;  %4104 = vmatprep.subr.mxu1 %v1930_v20 }
 0x256   : > { %1980 = vmatprep.subr.mxu0 %v1911_v15  ;;  %4105 = vmatpush3.msra.mxu1 %v1930_v20  ;;  %v1739_v15 = vrot.slane %v1726_v36, %v5781_v47  ;;  %v1662_v36 = vld [vmem:[%s6087_s12 + $0x40] sm:$0xff] }
 0x257   : > { %1981 = vmatpush1.msra.mxu0 %v1910_v16  ;;  %4106 = vmatprep.subr.mxu1 %v1927_v53 }
 0x258   : > { %1982 = vmatprep.subr.mxu0 %v1908_v18  ;;  %4107 = vmatpush3.msra.mxu1 %v1927_v53 }
 0x259   : > { %1983 = vmatpush1.msra.mxu0 %v1907_v51  ;;  %4108 = vmatprep.subr.mxu1 %v1924_v23  ;;  %v1668_v51 = vld [vmem:[%s6106_s23 + $0x18] sm:$0xff] }
 0x25a   : > { %1984 = vmatprep.subr.mxu0 %v1905_v52  ;;  %4109 = vmatpush3.msra.mxu1 %v1924_v23 }
 0x25b   : > { %1985 = vmatpush1.msra.mxu0 %v1904_v7  ;;  %4110 = vmatprep.subr.mxu1 %v1921_v25 }
 0x25c   : > { %1986 = vmatprep.subr.mxu0 %v1902_v21  ;;  %4111 = vmatpush3.msra.mxu1 %v1921_v25  ;;  %v1952_v21 = vrot.slane %v6101_v10, %v5789_v49 }
 0x25d   : > { %1987 = vmatpush1.msra.mxu0 %v1901_v54  ;;  %4112 = vmatprep.subr.mxu1 %v1918_v29 }
 0x25e   : > { %1988 = vmatprep.subr.mxu0 %v1899_v48  ;;  %4113 = vmatpush3.msra.mxu1 %v1918_v29 }
 0x25f   : > { %1989 = vmatpush1.msra.mxu0 %v1898_v24  ;;  %4114 = vmatprep.subr.mxu1 %v1915_v17 }
 0x260   : > { %1990 = vmatprep.subr.mxu0 %v1896_v12  ;;  %4128 = vmatprep.mubr.f32.mxu1 %v6071_v28  ;;  %v1659_v12 = vld [vmem:[%s6087_s12 + $0x10] sm:$0xff]  ;;  %s6302_s12 = smov (%p1645_p3), 0  }
 0x261   : > { %1991 = vmatpush1.msra.mxu0 %v1895_v26  ;;  %4115 = vmatpush3.msra.mxu1 %v1915_v17 }
 0x262   : > { %2025 = vmatmul.mubr.f32.vlgmr.msra.gmra.mxu0 %v6071_v28  ;;  %4116 = vmatprep.subr.mxu1 %v1912_v31 }
 0x263   : > { %2030 = vmatprep.mubr.f32.mxu0 %v4950_v1  ;;  %4117 = vmatpush3.msra.mxu1 %v1912_v31  ;;  %v1900_v1 = vld [vmem:[#allocation8 + $0x28] sm:$0xff] }
 0x264   : > { %4118 = vmatprep.subr.mxu1 %v1909_v33  ;;  %v1671_v31 = vld [vmem:[%s6106_s23 + $0x48] sm:$0xff] }
 0x265   : > { %4119 = vmatpush3.msra.mxu1 %v1909_v33 }
 0x266   : > { %2031 = vmatmul.mubr.f32.gmra.mxu0 %v6075_v30  ;;  %4120 = vmatprep.subr.mxu1 %v1906_v22 }
 0x267   : > { %4121 = vmatpush3.msra.mxu1 %v1906_v22  ;;  %v1669_v22 = vld [vmem:[%s6106_s23 + $0x20] sm:$0xff] }
 0x268   : > { %4122 = vmatprep.subr.mxu1 %v1903_v34 }
 0x269   : > { %4123 = vmatpush3.msra.mxu1 %v1903_v34 }
 0x26a   : > { %4124 = vmatprep.subr.mxu1 %v1900_v1 }
 0x26b   : > { %4125 = vmatpush3.msra.mxu1 %v1900_v1 }
 0x26c   : > { %4126 = vmatprep.subr.mxu1 %v1897_v35 }
 0x26d   : > { %4127 = vmatpush3.msra.mxu1 %v1897_v35 }
 0x26e   : > { %4129 = vmatmul.mubr.f32.vlgmr.msra.gmra.mxu1 %v6075_v30 }
 0x302   : > { %v1809_v39 = vpop.f32.mrf.mxu0 }
 0x303   : > { %v1810_v41 = vadd.f32 %v1809_v39, %v1731_v38 }
 0x304   : > { %v1811_v32 = vpop.f32.mrf.mxu0 }
 0x305   : > { %v2112_v43 = vadd.f32 %v1810_v41, %v1657_v27  ;;  %v1812_v42 = vadd.f32 %v1811_v32, %v1735_v40 }
 0x306   : > { %v1815_v50 = vpop.f32.mrf.mxu0 }
 0x307   : > { %v3819_v55 = vmul.f32 -1.442695, %v2112_v43  ;;  %v1816_v57 = vadd.f32 %v1815_v50, %v1731_v38  ;;  %v2126_v62 = vadd.f32 %v1812_v42, %v1658_v56  ;;  %v1672_v43 = vld [vmem:[%s6106_s23 + $0x50] sm:$0xff] }
 0x308   : > { %v1817_v58 = vpop.f32.mrf.mxu0 }
 0x309   : > { %4499 = vpow2.f32 %v3819_v55  ;;  %v2113_v59 = vadd.f32 %v1816_v57, %v1660_v44  ;;  %v1818_v61 = vadd.f32 %v1817_v58, %v1735_v40  ;;  %v3821_v45 = vmul.f32 -1.442695, %v2126_v62 }
 0x30b   : > { %v3820_v13 = vmul.f32 -1.442695, %v2113_v59  ;;  %v2127_v63 = vadd.f32 %v1818_v61, %v1661_v60 }
 0x30c   : > { %v4095_v9 = vpop.f32.mrf.mxu1 }
 0x30d   : > { %4501 = vpow2.f32 %v3820_v13  ;;  %v3822_v3 = vmul.f32 -1.442695, %v2127_v63  ;;  %v1892_v24 = vadd.f32 %v4095_v9, %v1739_v15 }
 0x30e   : > { %4503 = vpow2.f32 %v3821_v45  ;;  %v1886_v16 = vpop.f32.mrf.mxu1 }
 0x30f   : > { %4505 = vpow2.f32 %v3822_v3  ;;  %v1887_v7 = vadd.f32 %v1886_v16, %v1739_v15 }
 0x316   : > { %v4500_v4 = vpop.eup %4499 }
 0x317   : > { %v2120_v5 = vadd.f32 1.0, %v4500_v4 }
 0x319   : > { %4507 = vrcp.f32 %v2120_v5 }
 0x31a   : > { %v4502_v6 = vpop.eup %4501 }
 0x31b   : > { %v2121_v8 = vadd.f32 1.0, %v4502_v6  ;;  %v4504_v11 = vpop.eup %4503 }
 0x31c   : > { %v4506_v18 = vpop.eup %4505  ;;  %v2134_v19 = vadd.f32 1.0, %v4504_v11 }
 0x31d   : > { %4509 = vrcp.f32 %v2121_v8  ;;  %v2135_v53 = vadd.f32 1.0, %v4506_v18 }
 0x31e   : > { %4511 = vrcp.f32 %v2134_v19  ;;  %v1670_v19 = vld [vmem:[%s6106_s23 + $0x28] sm:$0xff] }
 0x31f   : > { %4513 = vrcp.f32 %v2135_v53  ;;  %v1673_v53 = vld [vmem:[%s6106_s23 + $0x58] sm:$0xff] }
 0x322   : > { %v2026_v52 = vpop.f32.mrf.mxu0 }
 0x323   : > { %v2027_v20 = vadd.f32 %v2026_v52, %v1948_v2 }
 0x324   : > { %v2028_v54 = vpop.f32.mrf.mxu0 }
 0x325   : > { %v2154_v48 = vadd.f32 %v2027_v20, %v1668_v51  ;;  %v2029_v17 = vadd.f32 %v2028_v54, %v1952_v21 }
 0x326   : > { %v4508_v23 = vpop.eup %4507  ;;  %v2032_v25 = vpop.f32.mrf.mxu0 }
 0x327   : > { %v3823_v26 = vmul.f32 -1.442695, %v2154_v48  ;;  %v2140_v29 = vmul.f32 %v4508_v23, %v1887_v7  ;;  %v2033_v33 = vadd.f32 %v2032_v25, %v1948_v2  ;;  %v2168_v39 = vadd.f32 %v2029_v17, %v1669_v22 }
 0x328   : > { %v2034_v1 = vpop.f32.mrf.mxu0 }
 0x329   : > { %4515 = vpow2.f32 %v3823_v26  ;;  %v2142_v34 = vadd.f32 %v2140_v29, %v1659_v12  ;;  %v2155_v38 = vadd.f32 %v2033_v33, %v1671_v31  ;;  %v2035_v41 = vadd.f32 %v2034_v1, %v1952_v21  ;;  %v2237_v1 = vld [vmem:[#allocation15 + $0x78] sm:$0xff] (%p1645_p3) }
 0x32a   : > { %v4510_v35 = vpop.eup %4509  ;;  %v3825_v42 = vmul.f32 -1.442695, %v2168_v39  ;;  %4187 = vmatprep.subr.mxu1 (%p1645_p3), %v2237_v1  ;;  %v2234_v39 = vld [vmem:[#allocation15 + $0x60] sm:$0xff] (%p1645_p3) }
 0x32b   : > { %v2141_v27 = vmul.f32 %v4510_v35, %v1892_v24  ;;  %4517 = vtanh.f32 %v2142_v34  ;;  %v3824_v40 = vmul.f32 -1.442695, %v2155_v38  ;;  %v2169_v44 = vadd.f32 %v2035_v41, %v1672_v43  ;;  %v4512_v50 = vpop.eup %4511  ;;  %v2268_v35 = vld [vmem:[#allocation16 + $0x70] sm:$0xff] (%p1645_p3)  ;;  %4188 = vmatpush3.msra.mxu1 (%p1645_p3), %v2237_v1  ;;  %v2267_v38 = vld [vmem:[#allocation16 + $0x68] sm:$0xff] (%p1645_p3)  ;;  %v2233_v41 = vld [vmem:[#allocation15 + $0x58] sm:$0xff] (%p1645_p3) }
 0x32c   : > { %v4514_v56 = vpop.eup %4513  ;;  %v2146_v59 = vsub.f32 1.0, %v4512_v50  ;;  %v2150_v61 = vmul.f32 %v4512_v50, %v5956_v14  ;;  %v1956_v14 = vrot.slane %v6101_v10, %v5781_v47  ;;  %v2232_v43 = vld [vmem:[#allocation15 + $0x50] sm:$0xff] (%p1645_p3)  ;;  %v2262_v50 = vld [vmem:[#allocation16 + $0x40] sm:$0xff] (%p1645_p3) }
 0x32d   : > { %v2143_v32 = vadd.f32 %v2141_v27, %v1662_v36  ;;  %4519 = vpow2.f32 %v3824_v40  ;;  %v3826_v55 = vmul.f32 -1.442695, %v2169_v44  ;;  %v2147_v62 = vsub.f32 1.0, %v4514_v56  ;;  %v2236_v36 = vld [vmem:[#allocation15 + $0x70] sm:$0xff] (%p1645_p3)  ;;  %v2266_v27 = vld [vmem:[#allocation16 + $0x60] sm:$0xff] (%p1645_p3)  ;;  %v2265_v40 = vld [vmem:[#allocation16 + $0x58] sm:$0xff] (%p1645_p3) }
 0x32e   : > { %v2151_v45 = vmul.f32 %v4514_v56, %v6054_v37  ;;  %v4130_v6 = vpop.f32.mrf.mxu1  ;;  %4189 = vmatprep.subr.mxu1 (%p1645_p3), %v2236_v36  ;;  %v2231_v44 = vld [vmem:[#allocation15 + $0x48] sm:$0xff] (%p1645_p3)  ;;  %v2261_v56 = vld [vmem:[#allocation16 + $0x38] sm:$0xff] (%p1645_p3) }
 0x32f   : > { %4521 = vtanh.f32 %v2143_v32  ;;  %v2109_v7 = vadd.f32 %v4130_v6, %v1956_v14  ;;  %4190 = vmatpush3.msra.mxu1 (%p1645_p3), %v2236_v36  ;;  %v2264_v32 = vld [vmem:[#allocation16 + $0x50] sm:$0xff] (%p1645_p3)  ;;  %v2223_v6 = vld [vmem:[#allocation15 + $0x8] sm:$0xff] (%p1645_p3) }
 0x330   : > { %4523 = vpow2.f32 %v3825_v42  ;;  %v2103_v15 = vpop.f32.mrf.mxu1  ;;  %v2263_v42 = vld [vmem:[#allocation16 + $0x48] sm:$0xff] (%p1645_p3) }
 0x331   : > { %4525 = vpow2.f32 %v3826_v55  ;;  %v2104_v2 = vadd.f32 %v2103_v15, %v1956_v14  ;;  %v2230_v55 = vld [vmem:[#allocation15 + $0x40] sm:$0xff] (%p1645_p3) }
 0x336   : > { %v4516_v57 = vpop.eup %4515 }
 0x337   : > { %v2162_v58 = vadd.f32 1.0, %v4516_v57  ;;  %v2229_v57 = vld [vmem:[#allocation15 + $0x38] sm:$0xff] (%p1645_p3) }
 0x338   : > { %v4518_v60 = vpop.eup %4517 }
 0x339   : > { %4527 = vrcp.f32 %v2162_v58  ;;  %v2148_v13 = vmul.f32 %v4518_v60, %v2146_v59  ;;  %v2260_v58 = vld [vmem:[#allocation16 + $0x30] sm:$0xff] (%p1645_p3)  ;;  %v2259_v60 = vld [vmem:[#allocation16 + $0x28] sm:$0xff] (%p1645_p3) }
 0x33a   : > { %v4520_v63 = vpop.eup %4519  ;;  %v2228_v59 = vld [vmem:[#allocation15 + $0x30] sm:$0xff] (%p1645_p3) }
 0x33b   : > { %v2152_v3 = vadd.f32 %v2150_v61, %v2148_v13  ;;  %v2163_v5 = vadd.f32 1.0, %v4520_v63  ;;  %v2227_v61 = vld [vmem:[#allocation15 + $0x28] sm:$0xff] (%p1645_p3)  ;;  %v2226_v13 = vld [vmem:[#allocation15 + $0x20] sm:$0xff] (%p1645_p3)  ;;  %v2257_v63 = vld [vmem:[#allocation16 + $0x18] sm:$0xff] (%p1645_p3) }
 0x33c   : > { %v4522_v4 = vpop.eup %4521 }
 0x33d   : > { %v2149_v8 = vmul.f32 %v4522_v4, %v2147_v62  ;;  %2196 = vst [vmem:[#allocation6] sm:$0xff] %v2152_v3  ;;  %2201 = vst [vmem:[%s2200_s1] sm:$0xff] %v2152_v3  ;;  %4529 = vrcp.f32 %v2163_v5  ;;  %v4524_v11 = vpop.eup %4523  ;;  %v2258_v62 = vld [vmem:[#allocation16 + $0x20] sm:$0xff] (%p1645_p3)  ;;  %v2256_v3 = vld [vmem:[#allocation16 + $0x10] sm:$0xff] (%p1645_p3) }
 0x33e   : > { %v2176_v37 = vadd.f32 1.0, %v4524_v11  ;;  %v4526_v16 = vpop.eup %4525  ;;  %v2224_v4 = vld [vmem:[#allocation15 + $0x10] sm:$0xff] (%p1645_p3)  ;;  %v2255_v5 = vld [vmem:[#allocation16 + $0x8] sm:$0xff] (%p1645_p3) }
 0x33f   : > { %v2153_v9 = vadd.f32 %v2151_v45, %v2149_v8  ;;  %v2177_v52 = vadd.f32 1.0, %v4526_v16  ;;  %v2225_v45 = vld [vmem:[#allocation15 + $0x18] sm:$0xff] (%p1645_p3)  ;;  %v2254_v8 = vld [vmem:[#allocation16] sm:$0xff] (%p1645_p3) }
 0x340   : > { %4531 = vrcp.f32 %v2176_v37 }
 0x341   : > { %2197 = vst [vmem:[#allocation6 + $0x8] sm:$0xff] %v2153_v9  ;;  %2202 = vst [vmem:[%s2200_s1 + $0x8] sm:$0xff] %v2153_v9  ;;  %v2222_v9 = vld [vmem:[#allocation15] sm:$0xff] (%p1645_p3) }
 0x346   : > { %v4528_v18 = vpop.eup %4527 }
 0x347   : > { %v2182_v51 = vmul.f32 %v4528_v18, %v2104_v2 }
 0x348   :  { %v2206_v11 = vld [vmem:[#allocation4] sm:$0xff] (%p1645_p3)  ;;  %v2207_v37 = vld [vmem:[#allocation4 + $0x8] sm:$0xff] (%p1645_p3)  ;;  %v2208_v16 = vld [vmem:[#allocation4 + $0x10] sm:$0xff] (%p1645_p3) }
 0x349   : > { %v2184_v20 = vadd.f32 %v2182_v51, %v1670_v19  ;;  %4219 = vmatprep.mubr.f32.mxu1 (%p1645_p3), %v2206_v11  ;;  %v2209_v19 = vld [vmem:[#allocation4 + $0x18] sm:$0xff] (%p1645_p3)  ;;  %v2220_v1 = vld [vmem:[#allocation4 + $0x70] sm:$0xff] (%p1645_p3) }
 0x34a   : > { %v4530_v21 = vpop.eup %4529  ;;  %v2221_v36 = vld [vmem:[#allocation4 + $0x78] sm:$0xff] (%p1645_p3) }
 0x34b   : > { %4533 = vtanh.f32 %v2184_v20  ;;  %v2183_v10 = vmul.f32 %v4530_v21, %v2109_v7  ;;  %v2211_v7 = vld [vmem:[#allocation4 + $0x28] sm:$0xff] (%p1645_p3) }
 0x34c   : > { %4535 = vrcp.f32 %v2177_v52  ;;  %v2210_v52 = vld [vmem:[#allocation4 + $0x20] sm:$0xff] (%p1645_p3) }
 0x34d   : > { %v2185_v54 = vadd.f32 %v2183_v10, %v1673_v53  ;;  %v4532_v48 = vpop.eup %4531  ;;  %v2212_v53 = vld [vmem:[#allocation4 + $0x30] sm:$0xff] (%p1645_p3) }
 0x34e   : > { %v2188_v23 = vsub.f32 1.0, %v4532_v48  ;;  %v2192_v25 = vmul.f32 %v4532_v48, %v6071_v28  ;;  %v2269_v28 = vld [vmem:[#allocation16 + $0x78] sm:$0xff] (%p1645_p3) }
 0x34f   : > { %4537 = vtanh.f32 %v2185_v54  ;;  %4131 = vmatprep.subr.mxu0 (%p1645_p3), %v2269_v28  ;;  %v2213_v54 = vld [vmem:[#allocation4 + $0x38] sm:$0xff] (%p1645_p3) }
 0x350   :  { %4132 = vmatpush3.msra.mxu0 (%p1645_p3), %v2269_v28 }
 0x351   :  { %4133 = vmatprep.subr.mxu0 (%p1645_p3), %v2268_v35 }
 0x352   :  { %4134 = vmatpush3.msra.mxu0 (%p1645_p3), %v2268_v35 }
 0x353   :  { %4135 = vmatprep.subr.mxu0 (%p1645_p3), %v2267_v38 }
 0x354   :  { %4136 = vmatpush3.msra.mxu0 (%p1645_p3), %v2267_v38  ;;  %v6133_v38 = vld [vmem:[%s6649_s10] sm:$0x7] (%p1645_p3) }
 0x355   :  { %4137 = vmatprep.subr.mxu0 (%p1645_p3), %v2266_v27 }
 0x356   :  { %4138 = vmatpush3.msra.mxu0 (%p1645_p3), %v2266_v27 }
 0x357   :  { %4139 = vmatprep.subr.mxu0 (%p1645_p3), %v2265_v40 }
 0x358   : > { %v4534_v24 = vpop.eup %4533  ;;  %4140 = vmatpush3.msra.mxu0 (%p1645_p3), %v2265_v40  ;;  %v6140_v40 = vld [vmem:[#allocation18] ss:$0 sm:$0xff] (%p1645_p3) }
 0x359   : > { %v4536_v12 = vpop.eup %4535  ;;  %v2190_v26 = vmul.f32 %v4534_v24, %v2188_v23  ;;  %4141 = vmatprep.subr.mxu0 (%p1645_p3), %v2264_v32  ;;  %v2214_v23 = vld [vmem:[#allocation4 + $0x40] sm:$0xff] (%p1645_p3) }
 0x35a   : > { %v2189_v17 = vsub.f32 1.0, %v4536_v12  ;;  %v2193_v33 = vmul.f32 %v4536_v12, %v6075_v30  ;;  %v2235_v30 = vld [vmem:[#allocation15 + $0x68] sm:$0xff] (%p1645_p3)  ;;  %4142 = vmatpush3.msra.mxu0 (%p1645_p3), %v2264_v32  ;;  %v2215_v12 = vld [vmem:[#allocation4 + $0x48] sm:$0xff] (%p1645_p3) }
 0x35b   : > { %v2194_v29 = vadd.f32 %v2192_v25, %v2190_v26  ;;  %4191 = vmatprep.subr.mxu1 (%p1645_p3), %v2235_v30  ;;  %4143 = vmatprep.subr.mxu0 (%p1645_p3), %v2263_v42  ;;  %v2216_v26 = vld [vmem:[#allocation4 + $0x50] sm:$0xff] (%p1645_p3)  ;;  %v2584_v32 = vld [vmem:[%s6650_s6 + $0x8] sm:$0xff] (%p1645_p3) }
 0x35c   : > { %v4538_v31 = vpop.eup %4537  ;;  %4192 = vmatpush3.msra.mxu1 (%p1645_p3), %v2235_v30  ;;  %4144 = vmatpush3.msra.mxu0 (%p1645_p3), %v2263_v42  ;;  %v6138_v30 = vld [vmem:[%s6649_s10 + $0x3] sm:$0x7] (%p1645_p3) }
 0x35d   : > { %2198 = vst [vmem:[#allocation7 + $0x8] sm:$0xff] %v2194_v29  ;;  %2204 = vst [vmem:[%s2203_s5] sm:$0xff] %v2194_v29  ;;  %v2191_v22 = vmul.f32 %v4538_v31, %v2189_v17  ;;  %1647 = sbr.rel (!%p1645_p3) target bundleno = 545 (0x221), region = 172  ;;  %4193 = vmatprep.subr.mxu1 (%p1645_p3), %v2234_v39  ;;  %4145 = vmatprep.subr.mxu0 (%p1645_p3), %v2262_v50  ;;  %v2217_v17 = vld [vmem:[#allocation4 + $0x58] sm:$0xff] (%p1645_p3) }
 0x35e   :  { %4194 = vmatpush3.msra.mxu1 (%p1645_p3), %v2234_v39  ;;  %4146 = vmatpush3.msra.mxu0 (%p1645_p3), %v2262_v50 }
 0x35f   : > { %v2195_v34 = vadd.f32 %v2193_v33, %v2191_v22  ;;  %4195 = vmatprep.subr.mxu1 (%p1645_p3), %v2233_v41  ;;  %4147 = vmatprep.subr.mxu0 (%p1645_p3), %v2261_v56  ;;  %v2218_v33 = vld [vmem:[#allocation4 + $0x60] sm:$0xff] (%p1645_p3) }
 0x360   :  { %4196 = vmatpush3.msra.mxu1 (%p1645_p3), %v2233_v41  ;;  %4148 = vmatpush3.msra.mxu0 (%p1645_p3), %v2261_v56 }
 0x361   : > { %2199 = vst [vmem:[#allocation7] sm:$0xff] %v2195_v34  ;;  %2205 = vst [vmem:[%s2203_s5 + $0x8] sm:$0xff] %v2195_v34  ;;  %4197 = vmatprep.subr.mxu1 (%p1645_p3), %v2232_v43  ;;  %4149 = vmatprep.subr.mxu0 (%p1645_p3), %v2260_v58  ;;  %v2219_v34 = vld [vmem:[#allocation4 + $0x68] sm:$0xff] (%p1645_p3) }
 0x362   :  { %4198 = vmatpush3.msra.mxu1 %v2232_v43  ;;  %4150 = vmatpush3.msra.mxu0 %v2260_v58 }
 0x363   :  { %4199 = vmatprep.subr.mxu1 %v2231_v44  ;;  %4151 = vmatprep.subr.mxu0 %v2259_v60 }
 0x364   :  { %4200 = vmatpush3.msra.mxu1 %v2231_v44  ;;  %4152 = vmatpush3.msra.mxu0 %v2259_v60 }
 0x365   :  { %4201 = vmatprep.subr.mxu1 %v2230_v55  ;;  %4153 = vmatprep.subr.mxu0 %v2258_v62 }
 0x366   :  { %4202 = vmatpush3.msra.mxu1 %v2230_v55  ;;  %4154 = vmatpush3.msra.mxu0 %v2258_v62  ;;  %v2583_v55 = vld [vmem:[%s6650_s6] sm:$0xff] }
 0x367   :  { %4203 = vmatprep.subr.mxu1 %v2229_v57  ;;  %4155 = vmatprep.subr.mxu0 %v2257_v63 }
 0x368   :  { %4204 = vmatpush3.msra.mxu1 %v2229_v57  ;;  %4156 = vmatpush3.msra.mxu0 %v2257_v63  ;;  %v2238_v14 = vld [vmem:[#allocation5] sm:$0xff]  ;;  %v2239_v15 = vld [vmem:[#allocation5 + $0x8] sm:$0xff]  ;;  %v2240_v2 = vld [vmem:[#allocation5 + $0x10] sm:$0xff] }
 0x369   :  { %4205 = vmatprep.subr.mxu1 %v2228_v59  ;;  %4157 = vmatprep.subr.mxu0 %v2256_v3  ;;  %v2241_v18 = vld [vmem:[#allocation5 + $0x18] sm:$0xff]  ;;  %v2242_v51 = vld [vmem:[#allocation5 + $0x20] sm:$0xff]  ;;  %v2243_v20 = vld [vmem:[#allocation5 + $0x28] sm:$0xff] }
 0x36a   :  { %4206 = vmatpush3.msra.mxu1 %v2228_v59  ;;  %4158 = vmatpush3.msra.mxu0 %v2256_v3  ;;  %v2244_v21 = vld [vmem:[#allocation5 + $0x30] sm:$0xff]  ;;  %v2245_v10 = vld [vmem:[#allocation5 + $0x38] sm:$0xff]  ;;  %v2246_v48 = vld [vmem:[#allocation5 + $0x40] sm:$0xff] }
 0x36b   :  { %4207 = vmatprep.subr.mxu1 %v2227_v61  ;;  %4159 = vmatprep.subr.mxu0 %v2255_v5  ;;  %v2247_v24 = vld [vmem:[#allocation5 + $0x48] sm:$0xff]  ;;  %v2248_v25 = vld [vmem:[#allocation5 + $0x50] sm:$0xff]  ;;  %v2249_v29 = vld [vmem:[#allocation5 + $0x58] sm:$0xff] }
 0x36c   :  { %4208 = vmatpush3.msra.mxu1 %v2227_v61  ;;  %4160 = vmatpush3.msra.mxu0 %v2255_v5  ;;  %v2250_v31 = vld [vmem:[#allocation5 + $0x60] sm:$0xff]  ;;  %v2251_v22 = vld [vmem:[#allocation5 + $0x68] sm:$0xff]  ;;  %v2252_v28 = vld [vmem:[#allocation5 + $0x70] sm:$0xff] }
 0x36d   :  { %4209 = vmatprep.subr.mxu1 %v2226_v13  ;;  %4161 = vmatprep.subr.mxu0 %v2254_v8  ;;  %v2253_v35 = vld [vmem:[#allocation5 + $0x78] sm:$0xff]  ;;  %v2585_v5 = vld [vmem:[%s6650_s6 + $0x10] sm:$0xff] }
 0x36e   :  { %4210 = vmatpush3.msra.mxu1 %v2226_v13  ;;  %4162 = vmatpush3.msra.mxu0 %v2254_v8  ;;  %v2586_v61 = vld [vmem:[%s6650_s6 + $0x18] sm:$0xff] }
 0x36f   :  { %4211 = vmatprep.subr.mxu1 %v2225_v45  ;;  %4163 = vmatprep.mubr.f32.mxu0 %v2238_v14 }
 0x370   :  { %4212 = vmatpush3.msra.mxu1 %v2225_v45  ;;  %4164 = vmatmul.mubr.f32.vlgmr.msra.gmra.mxu0 %v2239_v15 }
 0x371   :  { %4213 = vmatprep.subr.mxu1 %v2224_v4  ;;  %4166 = vmatprep.mubr.f32.mxu0 %v2240_v2 }
 0x372   :  { %4214 = vmatpush3.msra.mxu1 %v2224_v4 }
 0x373   :  { %4215 = vmatprep.subr.mxu1 %v2223_v6 }
 0x374   :  { %4216 = vmatpush3.msra.mxu1 %v2223_v6  ;;  %4167 = vmatmul.mubr.f32.gmra.mxu0 %v2241_v18 }
 0x375   :  { %4217 = vmatprep.subr.mxu1 %v2222_v9  ;;  %4169 = vmatprep.mubr.f32.mxu0 %v2242_v51 }
 0x376   :  { %4218 = vmatpush3.msra.mxu1 %v2222_v9 }
 0x377   :  { %4220 = vmatmul.mubr.f32.vlgmr.msra.gmra.mxu1 %v2207_v37  ;;  %v2588_v37 = vld [vmem:[%s6650_s6 + $0x28] sm:$0xff] }
 0x378   :  { %4222 = vmatprep.mubr.f32.mxu1 %v2208_v16  ;;  %4170 = vmatmul.mubr.f32.gmra.mxu0 %v2243_v20  ;;  %v2587_v20 = vld [vmem:[%s6650_s6 + $0x20] sm:$0xff] }
 0x379   :  { %4172 = vmatprep.mubr.f32.mxu0 %v2244_v21 }
 0x37b   :  { %4223 = vmatmul.mubr.f32.gmra.mxu1 %v2209_v19 }
 0x37c   :  { %4225 = vmatprep.mubr.f32.mxu1 %v2210_v52  ;;  %4173 = vmatmul.mubr.f32.gmra.mxu0 %v2245_v10 }
 0x37d   :  { %4175 = vmatprep.mubr.f32.mxu0 %v2246_v48 }
 0x37f   :  { %4226 = vmatmul.mubr.f32.gmra.mxu1 %v2211_v7 }
 0x380   :  { %4228 = vmatprep.mubr.f32.mxu1 %v2212_v53  ;;  %4176 = vmatmul.mubr.f32.gmra.mxu0 %v2247_v24 }
 0x381   :  { %4178 = vmatprep.mubr.f32.mxu0 %v2248_v25 }
 0x383   :  { %4229 = vmatmul.mubr.f32.gmra.mxu1 %v2213_v54 }
 0x384   :  { %4231 = vmatprep.mubr.f32.mxu1 %v2214_v23  ;;  %4179 = vmatmul.mubr.f32.gmra.mxu0 %v2249_v29  ;;  %v2590_v23 = vld [vmem:[%s6650_s6 + $0x38] sm:$0xff] }
 0x385   :  { %4181 = vmatprep.mubr.f32.mxu0 %v2250_v31  ;;  %v2589_v31 = vld [vmem:[%s6650_s6 + $0x30] sm:$0xff] }
 0x387   :  { %4232 = vmatmul.mubr.f32.gmra.mxu1 %v2215_v12 }
 0x388   :  { %4234 = vmatprep.mubr.f32.mxu1 %v2216_v26  ;;  %4182 = vmatmul.mubr.f32.gmra.mxu0 %v2251_v22 }
 0x389   :  { %4184 = vmatprep.mubr.f32.mxu0 %v2252_v28 }
 0x38b   :  { %4235 = vmatmul.mubr.f32.gmra.mxu1 %v2217_v17 }
 0x38c   :  { %4237 = vmatprep.mubr.f32.mxu1 %v2218_v33  ;;  %4185 = vmatmul.mubr.f32.gmra.mxu0 %v2253_v35 }
 0x38f   :  { %4238 = vmatmul.mubr.f32.gmra.mxu1 %v2219_v34 }
 0x390   :  { %4240 = vmatprep.mubr.f32.mxu1 %v2220_v1 }
 0x393   :  { %4241 = vmatmul.mubr.f32.gmra.mxu1 %v2221_v36  ;;  %v2592_v36 = vld [vmem:[%s6650_s6 + $0x48] sm:$0xff] }
 0x430   :  { %v4165_v27 = vpop.f32.mrf.mxu0 }
 0x432   :  { %v2336_v43 = vpop.f32.mrf.mxu0 }
 0x434   :  { %v4168_v56 = vpop.f32.mrf.mxu0 }
 0x436   :  { %v2346_v62 = vpop.f32.mrf.mxu0 }
 0x437   :  { %v4221_v39 = vpop.f32.mrf.mxu1 }
 0x438   :  { %v2487_v41 = vadd.f32 %v4221_v39, %v4165_v27  ;;  %v4171_v6 = vpop.f32.mrf.mxu0 }
 0x439   :  { %v2481_v42 = vpop.f32.mrf.mxu1 }
 0x43a   :  { %v2568_v44 = vadd.f32 %v6140_v40, %v2487_v41  ;;  %v2482_v50 = vadd.f32 %v2481_v42, %v2336_v43  ;;  %v2356_v2 = vpop.f32.mrf.mxu0 }
 0x43b   :  { %v4224_v57 = vpop.f32.mrf.mxu1 }
 0x43c   :  { %v2600_v58 = vadd.f32 %v2584_v32, %v2568_v44  ;;  %v2567_v59 = vadd.f32 %v6140_v40, %v2482_v50  ;;  %v2497_v60 = vadd.f32 %v4224_v57, %v4168_v56  ;;  %v4174_v7 = vpop.f32.mrf.mxu0  ;;  %v2591_v44 = vld [vmem:[%s6650_s6 + $0x40] sm:$0xff] }
 0x43d   :  { %v2491_v13 = vpop.f32.mrf.mxu1 }
 0x43e   :  { %vm2616_vm1 = vcmp.gt.f32.partialorder %v2600_v58, 0.0  ;;  %v2599_v63 = vadd.f32 %v2583_v55, %v2567_v59  ;;  %v2570_v45 = vadd.f32 %v6140_v40, %v2497_v60  ;;  %v2492_v3 = vadd.f32 %v2491_v13, %v2346_v62  ;;  %v2366_v24 = vpop.f32.mrf.mxu0  ;;  %v2594_v60 = vld [vmem:[%s6650_s6 + $0x58] sm:$0xff] }
 0x43f   :  { %v3829_v4 = vsel %vm2616_vm1, 1.0, %v4948_v0  ;;  %v4227_v8 = vpop.f32.mrf.mxu1 }
 0x440   :  { %2665 = vst.msk [vmem:[%s6631_s22 + $0x8] sm:$0xff] %vm2663_vm0, %v3829_v4  ;;  %vm2615_vm2 = vcmp.gt.f32.partialorder %v2599_v63, 0.0  ;;  %v2602_v9 = vadd.f32 %v2586_v61, %v2570_v45  ;;  %v2569_v14 = vadd.f32 %v6140_v40, %v2492_v3  ;;  %v2507_v11 = vadd.f32 %v4227_v8, %v4171_v6  ;;  %v4177_v33 = vpop.f32.mrf.mxu0  ;;  %v2593_v4 = vld [vmem:[%s6650_s6 + $0x50] sm:$0xff] }
 0x441   :  { %v3828_v15 = vsel %vm2615_vm2, 1.0, %v4948_v0  ;;  %v2501_v16 = vpop.f32.mrf.mxu1 }
 0x442   :  { %2664 = vst.msk [vmem:[%s6631_s22] sm:$0xff] %vm2663_vm0, %v3828_v15  ;;  %vm2618_vm3 = vcmp.gt.f32.partialorder %v2602_v9, 0.0  ;;  %v2601_v18 = vadd.f32 %v2585_v5, %v2569_v14  ;;  %v2572_v19 = vadd.f32 %v6140_v40, %v2507_v11  ;;  %v2502_v51 = vadd.f32 %v2501_v16, %v2356_v2  ;;  %v2376_v27 = vpop.f32.mrf.mxu0  ;;  %v2596_v15 = vld [vmem:[%s6650_s6 + $0x68] sm:$0xff] }
 0x443   :  { %v3831_v52 = vsel %vm2618_vm3, 1.0, %v4948_v0  ;;  %v4230_v21 = vpop.f32.mrf.mxu1 }
 0x444   :  { %2667 = vst.msk [vmem:[%s6631_s22 + $0x18] sm:$0xff] %vm2663_vm0, %v3831_v52  ;;  %vm2617_vm4 = vcmp.gt.f32.partialorder %v2601_v18, 0.0  ;;  %v2604_v53 = vadd.f32 %v2588_v37, %v2572_v19  ;;  %v2571_v10 = vadd.f32 %v6140_v40, %v2502_v51  ;;  %v2517_v54 = vadd.f32 %v4230_v21, %v4174_v7  ;;  %v4180_v50 = vpop.f32.mrf.mxu0  ;;  %v2595_v52 = vld [vmem:[%s6650_s6 + $0x60] sm:$0xff] }
 0x445   :  { %v3830_v48 = vsel %vm2617_vm4, 1.0, %v4948_v0  ;;  %v2511_v12 = vpop.f32.mrf.mxu1 }
 0x446   :  { %2666 = vst.msk [vmem:[%s6631_s22 + $0x10] sm:$0xff] %vm2663_vm0, %v3830_v48  ;;  %vm2620_vm5 = vcmp.gt.f32.partialorder %v2604_v53, 0.0  ;;  %v2603_v25 = vadd.f32 %v2587_v20, %v2571_v10  ;;  %v2574_v26 = vadd.f32 %v6140_v40, %v2517_v54  ;;  %v2512_v29 = vadd.f32 %v2511_v12, %v2366_v24  ;;  %v2386_v61 = vpop.f32.mrf.mxu0  ;;  %v2598_v48 = vld [vmem:[%s6650_s6 + $0x78] sm:$0xff] }
 0x447   :  { %v3833_v17 = vsel %vm2620_vm5, 1.0, %v4948_v0  ;;  %v4233_v22 = vpop.f32.mrf.mxu1 }
 0x448   :  { %2669 = vst.msk [vmem:[%s6631_s22 + $0x28] sm:$0xff] %vm2663_vm0, %v3833_v17  ;;  %vm2619_vm6 = vcmp.gt.f32.partialorder %v2603_v25, 0.0  ;;  %v2606_v34 = vadd.f32 %v2590_v23, %v2574_v26  ;;  %v2573_v28 = vadd.f32 %v6140_v40, %v2512_v29  ;;  %v2527_v1 = vadd.f32 %v4233_v22, %v4177_v33  ;;  %v4183_v5 = vpop.f32.mrf.mxu0  ;;  %v2597_v17 = vld [vmem:[%s6650_s6 + $0x70] sm:$0xff] }
 0x449   :  { %v3832_v35 = vsel %vm2619_vm6, 1.0, %v4948_v0  ;;  %v2521_v39 = vpop.f32.mrf.mxu1 }
 0x44a   :  { %2668 = vst.msk [vmem:[%s6631_s22 + $0x20] sm:$0xff] %vm2663_vm0, %v3832_v35  ;;  %vm2622_vm7 = vcmp.gt.f32.partialorder %v2606_v34, 0.0  ;;  %v2605_v41 = vadd.f32 %v2589_v31, %v2573_v28  ;;  %v2576_v32 = vadd.f32 %v6140_v40, %v2527_v1  ;;  %v2522_v43 = vadd.f32 %v2521_v39, %v2376_v27  ;;  %v2396_v37 = vpop.f32.mrf.mxu0 }
 0x44b   :  { %v3835_v42 = vsel %vm2622_vm7, 1.0, %v4948_v0  ;;  %v4236_v55 = vpop.f32.mrf.mxu1  ;;  %v6288_v35 = vmov -1000000.0   ;;  %v6292_v27 = vmov -1000000.0   ;;  %v6294_v39 = vmov 0.0  }
 0x44c   :  { %2671 = vst.msk [vmem:[%s6631_s22 + $0x38] sm:$0xff] %vm2663_vm0, %v3835_v42  ;;  %vm2621_vm8 = vcmp.gt.f32.partialorder %v2605_v41, 0.0  ;;  %v2608_v56 = vadd.f32 %v2592_v36, %v2576_v32  ;;  %v2575_v57 = vadd.f32 %v6140_v40, %v2522_v43  ;;  %v2537_v58 = vadd.f32 %v4236_v55, %v4180_v50  ;;  %v4186_v20 = vpop.f32.mrf.mxu0 }
 0x44d   :  { %v3834_v59 = vsel %vm2621_vm8, 1.0, %v4948_v0  ;;  %v2531_v62 = vpop.f32.mrf.mxu1  ;;  %v6290_v36 = vmov -1000000.0   ;;  %v6296_v41 = vmov 0.0   ;;  %v6298_v32 = vmov 0.0  }
 0x44e   :  { %2670 = vst.msk [vmem:[%s6631_s22 + $0x30] sm:$0xff] %vm2663_vm0, %v3834_v59  ;;  %vm2624_vm9 = vcmp.gt.f32.partialorder %v2608_v56, 0.0  ;;  %v2607_v13 = vadd.f32 %v2591_v44, %v2575_v57  ;;  %v2578_v63 = vadd.f32 %v6140_v40, %v2537_v58  ;;  %v2532_v45 = vadd.f32 %v2531_v62, %v2386_v61  ;;  %v2406_v23 = vpop.f32.mrf.mxu0 }
 0x44f   :  { %v3837_v3 = vsel %vm2624_vm9, 1.0, %v4948_v0  ;;  %v4239_v6 = vpop.f32.mrf.mxu1  ;;  %v6300_v43 = vmov 0.0  }
 0x450   :  { %2673 = vst.msk [vmem:[%s6631_s22 + $0x48] sm:$0xff] %vm2663_vm0, %v3837_v3  ;;  %vm2623_vm10 = vcmp.gt.f32.partialorder %v2607_v13, 0.0  ;;  %v2610_v8 = vadd.f32 %v2594_v60, %v2578_v63  ;;  %v2577_v9 = vadd.f32 %v6140_v40, %v2532_v45  ;;  %v2547_v14 = vadd.f32 %v4239_v6, %v4183_v5 }
 0x451   :  { %v3836_v11 = vsel %vm2623_vm10, 1.0, %v4948_v0  ;;  %v2541_v2 = vpop.f32.mrf.mxu1 }
 0x452   :  { %2672 = vst.msk [vmem:[%s6631_s22 + $0x40] sm:$0xff] %vm2663_vm0, %v3836_v11  ;;  %vm2626_vm11 = vcmp.gt.f32.partialorder %v2610_v8, 0.0  ;;  %v2609_v16 = vadd.f32 %v2593_v4, %v2577_v9  ;;  %v2580_v18 = vadd.f32 %v6140_v40, %v2547_v14  ;;  %v2542_v19 = vadd.f32 %v2541_v2, %v2396_v37 }
 0x453   :  { %v3839_v51 = vsel %vm2626_vm11, 1.0, %v4948_v0  ;;  %v4242_v7 = vpop.f32.mrf.mxu1 }
 0x454   :  { %2675 = vst.msk [vmem:[%s6631_s22 + $0x58] sm:$0xff] %vm2663_vm0, %v3839_v51  ;;  %vm2625_vm12 = vcmp.gt.f32.partialorder %v2609_v16, 0.0  ;;  %v2612_v21 = vadd.f32 %v2596_v15, %v2580_v18  ;;  %v2579_v53 = vadd.f32 %v6140_v40, %v2542_v19  ;;  %v2557_v10 = vadd.f32 %v4242_v7, %v4186_v20 }
 0x455   :  { %v3838_v54 = vsel %vm2625_vm12, 1.0, %v4948_v0  ;;  %v2551_v24 = vpop.f32.mrf.mxu1 }
 0x456   :  { %2674 = vst.msk [vmem:[%s6631_s22 + $0x50] sm:$0xff] %vm2663_vm0, %v3838_v54  ;;  %vm2628_vm13 = vcmp.gt.f32.partialorder %v2612_v21, 0.0  ;;  %v2611_v12 = vadd.f32 %v2595_v52, %v2579_v53  ;;  %v2582_v25 = vadd.f32 %v6140_v40, %v2557_v10  ;;  %v2552_v26 = vadd.f32 %v2551_v24, %v2406_v23 }
 0x457   :  { %v3841_v29 = vsel %vm2628_vm13, 1.0, %v4948_v0 }
 0x458   :  { %2677 = vst.msk [vmem:[%s6631_s22 + $0x68] sm:$0xff] %vm2663_vm0, %v3841_v29  ;;  %vm2627_vm14 = vcmp.gt.f32.partialorder %v2611_v12, 0.0  ;;  %v2614_v31 = vadd.f32 %v2598_v48, %v2582_v25  ;;  %v2581_v33 = vadd.f32 %v6140_v40, %v2552_v26  ;;  %v6286_v40 = vmov -1000000.0  }
 0x459   :  { %v3840_v22 = vsel %vm2627_vm14, 1.0, %v4948_v0 }
 0x45a   :  { %2676 = vst.msk [vmem:[%s6631_s22 + $0x60] sm:$0xff] %vm2663_vm0, %v3840_v22  ;;  %vm2630_vm15 = vcmp.gt.f32.partialorder %v2614_v31, 0.0  ;;  %v2613_v34 = vadd.f32 %v2597_v17, %v2581_v33 }
 0x45b   :  { %v3843_v28 = vsel %vm2630_vm15, 1.0, %v4948_v0 }
 0x45c   :  { %2679 = vst.msk [vmem:[%s6631_s22 + $0x78] sm:$0xff] %vm2663_vm0, %v3843_v28  ;;  %vm2629_vm1 = vcmp.gt.f32.partialorder %v2613_v34, 0.0 }
 0x45d   :  { %v3842_v1 = vsel %vm2629_vm1, 1.0, %v4948_v0 }
 0x45e   :  { %2678 = vst.msk [vmem:[%s6631_s22 + $0x70] sm:$0xff] %vm2663_vm0, %v3842_v1 }
 0x45f LB: > { %v4541_v42 = vld [vmem:[%s6620_s11 + $0xac] ss:$12 sps:$4 sm:$0xff]   ;;  %v4543_v44 = vld [vmem:[%s6620_s11 + $0xa8] ss:$12 sps:$4 sm:$0xff]   ;;  %v4951_v50 = vmov 0.0   ;;  %v4952_v55 = vmov 0   ;;  %v2803_v16 = vpack.c.bf16 %v4921_v32, %v4925_v43  ;;  %s4929_s12 = sphi %s6302_s12, %s2687_s12   ;;  %v4925_v43 = vphi %v6300_v43, %v6507_v43   ;;  %v4921_v32 = vphi %v6298_v32, %v3368_v32   ;;  %v4917_v41 = vphi %v6296_v41, %v3409_v41   ;;  %v4913_v39 = vphi %v6294_v39, %v3410_v39   ;;  %v4909_v27 = vphi %v6292_v27, %v6659_v27   ;;  %v4905_v36 = vphi %v6290_v36, %v6658_v36   ;;  %v4901_v35 = vphi %v6288_v35, %v6657_v35   ;;  %v4897_v40 = vphi %v6286_v40, %v6656_v40  }
 0x460   : > { %4243 = vmatprep.subr.bf16.mxu1 %v4951_v50  ;;  %3013 = vmatprep.mubr.bf16.mxu0 %v4952_v55  ;;  %v4544_v56 = vld [vmem:[%s6620_s11 + $0x94] ss:$12 sps:$4 sm:$0xff]   ;;  %vm4953_vm0 = vmmov 0   ;;  %v4546_v57 = vld [vmem:[%s6620_s11 + $0x90] ss:$12 sps:$4 sm:$0xff]   ;;  %s2696_s29 = ssub.s32 7, %s4929_s12 }
 0x461   : > { %2981 = vmatprep.subr.bf16.mxu0 %v4541_v42  ;;  %4259 = vmatprep.mubr.msk.bf16.mxu1 %vm4953_vm0, %v4951_v50  ;;  %v4547_v58 = vld [vmem:[%s6620_s11 + $0x7c] ss:$12 sps:$4 sm:$0xff]   ;;  %v4549_v59 = vld [vmem:[%s6620_s11 + $0x78] ss:$12 sps:$4 sm:$0xff]   ;;  %v4552_v61 = vld [vmem:[%s6620_s11 + $0x60] ss:$12 sps:$4 sm:$0xff]  }
 0x462   : > { %2982 = vmatpush1.bf16.msra.mxu0 %v4543_v44  ;;  %4539 = vset.pattern.permute.xlu0 %v4952_v55  ;;  %v4550_v60 = vld [vmem:[%s6620_s11 + $0x64] ss:$12 sps:$4 sm:$0xff]   ;;  %v4553_v13 = vld [vmem:[%s6620_s11 + $0x4c] ss:$12 sps:$4 sm:$0xff]   ;;  %v4555_v45 = vld [vmem:[%s6620_s11 + $0x48] ss:$12 sps:$4 sm:$0xff]  }
 0x463   : > { %2983 = vmatprep.subr.bf16.mxu0 %v4544_v56  ;;  %4540 = vset.pattern.permute.xlu1 %v4952_v55  ;;  %v4565_v62 = vld [vmem:[%s6620_s11 + $0xb0] ss:$12 sps:$4 sm:$0xff]   ;;  %v4569_v63 = vld [vmem:[%s6620_s11 + $0x98] ss:$12 sps:$4 sm:$0xff]   ;;  %v4556_v3 = vld [vmem:[%s6620_s11 + $0x34] ss:$12 sps:$4 sm:$0xff]  }
 0x464   : > { %4244 = vmatpush3.bf16.msra.mxu1 %v4565_v62  ;;  %v4573_v4 = vld [vmem:[%s6620_s11 + $0x80] ss:$12 sps:$4 sm:$0xff]   ;;  %v4558_v5 = vld [vmem:[%s6620_s11 + $0x30] ss:$12 sps:$4 sm:$0xff]   ;;  %v4577_v8 = vld [vmem:[%s6620_s11 + $0x68] ss:$12 sps:$4 sm:$0xff]  }
 0x465   : > { %4245 = vmatprep.subr.bf16.mxu1 %v4951_v50  ;;  %v4559_v6 = vld [vmem:[%s6620_s11 + $0x1c] ss:$12 sps:$4 sm:$0xff]   ;;  %v4561_v9 = vld [vmem:[%s6620_s11 + $0x18] ss:$12 sps:$4 sm:$0xff]   ;;  %v4564_v15 = vld [vmem:[%s6620_s11] ss:$12 sps:$4 sm:$0xff]  }
 0x466   : > { %2984 = vmatpush1.bf16.msra.mxu0 %v4546_v57  ;;  %v4562_v14 = vld [vmem:[%s6620_s11 + $0x4] ss:$12 sps:$4 sm:$0xff]   ;;  %s6412_s27 = sshll.u32 %s4929_s12, 4  ;;  %s6414_s4 = sshll.u32 %s2696_s29, 4  ;;  %v4566_v18 = vld [vmem:[#allocation12 + $0xa8] ss:$12 sps:$4 sm:$0xff]  }
 0x467   : > { %2985 = vmatprep.subr.bf16.mxu0 %v4547_v58  ;;  %v4581_v11 = vld [vmem:[%s6620_s11 + $0x50] ss:$12 sps:$4 sm:$0xff]   ;;  %v4585_v2 = vld [vmem:[%s6620_s11 + $0x38] ss:$12 sps:$4 sm:$0xff]   ;;  %v4589_v51 = vld [vmem:[%s6620_s11 + $0x20] ss:$12 sps:$4 sm:$0xff]   ;;  %s2699_s15 = scalar_lea.vmem %s6631_s22, %s6412_s27  ;;  %s2702_s3 = scalar_lea.vmem %s6631_s22, %s6414_s4 }
 0x468   : > { %4246 = vmatpush3.bf16.msra.mxu1 %v4569_v63  ;;  %v4568_v37 = vld [vmem:[#allocation12 + $0xac] ss:$12 sps:$4 sm:$0xff]   ;;  %v4572_v19 = vld [vmem:[#allocation12 + $0x94] ss:$12 sps:$4 sm:$0xff]   ;;  %v4570_v52 = vld [vmem:[#allocation12 + $0x90] ss:$12 sps:$4 sm:$0xff]  }
 0x469   : > { %4247 = vmatprep.subr.bf16.mxu1 %v4951_v50  ;;  %v4576_v20 = vld [vmem:[#allocation12 + $0x7c] ss:$12 sps:$4 sm:$0xff]   ;;  %v4593_v7 = vld [vmem:[%s6620_s11 + $0x8] ss:$12 sps:$4 sm:$0xff]   ;;  %s6651_s1 = sld [smem:[#allocation28_spill]]  ;;  %s2705_s25 = sshra.s32 %s6412_s27, 3 }
 0x46a   : > { %2986 = vmatpush1.bf16.msra.mxu0 %v4549_v59  ;;  %v2700_v21 = vld [vmem:[%s2699_s15] sm:$0xff]  ;;  %v4574_v10 = vld [vmem:[#allocation12 + $0x78] ss:$12 sps:$4 sm:$0xff]   ;;  %v4582_v33 = vld [vmem:[#allocation12 + $0x48] ss:$12 sps:$4 sm:$0xff]   ;;  %s3923_s9 = smul.u32 48, %s2705_s25 }
 0x46b   : > { %2987 = vmatprep.subr.bf16.mxu0 %v4550_v60  ;;  %2729 = vperm.xlu0 %4539, %v2700_v21   ;;  %v2703_v53 = vld [vmem:[%s2702_s3] sm:$0xff]  ;;  %v2701_v54 = vld [vmem:[%s2699_s15 + $0x8] sm:$0xff]  ;;  %v4584_v26 = vld [vmem:[#allocation12 + $0x4c] ss:$12 sps:$4 sm:$0xff]   ;;  %s2716_s24 = sshra.s32 %s6414_s4, 3  ;;  %s2687_s12 = sadd.s32 1, %s4929_s12  }
 0x46c   : > { %4248 = vmatpush3.bf16.msra.mxu1 %v4573_v4  ;;  %2767 = vperm.xlu1 %4540, %v2703_v53   ;;  %v4580_v48 = vld [vmem:[#allocation12 + $0x64] ss:$12 sps:$4 sm:$0xff]   ;;  %v4578_v12 = vld [vmem:[#allocation12 + $0x60] ss:$12 sps:$4 sm:$0xff]   ;;  %v4592_v59 = vld [vmem:[#allocation12 + $0x1c] ss:$12 sps:$4 sm:$0xff]  }
 0x46d   : > { %4249 = vmatprep.subr.bf16.mxu1 %v4951_v50  ;;  %v2704_v23 = vld [vmem:[%s2702_s3 + $0x8] sm:$0xff]  ;;  %v4597_v24 = vld [vmem:[#allocation12 + $0xb0] ss:$12 sps:$4 sm:$0xff]   ;;  %v4588_v28 = vld [vmem:[#allocation12 + $0x34] ss:$12 sps:$4 sm:$0xff]   ;;  %s6456_s29 = scalar_lea.vmem [#allocation3], %s3923_s9 }
 0x46e   : > { %2988 = vmatpush1.bf16.msra.mxu0 %v4552_v61  ;;  %v4598_v17 = vld [vmem:[#allocation12 + $0x98] ss:$12 sps:$4 sm:$0xff]   ;;  %v4599_v42 = vld [vmem:[#allocation12 + $0x80] ss:$12 sps:$4 sm:$0xff]   ;;  %v4586_v56 = vld [vmem:[#allocation12 + $0x30] ss:$12 sps:$4 sm:$0xff]  }
 0x46f   : > { %2989 = vmatprep.subr.bf16.mxu0 %v4553_v13  ;;  %s3411_s5 = scalar_lea.vmem %s6651_s1, %s6412_s27  ;;  %2734 = vperm.xlu0 %4539, %v2701_v54   ;;  %s3414_s10 = scalar_lea.vmem %s6651_s1, %s6414_s4  ;;  %v4600_v60 = vld [vmem:[#allocation12 + $0x68] ss:$12 sps:$4 sm:$0xff]   ;;  %v4590_v62 = vld [vmem:[#allocation12 + $0x18] ss:$12 sps:$4 sm:$0xff]  }
 0x470   : > { %4250 = vmatpush3.bf16.msra.mxu1 %v4577_v8  ;;  %2772 = vperm.xlu1 %4540, %v2704_v23   ;;  %v3412_v25 = vld [vmem:[%s3411_s5] sm:$0xff]  ;;  %v3413_v29 = vld [vmem:[%s3411_s5 + $0x8] sm:$0xff]  ;;  %s3924_s13 = smul.u32 48, %s2716_s24  ;;  %p2684_p4 = scmp.ge.s32.totalorder %s2687_s12, 8  }
 0x471   : > { %4251 = vmatprep.subr.bf16.mxu1 %v4951_v50  ;;  %v3429_v31 = vsub.f32 1.0, %v3412_v25  ;;  %v3430_v22 = vsub.f32 1.0, %v3413_v29  ;;  %v3415_v34 = vld [vmem:[%s3414_s10] sm:$0xff]  ;;  %v3416_v1 = vld [vmem:[%s3414_s10 + $0x8] sm:$0xff]  ;;  %vm4954_vm2 = vmmov (%p2684_p4), 0  }
 0x472   : > { %2990 = vmatpush1.bf16.msra.mxu0 %v4555_v45  ;;  %v3460_v58 = vsub.f32 1.0, %v3416_v1  ;;  %v4596_v63 = vld [vmem:[#allocation12 + $0x4] ss:$12 sps:$4 sm:$0xff]   ;;  %v4604_v8 = vld [vmem:[#allocation12 + $0x8] ss:$12 sps:$4 sm:$0xff]   ;;  %s6475_s16 = scalar_lea.vmem [#allocation3], %s3924_s13 }
 0x473   : > { %2991 = vmatprep.subr.bf16.mxu0 %v4556_v3  ;;  %3419 = vperm.xlu0 %4539, %v3412_v25   ;;  %v3431_v44 = vmul.f32 -1000000.0, %v3429_v31  ;;  %v3432_v57 = vmul.f32 -1000000.0, %v3430_v22  ;;  %v4601_v45 = vld [vmem:[#allocation12 + $0x50] ss:$12 sps:$4 sm:$0xff]  }
 0x474   : > { %4252 = vmatpush3.bf16.msra.mxu1 %v4581_v11  ;;  %3424 = vperm.xlu1 %4540, %v3413_v29   ;;  %v3462_v13 = vmul.f32 -1000000.0, %v3460_v58  ;;  %v4594_v3 = vld [vmem:[#allocation12] ss:$12 sps:$4 sm:$0xff]   ;;  %v4602_v4 = vld [vmem:[#allocation12 + $0x38] ss:$12 sps:$4 sm:$0xff]  }
 0x475   : > { %4253 = vmatprep.subr.bf16.mxu1 %v4951_v50  ;;  %v2836_v11 = vld [vmem:[#allocation10] sm:$0x7] }
 0x476   : > { %2992 = vmatpush1.bf16.msra.mxu0 %v4558_v5  ;;  %v3065_v5 = vpack.c.bf16 %v4913_v39, %v4917_v41  ;;  %v2845_v21 = vrot.slane %v2836_v11, %v5789_v49 }
 0x477   : > { %2993 = vmatprep.subr.bf16.mxu0 %v4559_v6  ;;  %3449 = vperm.xlu0 %4539, %v3415_v34   ;;  %v4603_v6 = vld [vmem:[#allocation12 + $0x20] ss:$12 sps:$4 sm:$0xff]  }
 0x478   : > { %4254 = vmatpush3.bf16.msra.mxu1 %v4585_v2  ;;  %3454 = vperm.xlu1 %4540, %v3416_v1  }
 0x479   : > { %4255 = vmatprep.subr.bf16.mxu1 %v4951_v50 }
 0x47a   : > { %2994 = vmatpush1.bf16.msra.mxu0 %v4561_v9 }
 0x47b   : > { %2995 = vmatprep.subr.bf16.mxu0 %v4562_v14  ;;  %3435 = vperm.xlu0 %4539, %v3431_v44   ;;  %v2710_v14 = vld [vmem:[%s6456_s29] sm:$0xff] }
 0x47c   : > { %4256 = vmatpush3.bf16.msra.mxu1 %v4589_v51  ;;  %3440 = vperm.xlu1 %4540, %v3432_v57  }
 0x47d   : > { %4257 = vmatprep.subr.bf16.mxu1 %v4951_v50 }
 0x47e   : > { %2996 = vmatpush1.bf16.msra.mxu0 %v4564_v15 }
 0x47f   : > { %3243 = vmatprep.subr.bf16.mxu0 %v4568_v37  ;;  %v2747_v37 = vrot.slane %v6133_v38, %v5778_v46 }
 0x480   : > { %4258 = vmatpush3.bf16.msra.mxu1 %v4593_v7  ;;  %3470 = vperm.xlu1 %4540, %v3462_v13   ;;  %v2751_v7 = vrot.slane %v6133_v38, %v5789_v49  ;;  %v2721_v13 = vld [vmem:[%s6475_s16 + $0x18] sm:$0xff] }
 0x481   : > { %3014 = vmatmul.mubr.bf16.vlgmr.msra.gmra.mxu0 %v2803_v16  ;;  %4263 = vmatprep.subr.bf16.mxu1 %v4951_v50 }
 0x482   : > { %3244 = vmatpush1.bf16.msra.mxu0 %v4566_v18  ;;  %3275 = vmatprep.mubr.bf16.mxu0 %v4952_v55  ;;  %v3459_v55 = vsub.f32 1.0, %v3415_v34  ;;  %v2841_v18 = vrot.slane %v2836_v11, %v5778_v46 }
 0x483   : > { %3245 = vmatprep.subr.bf16.mxu0 %v4572_v19  ;;  %4260 = vmatmul.mubr.bf16.vlgmr.msra.gmra.mxu1 %v2803_v16  ;;  %v2711_v16 = vld [vmem:[%s6456_s29 + $0x8] sm:$0xff] }
 0x484   : > { %4264 = vmatpush3.bf16.msra.mxu1 %v4597_v24  ;;  %4279 = vmatprep.mubr.msk.bf16.mxu1 %vm4953_vm0, %v4951_v50  ;;  %v3461_v61 = vmul.f32 -1000000.0, %v3459_v55 }
 0x485   : > { %4265 = vmatprep.subr.bf16.mxu1 %v4951_v50 }
 0x486   : > { %3246 = vmatpush1.bf16.msra.mxu0 %v4570_v52  ;;  %3465 = vperm.xlu0 %4539, %v3461_v61  }
 0x487   : > { %3247 = vmatprep.subr.bf16.mxu0 %v4576_v20 }
 0x488   : > { %4266 = vmatpush3.bf16.msra.mxu1 %v4598_v17 }
 0x489   : > { %4267 = vmatprep.subr.bf16.mxu1 %v4951_v50 }
 0x48a   : > { %3248 = vmatpush1.bf16.msra.mxu0 %v4574_v10  ;;  %v2714_v10 = vld [vmem:[%s6456_s29 + $0x38] sm:$0xff] }
 0x48b   : > { %3249 = vmatprep.subr.bf16.mxu0 %v4580_v48 }
 0x48c   : > { %4268 = vmatpush3.bf16.msra.mxu1 %v4599_v42 }
 0x48d   : > { %4269 = vmatprep.subr.bf16.mxu1 %v4951_v50 }
 0x48e   : > { %3250 = vmatpush1.bf16.msra.mxu0 %v4578_v12 }
 0x48f   : > { %3251 = vmatprep.subr.bf16.mxu0 %v4584_v26 }
 0x490   : > { %4270 = vmatpush3.bf16.msra.mxu1 %v4600_v60 }
 0x491   : > { %4271 = vmatprep.subr.bf16.mxu1 %v4951_v50 }
 0x492   : > { %3252 = vmatpush1.bf16.msra.mxu0 %v4582_v33 }
 0x493   : > { %3253 = vmatprep.subr.bf16.mxu0 %v4588_v28 }
 0x494   : > { %4272 = vmatpush3.bf16.msra.mxu1 %v4601_v45 }
 0x495   : > { %4273 = vmatprep.subr.bf16.mxu1 %v4951_v50 }
 0x496   : > { %3254 = vmatpush1.bf16.msra.mxu0 %v4586_v56 }
 0x497   : > { %3255 = vmatprep.subr.bf16.mxu0 %v4592_v59 }
 0x498   : > { %4274 = vmatpush3.bf16.msra.mxu1 %v4602_v4 }
 0x499   : > { %4275 = vmatprep.subr.bf16.mxu1 %v4951_v50 }
 0x49a   : > { %3256 = vmatpush1.bf16.msra.mxu0 %v4590_v62 }
 0x49b   : > { %3257 = vmatprep.subr.bf16.mxu0 %v4596_v63 }
 0x49c   : > { %4276 = vmatpush3.bf16.msra.mxu1 %v4603_v6 }
 0x49d   : > { %4277 = vmatprep.subr.bf16.mxu1 %v4951_v50  ;;  %v2713_v50 = vld [vmem:[%s6456_s29 + $0x30] sm:$0xff] }
 0x49e   : > { %3258 = vmatpush1.bf16.msra.mxu0 %v4594_v3  ;;  %v6480_v3 = vld [vmem:[#allocation13] sm:$0x7] }
 0x49f   :  { %4283 = vmatprep.subr.bf16.mxu0 (%p2684_p4), %v4948_v0 }
 0x4a0   : > { %4278 = vmatpush3.bf16.msra.mxu1 %v4604_v8  ;;  %v2712_v8 = vld [vmem:[%s6456_s29 + $0x10] sm:$0xff] }
 0x4a1   : > { %3276 = vmatmul.mubr.bf16.vlgmr.msra.gmra.mxu0 %v3065_v5  ;;  %4303 = vmatprep.subr.bf16.mxu1 (%p2684_p4), %v4948_v0 }
 0x4a2   :  { %4299 = vmatprep.mubr.msk.bf16.mxu0 (%p2684_p4), %vm4954_vm2, %v4948_v0 }
 0x4a3   : > { %4280 = vmatmul.mubr.bf16.vlgmr.msra.gmra.mxu1 %v3065_v5  ;;  %v2785_v5 = vrot.slane %v6138_v30, %v5778_v46 }
 0x4a4   :  { %4319 = vmatprep.mubr.msk.bf16.mxu1 (%p2684_p4), %vm4954_vm2, %v4948_v0 }
 0x4e6   : > { %v6454_v9 = vpop.permute.xlu0 %2729 }
 0x4e7   : > { %v2737_v15 = vmul.f32 %v6454_v9, %v2710_v14  ;;  %v2738_v52 = vmul.f32 %v6454_v9, %v2711_v16  ;;  %v6478_v45 = vpop.permute.xlu1 %2767  ;;  %v2849_v14 = vrot.slane %v2836_v11, %v5781_v47  ;;  %v2755_v16 = vrot.slane %v6133_v38, %v5781_v47  ;;  %v4651_v38 = vld [vmem:[#allocation19 + $0x20] sm:$0xff] (%p2684_p4)  }
 0x4e8   : > { %v2775_v4 = vmul.f32 %v6478_v45, %v2721_v13 }
 0x4e9   : > { %v2759_v19 = vadd.f32 %v2747_v37, %v2737_v15  ;;  %v2760_v12 = vadd.f32 %v2751_v7, %v2738_v52  ;;  %v3103_v15 = vrot.slane %v6480_v3, %v5778_v46  ;;  %v4648_v46 = vld [vmem:[%s6627_s18 + $0x30] sm:$0xff] (%p2684_p4)  }
 0x4ea   : > { %v6463_v2 = vpop.permute.xlu0 %2734 }
 0x4eb   : > { %v2740_v51 = vmul.f32 %v6463_v2, %v2713_v50  ;;  %v2741_v24 = vmul.f32 %v6463_v2, %v2714_v10  ;;  %v2797_v50 = vadd.f32 %v2785_v5, %v2775_v4  ;;  %v3107_v10 = vrot.slane %v6480_v3, %v5789_v49 }
 0x4ed   : > { %v2762_v23 = vadd.f32 %v2747_v37, %v2740_v51  ;;  %v2763_v34 = vadd.f32 %v2751_v7, %v2741_v24  ;;  %v2724_v37 = vld [vmem:[%s6475_s16 + $0x48] sm:$0xff]  ;;  %v2722_v51 = vld [vmem:[%s6475_s16 + $0x20] sm:$0xff] }
 0x4ee   : > { %v2715_v7 = vld [vmem:[%s6456_s29 + $0x40] sm:$0xff] }
 0x541   : > { %v3015_v20 = vpop.f32.mrf.mxu0 }
 0x542   : > { %v3016_v53 = vadd.f32 %v3015_v20, %v2841_v18 }
 0x543   : > { %v3017_v54 = vpop.f32.mrf.mxu0  ;;  %v3058_v42 = vpop.f32.mrf.mxu1 }
 0x544   : > { %v3327_v48 = vadd.f32 %v3016_v53, %v2759_v19  ;;  %v3018_v25 = vadd.f32 %v3017_v54, %v2845_v21  ;;  %v3059_v53 = vadd.f32 %v3058_v42, %v2849_v14 }
 0x545   : > { %v3019_v26 = vpop.f32.mrf.mxu0  ;;  %v4261_v56 = vpop.f32.mrf.mxu1 }
 0x546   : > { %v3896_v29 = vmul.f32 -1.442695, %v3327_v48  ;;  %v3020_v17 = vadd.f32 %v3019_v26, %v2841_v18  ;;  %v3341_v22 = vadd.f32 %v3018_v25, %v2760_v12  ;;  %v2739_v18 = vmul.f32 %v6454_v9, %v2712_v8 }
 0x547   : > { %v3021_v31 = vpop.f32.mrf.mxu0  ;;  %v3061_v57 = vpop.f32.mrf.mxu1  ;;  %v2789_v9 = vrot.slane %v6138_v30, %v5789_v49  ;;  %v2742_v26 = vmul.f32 %v6463_v2, %v2715_v7  ;;  %v4650_v49 = vld [vmem:[%s6627_s18 + $0x28] sm:$0xff] (%p2684_p4)  }
 0x548   : > { %4605 = vpow2.f32 %v3896_v29  ;;  %v3328_v33 = vadd.f32 %v3020_v17, %v2762_v23  ;;  %v3022_v28 = vadd.f32 %v3021_v31, %v2845_v21  ;;  %v3898_v44 = vmul.f32 -1.442695, %v3341_v22  ;;  %v6495_v21 = vpop.permute.xlu1 %2772  ;;  %v2725_v31 = vld [vmem:[%s6475_s16 + $0x50] sm:$0xff] }
 0x549   : > { %v4262_v59 = vpop.f32.mrf.mxu1  ;;  %v2778_v54 = vmul.f32 %v6495_v21, %v2724_v37  ;;  %v2776_v23 = vmul.f32 %v6478_v45, %v2722_v51  ;;  %v2761_v25 = vadd.f32 %v2755_v16, %v2739_v18  ;;  %v2764_v2 = vadd.f32 %v2755_v16, %v2742_v26  ;;  %v3420_v37 = vpop.permute.xlu0 %3419 }
 0x54a   : > { %v3897_v1 = vmul.f32 -1.442695, %v3328_v33  ;;  %v3342_v55 = vadd.f32 %v3022_v28, %v2763_v34  ;;  %v2779_v59 = vmul.f32 %v6495_v21, %v2725_v31 }
 0x54c   : > { %4607 = vpow2.f32 %v3897_v1  ;;  %v3899_v58 = vmul.f32 -1.442695, %v3342_v55  ;;  %v2800_v1 = vadd.f32 %v2785_v5, %v2778_v54  ;;  %v2798_v55 = vadd.f32 %v2789_v9, %v2776_v23  ;;  %v3425_v51 = vpop.permute.xlu1 %3424 }
 0x54d   : > { %4609 = vpow2.f32 %v3898_v44  ;;  %v3062_v44 = vadd.f32 %v3061_v57, %v2849_v14  ;;  %v2801_v5 = vadd.f32 %v2789_v9, %v2779_v59 }
 0x54e   : > { %4611 = vpow2.f32 %v3899_v58 }
 0x550   : > { %v3455_v9 = vpop.permute.xlu1 %3454 }
 0x555   : > { %v4606_v60 = vpop.eup %4605 }
 0x556   : > { %v3335_v61 = vadd.f32 1.0, %v4606_v60 }
 0x558   : > { %4613 = vrcp.f32 %v3335_v61 }
 0x559   : > { %v4608_v62 = vpop.eup %4607 }
 0x55a   : > { %v3336_v63 = vadd.f32 1.0, %v4608_v62  ;;  %v4610_v6 = vpop.eup %4609 }
 0x55b   : > { %v3349_v19 = vadd.f32 1.0, %v4610_v6  ;;  %v4612_v20 = vpop.eup %4611 }
 0x55c   : > { %4615 = vrcp.f32 %v3336_v63  ;;  %v3350_v29 = vadd.f32 1.0, %v4612_v20 }
 0x55d   : > { %4617 = vrcp.f32 %v3349_v19 }
 0x561   : > { %v3277_v52 = vpop.f32.mrf.mxu0 }
 0x562   : > { %v3278_v11 = vadd.f32 %v3277_v52, %v3103_v15 }
 0x563   : > { %v3279_v48 = vpop.f32.mrf.mxu0  ;;  %v3320_v4 = vpop.f32.mrf.mxu1 }
 0x564   : > { %v3369_v24 = vadd.f32 %v3278_v11, %v2797_v50  ;;  %v3280_v34 = vadd.f32 %v3279_v48, %v3107_v10  ;;  %v3450_v11 = vpop.permute.xlu0 %3449 }
 0x565   : > { %v4614_v12 = vpop.eup %4613  ;;  %v3281_v17 = vpop.f32.mrf.mxu0 }
 0x566   : > { %v3355_v33 = vmul.f32 %v4614_v12, %v3059_v53  ;;  %v3900_v22 = vmul.f32 -1.442695, %v3369_v24  ;;  %v3282_v28 = vadd.f32 %v3281_v17, %v3103_v15  ;;  %v3383_v62 = vadd.f32 %v3280_v34, %v2798_v55  ;;  %v4281_v8 = vpop.f32.mrf.mxu1  ;;  %v2723_v34 = vld [vmem:[%s6475_s16 + $0x28] sm:$0xff] }
 0x567   : > { %v3283_v56 = vpop.f32.mrf.mxu0  ;;  %v2777_v55 = vmul.f32 %v6478_v45, %v2723_v34 }
 0x568   : > { %v3357_v42 = vadd.f32 %v3355_v33, %v2761_v25  ;;  %4619 = vpow2.f32 %v3900_v22  ;;  %v3370_v60 = vadd.f32 %v3282_v28, %v2800_v1  ;;  %v3284_v63 = vadd.f32 %v3283_v56, %v3107_v10  ;;  %v3323_v15 = vpop.f32.mrf.mxu1  ;;  %v3436_v17 = vpop.permute.xlu0 %3435 }
 0x569   : > { %v4616_v58 = vpop.eup %4615  ;;  %4621 = vrcp.f32 %v3350_v29  ;;  %v3902_v57 = vmul.f32 -1.442695, %v3383_v62  ;;  %v3111_v33 = vrot.slane %v6480_v3, %v5781_v47 }
 0x56a   : > { %4623 = vtanh.f32 %v3357_v42  ;;  %v3356_v61 = vmul.f32 %v4616_v58, %v3062_v44  ;;  %v3901_v13 = vmul.f32 -1.442695, %v3370_v60  ;;  %v3384_v14 = vadd.f32 %v3284_v63, %v2801_v5  ;;  %v4282_v50 = vpop.f32.mrf.mxu1  ;;  %v4618_v18 = vpop.eup %4617 }
 0x56b   : > { %v3361_v20 = vsub.f32 1.0, %v4618_v18  ;;  %v3365_v10 = vmul.f32 %v4925_v43, %v4618_v18  ;;  %v2793_v42 = vrot.slane %v6138_v30, %v5781_v47  ;;  %v3441_v44 = vpop.permute.xlu1 %3440  ;;  %v3321_v59 = vadd.f32 %v3320_v4, %v3111_v33  ;;  %v4649_v47 = vld [vmem:[#allocation19 + $0x28] sm:$0xff] (%p2684_p4)   ;;  %v4652_v30 = vld [vmem:[%s6627_s18 + $0x20] sm:$0xff] (%p2684_p4)  }
 0x56c   : > { %v3358_v6 = vadd.f32 %v3356_v61, %v2764_v2  ;;  %4625 = vpow2.f32 %v3901_v13  ;;  %v3903_v19 = vmul.f32 -1.442695, %v3384_v14  ;;  %v2726_v2 = vld [vmem:[%s6475_s16 + $0x58] sm:$0xff]  ;;  %v3324_v5 = vadd.f32 %v3323_v15, %v3111_v33  ;;  %v3920_v33 = vld [vmem:[#allocation21] ss:$0 sm:$0xff] (%p2684_p4) }
 0x56d   : > { %v2799_v62 = vadd.f32 %v2793_v42, %v2777_v55 }
 0x56e   : > { %4627 = vtanh.f32 %v3358_v6 }
 0x56f   : > { %4629 = vpow2.f32 %v3902_v57 }
 0x570   : > { %4631 = vpow2.f32 %v3903_v19 }
 0x575   : > { %v4620_v16 = vpop.eup %4619 }
 0x576   : > { %v4622_v52 = vpop.eup %4621  ;;  %v3377_v7 = vadd.f32 1.0, %v4620_v16 }
 0x577   : > { %v4624_v53 = vpop.eup %4623  ;;  %v3362_v23 = vsub.f32 1.0, %v4622_v52  ;;  %v3366_v25 = vmul.f32 %v4921_v32, %v4622_v52  ;;  %v3466_v52 = vpop.permute.xlu0 %3465 }
 0x578   : > { %v3363_v54 = vmul.f32 %v4624_v53, %v3361_v20  ;;  %4633 = vrcp.f32 %v3377_v7 }
 0x579   : > { %v4626_v48 = vpop.eup %4625 }
 0x57a   : > { %v6507_v43 = vadd.f32 %v3365_v10, %v3363_v54   ;;  %v3378_v12 = vadd.f32 1.0, %v4626_v48  ;;  %v3471_v54 = vpop.permute.xlu1 %3470 }
 0x57b   : > { %v4628_v24 = vpop.eup %4627 }
 0x57c   : > { %v3427_v26 = vmul.f32 %v3420_v37, %v6507_v43  ;;  %v3364_v29 = vmul.f32 %v4628_v24, %v3362_v23  ;;  %4635 = vrcp.f32 %v3378_v12  ;;  %v4630_v22 = vpop.eup %4629  ;;  %v4646_v24 = vld [vmem:[%s6627_s18 + $0x38] sm:$0xff] (%p2684_p4)   ;;  %v4658_v43 = vld [vmem:[%s6627_s18 + $0x8] sm:$0xff] (%p2684_p4)  }
 0x57d   : > { %v3391_v58 = vadd.f32 1.0, %v4630_v22  ;;  %v4632_v60 = vpop.eup %4631  ;;  %4304 = vmatpush3.bf16.msra.mxu1 (%p2684_p4), %v4646_v24  ;;  %v4659_v12 = vld [vmem:[#allocation19] sm:$0xff] (%p2684_p4)  }
 0x57e   : > { %v3443_v31 = vadd.f32 %v3436_v17, %v3427_v26  ;;  %v3368_v32 = vadd.f32 %v3366_v25, %v3364_v29   ;;  %v3392_v63 = vadd.f32 1.0, %v4632_v60  ;;  %4305 = vmatprep.subr.bf16.mxu1 (%p2684_p4), %v4948_v0  ;;  %v4660_v25 = vld [vmem:[%s6627_s18] sm:$0xff] (%p2684_p4)  }
 0x57f   : > { %4637 = vrcp.f32 %v3391_v58 }
 0x580   : > { %v6515_v27 = vmax.f32 %v4909_v27, %v3443_v31   ;;  %v3428_v1 = vmul.f32 %v3425_v51, %v3368_v32  ;;  %v4657_v32 = vld [vmem:[#allocation19 + $0x8] sm:$0xff] (%p2684_p4)  }
 0x581   :  { %4306 = vmatpush3.bf16.msra.mxu1 (%p2684_p4), %v4648_v46 }
 0x582   : > { %v6652_v28 = vmov %v6515_v27  ;;  %v3444_v56 = vadd.f32 %v3441_v44, %v3428_v1  ;;  %v2780_v27 = vmul.f32 %v6495_v21, %v2726_v2  ;;  %4307 = vmatprep.subr.bf16.mxu1 (%p2684_p4), %v4948_v0 }
 0x584   : > { %v6522_v36 = vmax.f32 %v4905_v36, %v3444_v56   ;;  %v2802_v45 = vadd.f32 %v2793_v42, %v2780_v27  ;;  %v6659_v27 = vmov %v6652_v28 }
 0x585   : > { %v4634_v61 = vpop.eup %4633  ;;  %4308 = vmatpush3.bf16.msra.mxu1 (%p2684_p4), %v4650_v49 }
 0x586   : > { %v6653_v3 = vmov %v6522_v36  ;;  %v3397_v13 = vmul.f32 %v4634_v61, %v3321_v59  ;;  %4309 = vmatprep.subr.bf16.mxu1 (%p2684_p4), %v4948_v0 }
 0x587   :  { %v3477_v29 = vpack.c.bf16 (%p2684_p4), %v6653_v3, %v6652_v28 }
 0x588   : > { %v3399_v6 = vadd.f32 %v3397_v13, %v2799_v62 }
 0x589   : > { %v4636_v8 = vpop.eup %4635  ;;  %4310 = vmatpush3.bf16.msra.mxu1 (%p2684_p4), %v4652_v30 }
 0x58a   : > { %4639 = vtanh.f32 %v3399_v6  ;;  %v3398_v57 = vmul.f32 %v4636_v8, %v3324_v5  ;;  %4311 = vmatprep.subr.bf16.mxu1 (%p2684_p4), %v4948_v0 }
 0x58b   : > { %4641 = vrcp.f32 %v3392_v63 }
 0x58c   : > { %v3400_v4 = vadd.f32 %v3398_v57, %v2802_v45  ;;  %v4638_v14 = vpop.eup %4637 }
 0x58d   : > { %v3403_v37 = vsub.f32 1.0, %v4638_v14  ;;  %v3407_v18 = vmul.f32 %v4917_v41, %v4638_v14 }
 0x58e   : > { %4643 = vtanh.f32 %v3400_v4 }
 0x597   : > { %v4640_v50 = vpop.eup %4639 }
 0x598   : > { %v4642_v36 = vpop.eup %4641  ;;  %v3405_v19 = vmul.f32 %v4640_v50, %v3403_v37 }
 0x599   : > { %v3404_v16 = vsub.f32 1.0, %v4642_v36  ;;  %v3408_v15 = vmul.f32 %v4913_v39, %v4642_v36  ;;  %v6658_v36 = vmov %v6653_v3 }
 0x59a   : > { %v3409_v41 = vadd.f32 %v3407_v18, %v3405_v19  }
 0x59b   : > { %v4644_v21 = vpop.eup %4643 }
 0x59c   : > { %v3457_v51 = vmul.f32 %v3450_v11, %v3409_v41  ;;  %v3406_v20 = vmul.f32 %v4644_v21, %v3404_v16  ;;  %v4645_v11 = vld [vmem:[#allocation19 + $0x38] sm:$0xff] (%p2684_p4)   ;;  %v4656_v41 = vld [vmem:[%s6627_s18 + $0x10] sm:$0xff] (%p2684_p4)  }
 0x59d   :  { %4284 = vmatpush3.bf16.msra.mxu0 (%p2684_p4), %v4645_v11 }
 0x59e   : > { %v3473_v7 = vadd.f32 %v3466_v52, %v3457_v51  ;;  %v3410_v39 = vadd.f32 %v3408_v15, %v3406_v20   ;;  %4285 = vmatprep.subr.bf16.mxu0 (%p2684_p4), %v4948_v0 }
 0x5a0   : > { %v6528_v35 = vmax.f32 %v4901_v35, %v3473_v7   ;;  %v3458_v10 = vmul.f32 %v3455_v9, %v3410_v39  ;;  %v4647_v9 = vld [vmem:[#allocation19 + $0x30] sm:$0xff] (%p2684_p4)  }
 0x5a1   :  { %4286 = vmatpush3.bf16.msra.mxu0 (%p2684_p4), %v4647_v9  ;;  %v4655_v39 = vld [vmem:[#allocation19 + $0x10] sm:$0xff] (%p2684_p4)  }
 0x5a2   : > { %v6654_v53 = vmov %v6528_v35  ;;  %v3474_v48 = vadd.f32 %v3471_v54, %v3458_v10  ;;  %4287 = vmatprep.subr.bf16.mxu0 (%p2684_p4), %v4948_v0 }
 0x5a3   : > { %v6657_v35 = vmov %v6654_v53  ;;  %2686 = sbr.rel (!%p2684_p4) target bundleno = 1119 (0x45f), region = 183 }
 0x5a4   : > { %v6531_v40 = vmax.f32 %v4897_v40, %v3474_v48   ;;  %v4654_v35 = vld [vmem:[%s6627_s18 + $0x18] sm:$0xff] (%p2684_p4)  }
 0x5a5   :  { %4288 = vmatpush3.bf16.msra.mxu0 (%p2684_p4), %v4649_v47  ;;  %4312 = vmatpush3.bf16.msra.mxu1 (%p2684_p4), %v4654_v35 }
 0x5a6   : > { %v6655_v23 = vmov %v6531_v40  ;;  %4289 = vmatprep.subr.bf16.mxu0 (%p2684_p4), %v4948_v0  ;;  %4313 = vmatprep.subr.bf16.mxu1 (%p2684_p4), %v4948_v0 }
 0x5a7   : > { %v6656_v40 = vmov %v6655_v23  ;;  %v3494_v26 = vpack.c.bf16 (%p2684_p4), %v6655_v23, %v6654_v53 }
 0x5a8   :  { %v4653_v40 = vld [vmem:[#allocation19 + $0x18] sm:$0xff]  }
 0x5a9   :  { %4290 = vmatpush3.bf16.msra.mxu0 %v4651_v38  ;;  %4314 = vmatpush3.bf16.msra.mxu1 %v4656_v41 }
 0x5aa   :  { %4291 = vmatprep.subr.bf16.mxu0 %v4948_v0  ;;  %4315 = vmatprep.subr.bf16.mxu1 %v4948_v0 }
 0x5ad   :  { %4292 = vmatpush3.bf16.msra.mxu0 %v4653_v40  ;;  %4316 = vmatpush3.bf16.msra.mxu1 %v4658_v43 }
 0x5ae   :  { %4293 = vmatprep.subr.bf16.mxu0 %v4948_v0  ;;  %4317 = vmatprep.subr.bf16.mxu1 %v4948_v0 }
 0x5b1   :  { %4294 = vmatpush3.bf16.msra.mxu0 %v4655_v39  ;;  %4318 = vmatpush3.bf16.msra.mxu1 %v4660_v25 }
 0x5b2   :  { %4295 = vmatprep.subr.bf16.mxu0 %v4948_v0 }
 0x5b4   :  { %4320 = vmatmul.mubr.bf16.vlgmr.msra.gmra.mxu1 %v3477_v29 }
 0x5b5   :  { %4296 = vmatpush3.bf16.msra.mxu0 %v4657_v32 }
 0x5b6   :  { %4297 = vmatprep.subr.bf16.mxu0 %v4948_v0 }
 0x5b9   :  { %4298 = vmatpush3.bf16.msra.mxu0 %v4659_v12 }
 0x5bc   :  { %4300 = vmatmul.mubr.bf16.vlgmr.msra.gmra.mxu0 %v3494_v26 }
 0x674   :  { %v3682_v31 = vpop.f32.mrf.mxu1 }
 0x676   :  { %v4321_v1 = vpop.f32.mrf.mxu1 }
 0x678   :  { %v3685_v55 = vpop.f32.mrf.mxu1 }
 0x67a   :  { %v4322_v58 = vpop.f32.mrf.mxu1 }
 0x67c   :  { %v3593_v17 = vpop.f32.mrf.mxu0 }
 0x67d   :  { %v3683_v22 = vadd.f32 %v3682_v31, %v3593_v17 }
 0x67e   :  { %v4301_v34 = vpop.f32.mrf.mxu0 }
 0x67f   :  { %v3696_v42 = vadd.f32 %v3920_v33, %v3683_v22 }
 0x680   :  { %v3596_v44 = vpop.f32.mrf.mxu0 }
 0x681   :  { %3698 = vst [vmem:[%s6630_s21] sm:$0xff] %v3696_v42  ;;  %v3686_v0 = vadd.f32 %v3685_v55, %v3596_v44 }
 0x682   :  { %v4302_v56 = vpop.f32.mrf.mxu0 }
 0x683   :  { %v3697_v28 = vadd.f32 %v3920_v33, %v3686_v0 }
 0x685   :  { %3699 = vst [vmem:[%s6630_s21 + $0x8] sm:$0xff] %v3697_v28 }
 0x686   :  { %3708 = vsyncpa [#allocation9], 1 }
 0x687   :  { %3709 = vsyncpa [#allocation11], 1 }
 0x688   :  { %3710 = vsyncpa [#allocation14], 1 }
 0x689   :  { %3711 = vsyncpa [#allocation17], 1 }
 0x68a   :  { %3712 = vsyncpa [#allocation20], 1 }

</bundles_post_ra>
